<compile_context>
chip_gen: v7x
topology: tpu7x:2x2x1
jax: 0.10.0
libtpu: 0.0.40
codegen_flags: <defaults>
</compile_context>

<pallas_src>
import functools
import random

import jax
import jax.numpy as jnp
from jax.experimental import pallas as pl
from jax.experimental.pallas import tpu as pltpu

# ----------------------- small, TPU-aligned hyperparameters -----------------------
VOCAB = 256      # stands in for 8668
EMB = 128        # stands in for 512
ENC_HID = 128    # stands in for 512
DEC_HID = 128    # stands in for 512
IMG = 128        # assumed image-feature dim
B = 8            # batch
SRC_LEN = 8
TRG_LEN = 6


# ------------------------------- one-off dense kernel -------------------------------
def _dense_kernel(x_ref, w_ref, b_ref, o_ref, *, act):
    y = jnp.dot(x_ref[...], w_ref[...], preferred_element_type=jnp.float32) + b_ref[...]
    if act == "tanh":
        y = jnp.tanh(y)
    o_ref[...] = y


def dense(x, w_t, b_row, act=None):
    """x:(R,K)  w_t:(K,N) pre-transposed  b_row:(1,N) -> (R,N). Whole-array VMEM tiles."""
    out = jax.ShapeDtypeStruct((x.shape[0], w_t.shape[1]), jnp.float32)
    return pl.pallas_call(functools.partial(_dense_kernel, act=act),
                          out_shape=out)(x, w_t, b_row)


# ------------------------- fused bidirectional encoder recurrence -------------------------
def _enc_rnn_kernel(gi_f_ref, gi_b_ref, whh_f_ref, bhh_f_ref, whh_b_ref, bhh_b_ref,
                    out_f_ref, out_b_ref, hf_sc, hb_sc):
    @pl.when(pl.program_id(0) == 0)
    def _():
        hf_sc[...] = jnp.zeros_like(hf_sc)
        hb_sc[...] = jnp.zeros_like(hb_sc)

    def gru(gi, h, whh, bhh):
        # gi = x @ W_ih + b_ih was hoisted out of the recurrence (precomputed for all steps).
        H = h.shape[1]
        gh = jnp.dot(h, whh, preferred_element_type=jnp.float32) + bhh
        r = jax.nn.sigmoid(gi[:, :H] + gh[:, :H])
        z = jax.nn.sigmoid(gi[:, H:2 * H] + gh[:, H:2 * H])
        n = jnp.tanh(gi[:, 2 * H:] + r * gh[:, 2 * H:])
        return (1.0 - z) * n + z * h

    hf = gru(gi_f_ref[0], hf_sc[...], whh_f_ref[...], bhh_f_ref[...])   # time t = g
    hb = gru(gi_b_ref[0], hb_sc[...], whh_b_ref[...], bhh_b_ref[...])   # time t = S-1-g
    hf_sc[...] = hf
    hb_sc[...] = hb
    out_f_ref[0] = hf
    out_b_ref[0] = hb            # stored in reverse time order; flipped at JAX level


def encoder_forward(src, p):
    S, Bsz = src.shape
    He = ENC_HID
    emb = jnp.take(p["emb"], src, axis=0)                               # (S,B,EMB); dropout=identity
    # Hoisted input projection for BOTH directions in one MXU call: (S*B,EMB) @ (EMB,6He)
    gi_both = dense(emb.reshape(S * Bsz, EMB), p["w_ih_fb_t"], p["b_ih_fb"])
    gi_both = gi_both.reshape(S, Bsz, 6 * He)
    gi_f = gi_both[:, :, :3 * He]
    gi_b = gi_both[:, :, 3 * He:]

    out_f, out_b_rev = pl.pallas_call(
        _enc_rnn_kernel,
        out_shape=(jax.ShapeDtypeStruct((S, Bsz, He), jnp.float32),
                   jax.ShapeDtypeStruct((S, Bsz, He), jnp.float32)),
        grid_spec=pltpu.PrefetchScalarGridSpec(
            num_scalar_prefetch=0,
            grid=(S,),
            in_specs=[
                pl.BlockSpec((1, Bsz, 3 * He), lambda g: (g, 0, 0)),            # gi forward @ t=g
                pl.BlockSpec((1, Bsz, 3 * He), lambda g, S=S: (S - 1 - g, 0, 0)),  # gi backward @ t=S-1-g
                pl.BlockSpec((He, 3 * He), lambda g: (0, 0)),                   # W_hh fwd (resident)
                pl.BlockSpec((1, 3 * He), lambda g: (0, 0)),
                pl.BlockSpec((He, 3 * He), lambda g: (0, 0)),                   # W_hh bwd (resident)
                pl.BlockSpec((1, 3 * He), lambda g: (0, 0)),
            ],
            out_specs=[
                pl.BlockSpec((1, Bsz, He), lambda g: (g, 0, 0)),
                pl.BlockSpec((1, Bsz, He), lambda g: (g, 0, 0)),
            ],
            scratch_shapes=[pltpu.VMEM((Bsz, He), jnp.float32),
                            pltpu.VMEM((Bsz, He), jnp.float32)],
        ),
        compiler_params=pltpu.CompilerParams(dimension_semantics=("arbitrary",)),
    )(gi_f, gi_b, p["whh_f_t"], p["bhh_f"], p["whh_b_t"], p["bhh_b"])

    out_b = out_b_rev[::-1]                                             # back to time order
    enc_outputs = jnp.concatenate([out_f, out_b], axis=-1)              # (S,B,2He)
    h_cat = jnp.concatenate([out_f[-1], out_b_rev[-1]], axis=-1)        # [fwd final, bwd final]
    hidden0 = dense(h_cat, p["fc_w_t"], p["fc_b"], act="tanh")          # (B,Hd)
    return enc_outputs, hidden0


# ------------------------------ fused decoder recurrence ------------------------------
def _decoder_kernel(tf_ref,                                            # scalar prefetch (SMEM)
                    trg_emb_ref, h0_ref, keys_ref, eo_ref, wah_ref, v_ref, emb_ref,
                    wih_e_ref, wih_w_ref, gi_img_ref, whh_ref, bhh_ref,
                    wo_h_ref, wo_w_ref, wo_e_ref, bo_ref,
                    out_ref, h_sc, pred_sc):
    g = pl.program_id(0)
    H = h_sc.shape[1]

    @pl.when(g == 0)
    def _():
        h_sc[...] = h0_ref[...]
        pred_sc[...] = jnp.zeros_like(pred_sc)

    # ---- input embedding: teacher-forced trg token or previous greedy prediction ----
    tf = (tf_ref[g] > 0).astype(jnp.float32)                            # scalar
    pred_emb = jnp.dot(pred_sc[...], emb_ref[...],
                       preferred_element_type=jnp.float32)              # one-hot @ emb table
    embedded = tf * trg_emb_ref[0] + (1.0 - tf) * pred_emb              # (B,EMB)

    # ---- Bahdanau attention over precomputed keys (eo @ Wae + b computed once outside) ----
    hidden = h_sc[...]                                                  # (B,Hd)
    hw = jnp.dot(hidden, wah_ref[...], preferred_element_type=jnp.float32)
    energy = jnp.tanh(keys_ref[...] + hw[:, None, :])                   # (B,S,Hd)
    scores = jnp.sum(energy * v_ref[...], axis=-1)                      # (B,S)
    a = jax.nn.softmax(scores, axis=-1)
    weighted = jnp.sum(a[:, :, None] * eo_ref[...], axis=1)             # (B,2He)

    # ---- GRU cell: split input matmuls (no concatenation), image term precomputed ----
    gi = (jnp.dot(embedded, wih_e_ref[...], preferred_element_type=jnp.float32)
          + jnp.dot(weighted, wih_w_ref[...], preferred_element_type=jnp.float32)
          + gi_img_ref[...])                                            # gi_img includes b_ih
    gh = jnp.dot(hidden, whh_ref[...], preferred_element_type=jnp.float32) + bhh_ref[...]
    r = jax.nn.sigmoid(gi[:, :H] + gh[:, :H])
    z = jax.nn.sigmoid(gi[:, H:2 * H] + gh[:, H:2 * H])
    n = jnp.tanh(gi[:, 2 * H:] + r * gh[:, 2 * H:])
    h_new = (1.0 - z) * n + z * hidden
    h_sc[...] = h_new

    # ---- output projection: [h_new, weighted, embedded] @ W_out as split matmuls ----
    logits = (jnp.dot(h_new, wo_h_ref[...], preferred_element_type=jnp.float32)
              + jnp.dot(weighted, wo_w_ref[...], preferred_element_type=jnp.float32)
              + jnp.dot(embedded, wo_e_ref[...], preferred_element_type=jnp.float32)
              + bo_ref[...])                                            # (B,VOCAB)
    out_ref[0] = logits

    # ---- greedy argmax (first max) -> one-hot for the next step's embedding ----
    m = jnp.max(logits, axis=-1, keepdims=True)
    lane = jax.lax.broadcasted_iota(jnp.int32, logits.shape, 1).astype(jnp.float32)
    first = jnp.min(jnp.where(logits >= m, lane, jnp.float32(logits.shape[1])),
                    axis=-1, keepdims=True)
    pred_sc[...] = (lane == first).astype(jnp.float32)


def decoder_forward(trg, hidden0, enc_outputs, image_features, tf_flags, p):
    S, Bsz = enc_outputs.shape[0], enc_outputs.shape[1]
    T = trg.shape[0]
    Hd = DEC_HID

    # ---- per-sequence precomputation hoisted out of the time loop ----
    keys = dense(enc_outputs.reshape(S * Bsz, 2 * ENC_HID), p["attn_wae_t"], p["attn_b"])
    keys_bsh = keys.reshape(S, Bsz, Hd).transpose(1, 0, 2)              # (B,S,Hd)
    eo_bse = enc_outputs.transpose(1, 0, 2)                             # (B,S,2He)
    gi_img = dense(image_features, p["wih_img_t"], p["b_ih"])           # (B,3Hd), includes b_ih
    trg_emb = jnp.take(p["emb"], trg[:T - 1], axis=0)                   # (T-1,B,EMB)

    cmap = lambda g, tf: (0, 0)
    cmap3 = lambda g, tf: (0, 0, 0)
    grid_spec = pltpu.PrefetchScalarGridSpec(
        num_scalar_prefetch=1,
        grid=(T - 1,),
        in_specs=[
            pl.BlockSpec((1, Bsz, EMB), lambda g, tf: (g, 0, 0)),       # teacher-forced embeddings
            pl.BlockSpec((Bsz, Hd), cmap),                              # encoder final hidden
            pl.BlockSpec((Bsz, S, Hd), cmap3),                          # attention keys (precomputed)
            pl.BlockSpec((Bsz, S, 2 * ENC_HID), cmap3),                 # encoder outputs
            pl.BlockSpec((Hd, Hd), cmap),                               # attn W (hidden part)
            pl.BlockSpec((1, Hd), cmap),                                # attn v
            pl.BlockSpec((VOCAB, EMB), cmap),                           # decoder embedding table
            pl.BlockSpec((EMB, 3 * Hd), cmap),                          # W_ih (embedded part)
            pl.BlockSpec((2 * ENC_HID, 3 * Hd), cmap),                  # W_ih (context part)
            pl.BlockSpec((Bsz, 3 * Hd), cmap),                          # img @ W_ih_img + b_ih
            pl.BlockSpec((Hd, 3 * Hd), cmap),                           # W_hh
            pl.BlockSpec((1, 3 * Hd), cmap),                            # b_hh
            pl.BlockSpec((Hd, VOCAB), cmap),                            # W_out (hidden part)
            pl.BlockSpec((2 * ENC_HID, VOCAB), cmap),                   # W_out (context part)
            pl.BlockSpec((EMB, VOCAB), cmap),                           # W_out (embedded part)
            pl.BlockSpec((1, VOCAB), cmap),                             # b_out
        ],
        out_specs=pl.BlockSpec((1, Bsz, VOCAB), lambda g, tf: (g, 0, 0)),
        scratch_shapes=[pltpu.VMEM((Bsz, Hd), jnp.float32),             # hidden carry
                        pltpu.VMEM((Bsz, VOCAB), jnp.float32)],         # previous prediction (one-hot)
    )
    return pl.pallas_call(
        _decoder_kernel,
        out_shape=jax.ShapeDtypeStruct((T - 1, Bsz, VOCAB), jnp.float32),
        grid_spec=grid_spec,
        compiler_params=pltpu.CompilerParams(dimension_semantics=("arbitrary",)),
    )(tf_flags, trg_emb, hidden0, keys_bsh, eo_bse, p["attn_wah_t"], p["attn_v"],
      p["emb"], p["wih_emb_t"], p["wih_ctx_t"], gi_img, p["whh_t"], p["b_hh"],
      p["wo_h_t"], p["wo_ctx_t"], p["wo_emb_t"], p["b_out"])


# ----------------------------------- full forward -----------------------------------
def seq2seq_forward(src, trg, image_features, tf_flags, params):
    trg_len, batch = trg.shape
    enc_outputs, hidden0 = encoder_forward(src, params["encoder"])
    dec_out = decoder_forward(trg, hidden0, enc_outputs, image_features, tf_flags,
                              params["decoder"])
    # outputs[t-1] filled for t in 1..trg_len-1 ; slot trg_len-1 stays zero (as in the reference)
    return jnp.concatenate([dec_out, jnp.zeros((1, batch, VOCAB), jnp.float32)], axis=0)


# ---------------------------------- parameter init ----------------------------------
def _norm(key, shape, scale=0.05):
    return jax.random.normal(key, shape, jnp.float32) * scale


def init_params(key):
    ks = iter(jax.random.split(key, 24))
    He, Hd = ENC_HID, DEC_HID
    encoder = {
        "emb": _norm(next(ks), (VOCAB, EMB)),
        # both directions' input projections fused and pre-transposed: [EMB, 6He]
        "w_ih_fb_t": _norm(next(ks), (EMB, 6 * He)),
        "b_ih_fb": _norm(next(ks), (1, 6 * He)),
        "whh_f_t": _norm(next(ks), (He, 3 * He)),
        "bhh_f": _norm(next(ks), (1, 3 * He)),
        "whh_b_t": _norm(next(ks), (He, 3 * He)),
        "bhh_b": _norm(next(ks), (1, 3 * He)),
        "fc_w_t": _norm(next(ks), (2 * He, Hd)),
        "fc_b": _norm(next(ks), (1, Hd)),
    }
    decoder = {
        "emb": _norm(next(ks), (VOCAB, EMB)),
        # attention: energy = tanh(h @ Wah + eo @ Wae + b); score = energy . v
        "attn_wah_t": _norm(next(ks), (Hd, Hd)),
        "attn_wae_t": _norm(next(ks), (2 * He, Hd)),
        "attn_b": _norm(next(ks), (1, Hd)),
        "attn_v": _norm(next(ks), (1, Hd)),
        # decoder GRU, input = [embedded, context, image_features] (split, pre-transposed)
        "wih_emb_t": _norm(next(ks), (EMB, 3 * Hd)),
        "wih_ctx_t": _norm(next(ks), (2 * He, 3 * Hd)),
        "wih_img_t": _norm(next(ks), (IMG, 3 * Hd)),
        "b_ih": _norm(next(ks), (1, 3 * Hd)),
        "whh_t": _norm(next(ks), (Hd, 3 * Hd)),
        "b_hh": _norm(next(ks), (1, 3 * Hd)),
        # fc_out, input = [hidden, context, embedded] (split, pre-transposed)
        "wo_h_t": _norm(next(ks), (Hd, VOCAB)),
        "wo_ctx_t": _norm(next(ks), (2 * He, VOCAB)),
        "wo_emb_t": _norm(next(ks), (EMB, VOCAB)),
        "b_out": _norm(next(ks), (1, VOCAB)),
    }
    return {"encoder": encoder, "decoder": decoder}


# -------------------------------------- main ----------------------------------------
if __name__ == "__main__":
    params = init_params(jax.random.PRNGKey(0))

    k1, k2, k3 = jax.random.split(jax.random.PRNGKey(0), 3)
    src = jax.random.randint(k1, (SRC_LEN, B), 0, VOCAB, dtype=jnp.int32)
    trg = jax.random.randint(k2, (TRG_LEN, B), 0, VOCAB, dtype=jnp.int32)
    image_features = jax.random.normal(k3, (B, IMG), jnp.float32)

    # Teacher-forcing schedule: Python-level randomness like the PyTorch reference, but passed
    # in as data so per-call re-sampling does not require re-tracing under jit.
    random.seed(0)
    teacher_forcing_ratio = 0.5
    flags = [1] + [int(random.random() < teacher_forcing_ratio) for _ in range(TRG_LEN - 2)]
    tf_flags = jnp.asarray(flags, dtype=jnp.int32)              # flags[0]=1 -> first input is trg[0]

    fwd = jax.jit(seq2seq_forward)
    out = jax.block_until_ready(fwd(src, trg, image_features, tf_flags, params))

    assert out.shape == (TRG_LEN, B, VOCAB), out.shape
    assert bool(jnp.all(jnp.isfinite(out)))
    assert bool(jnp.all(out[-1] == 0.0))    # last time-slot stays zero, as in the reference
    print("KERNEL_OK")
</pallas_src>

<mosaic_0001>
module attributes {stable_mosaic.version = 11 : i64} {
  func.func @_dense_kernel(%arg0: memref<64x128xf32, #tpu.memory_space<vmem>>, %arg1: memref<128x768xf32, #tpu.memory_space<vmem>>, %arg2: memref<1x768xf32, #tpu.memory_space<vmem>>, %arg3: memref<64x768xf32, #tpu.memory_space<vmem>>) attributes {dimension_semantics = [], scalar_prefetch = 0 : i64, scratch_operands = 0 : i64, tpu.core_type = #tpu.core_type<tc>} {
    %c0 = arith.constant 0 : index
    %c0_0 = arith.constant 0 : index
    %0 = vector.load %arg0[%c0, %c0_0] : memref<64x128xf32, #tpu.memory_space<vmem>>, vector<64x128xf32>
    %c0_1 = arith.constant 0 : index
    %c0_2 = arith.constant 0 : index
    %1 = vector.load %arg1[%c0_1, %c0_2] : memref<128x768xf32, #tpu.memory_space<vmem>>, vector<128x768xf32>
    %cst = arith.constant dense<0.000000e+00> : vector<64x768xf32>
    %2 = tpu.matmul %0, %1, %cst {dimension_numbers = #tpu.dot_dimension_numbers<[1], [0], [0], [1], [0, 0, 1, 1], [], []>} : vector<64x128xf32>, vector<128x768xf32>, vector<64x768xf32> -> vector<64x768xf32>
    %c0_3 = arith.constant 0 : index
    %c0_4 = arith.constant 0 : index
    %3 = vector.load %arg2[%c0_3, %c0_4] : memref<1x768xf32, #tpu.memory_space<vmem>>, vector<1x768xf32>
    %4 = vector.broadcast %3 : vector<1x768xf32> to vector<64x768xf32>
    %5 = arith.addf %2, %4 : vector<64x768xf32>
    %c0_5 = arith.constant 0 : index
    %c0_6 = arith.constant 0 : index
    %6 = vector.load %arg3[%c0_5, %c0_6] : memref<64x768xf32, #tpu.memory_space<vmem>>, vector<64x768xf32>
    tpu.vector_store %arg3[%c0_5, %c0_6], %5 {strides = array<i32>} : memref<64x768xf32, #tpu.memory_space<vmem>>, vector<64x768xf32>,
    return
  }
}

module attributes {stable_mosaic.version = 11 : i64} {
  func.func @_enc_rnn_kernel(%arg0: i32, %arg1: memref<1x8x384xf32, #tpu.memory_space<vmem>>, %arg2: memref<1x8x384xf32, #tpu.memory_space<vmem>>, %arg3: memref<128x384xf32, #tpu.memory_space<vmem>>, %arg4: memref<1x384xf32, #tpu.memory_space<vmem>>, %arg5: memref<128x384xf32, #tpu.memory_space<vmem>>, %arg6: memref<1x384xf32, #tpu.memory_space<vmem>>, %arg7: memref<1x8x128xf32, #tpu.memory_space<vmem>>, %arg8: memref<1x8x128xf32, #tpu.memory_space<vmem>>, %arg9: memref<8x128xf32, #tpu.memory_space<vmem>>, %arg10: memref<8x128xf32, #tpu.memory_space<vmem>>) attributes {dimension_semantics = [#tpu.dimension_semantics<arbitrary>], iteration_bounds = array<i64: 8>, scalar_prefetch = 0 : i64, scratch_operands = 2 : i64, tpu.core_type = #tpu.core_type<tc>, window_params = [{transform_indices = @transform_0, window_bounds = array<i64: 1, 8, 384>}, {transform_indices = @transform_1, window_bounds = array<i64: 1, 8, 384>}, {pipeline_mode = #tpu.pipeline_mode<synchronous>, transform_indices = @transform_2, window_bounds = array<i64: 128, 384>}, {pipeline_mode = #tpu.pipeline_mode<synchronous>, transform_indices = @transform_3, window_bounds = array<i64: 1, 384>}, {pipeline_mode = #tpu.pipeline_mode<synchronous>, transform_indices = @transform_4, window_bounds = array<i64: 128, 384>}, {pipeline_mode = #tpu.pipeline_mode<synchronous>, transform_indices = @transform_5, window_bounds = array<i64: 1, 384>}, {transform_indices = @transform_6, window_bounds = array<i64: 1, 8, 128>}, {transform_indices = @transform_7, window_bounds = array<i64: 1, 8, 128>}]} {
    %c0_i32 = arith.constant 0 : i32
    %0 = arith.cmpi eq, %arg0, %c0_i32 : i32
    %1 = arith.extui %0 : i1 to i32
    %c0_i32_0 = arith.constant 0 : i32
    %2 = arith.cmpi ne, %1, %c0_i32_0 : i32
    scf.if %2 {
      %cst_35 = arith.constant 0.000000e+00 : f32
      %79 = vector.broadcast %cst_35 : f32 to vector<8x128xf32>
      %c0_36 = arith.constant 0 : index
      %c0_37 = arith.constant 0 : index
      %80 = vector.load %arg9[%c0_36, %c0_37] : memref<8x128xf32, #tpu.memory_space<vmem>>, vector<8x128xf32>
      tpu.vector_store %arg9[%c0_36, %c0_37], %79 {strides = array<i32>} : memref<8x128xf32, #tpu.memory_space<vmem>>, vector<8x128xf32>,
      %cst_38 = arith.constant 0.000000e+00 : f32
      %81 = vector.broadcast %cst_38 : f32 to vector<8x128xf32>
      %c0_39 = arith.constant 0 : index
      %c0_40 = arith.constant 0 : index
      %82 = vector.load %arg10[%c0_39, %c0_40] : memref<8x128xf32, #tpu.memory_space<vmem>>, vector<8x128xf32>
      tpu.vector_store %arg10[%c0_39, %c0_40], %81 {strides = array<i32>} : memref<8x128xf32, #tpu.memory_space<vmem>>, vector<8x128xf32>,
    } else {
    }
    %c0 = arith.constant 0 : index
    %c0_1 = arith.constant 0 : index
    %c0_2 = arith.constant 0 : index
    %3 = vector.load %arg1[%c0, %c0_1, %c0_2] : memref<1x8x384xf32, #tpu.memory_space<vmem>>, vector<1x8x384xf32>
    %4 = vector.shape_cast %3 : vector<1x8x384xf32> to vector<8x384xf32>
    %c0_3 = arith.constant 0 : index
    %c0_4 = arith.constant 0 : index
    %5 = vector.load %arg9[%c0_3, %c0_4] : memref<8x128xf32, #tpu.memory_space<vmem>>, vector<8x128xf32>
    %c0_5 = arith.constant 0 : index
    %c0_6 = arith.constant 0 : index
    %6 = vector.load %arg3[%c0_5, %c0_6] : memref<128x384xf32, #tpu.memory_space<vmem>>, vector<128x384xf32>
    %c0_7 = arith.constant 0 : index
    %c0_8 = arith.constant 0 : index
    %7 = vector.load %arg4[%c0_7, %c0_8] : memref<1x384xf32, #tpu.memory_space<vmem>>, vector<1x384xf32>
    %cst = arith.constant dense<0.000000e+00> : vector<8x384xf32>
    %8 = tpu.matmul %5, %6, %cst {dimension_numbers = #tpu.dot_dimension_numbers<[1], [0], [0], [1], [0, 0, 1, 1], [], []>} : vector<8x128xf32>, vector<128x384xf32>, vector<8x384xf32> -> vector<8x384xf32>
    %9 = vector.broadcast %7 : vector<1x384xf32> to vector<8x384xf32>
    %10 = arith.addf %8, %9 : vector<8x384xf32>
    %11 = vector.extract_strided_slice %4 {offsets = [0, 0], sizes = [8, 128], strides = [1, 1]} : vector<8x384xf32> to vector<8x128xf32>
    %12 = vector.extract_strided_slice %10 {offsets = [0, 0], sizes = [8, 128], strides = [1, 1]} : vector<8x384xf32> to vector<8x128xf32>
    %13 = arith.addf %11, %12 : vector<8x128xf32>
    %14 = arith.negf %13 : vector<8x128xf32>
    %15 = math.exp %14 : vector<8x128xf32>
    %cst_9 = arith.constant 1.000000e+00 : f32
    %16 = vector.broadcast %cst_9 : f32 to vector<8x128xf32>
    %17 = arith.addf %16, %15 : vector<8x128xf32>
    %18 = arith.divf %16, %17 : vector<8x128xf32>
    %19 = vector.extract_strided_slice %4 {offsets = [0, 128], sizes = [8, 128], strides = [1, 1]} : vector<8x384xf32> to vector<8x128xf32>
    %20 = vector.extract_strided_slice %10 {offsets = [0, 128], sizes = [8, 128], strides = [1, 1]} : vector<8x384xf32> to vector<8x128xf32>
    %21 = arith.addf %19, %20 : vector<8x128xf32>
    %22 = arith.negf %21 : vector<8x128xf32>
    %23 = math.exp %22 : vector<8x128xf32>
    %cst_10 = arith.constant 1.000000e+00 : f32
    %24 = vector.broadcast %cst_10 : f32 to vector<8x128xf32>
    %25 = arith.addf %24, %23 : vector<8x128xf32>
    %26 = arith.divf %24, %25 : vector<8x128xf32>
    %27 = vector.extract_strided_slice %4 {offsets = [0, 256], sizes = [8, 128], strides = [1, 1]} : vector<8x384xf32> to vector<8x128xf32>
    %28 = vector.extract_strided_slice %10 {offsets = [0, 256], sizes = [8, 128], strides = [1, 1]} : vector<8x384xf32> to vector<8x128xf32>
    %29 = arith.mulf %18, %28 : vector<8x128xf32>
    %30 = arith.addf %27, %29 : vector<8x128xf32>
    %31 = math.tanh %30 : vector<8x128xf32>
    %cst_11 = arith.constant 1.000000e+00 : f32
    %32 = vector.broadcast %cst_11 : f32 to vector<8x128xf32>
    %33 = arith.subf %32, %26 : vector<8x128xf32>
    %34 = arith.mulf %33, %31 : vector<8x128xf32>
    %35 = arith.mulf %26, %5 : vector<8x128xf32>
    %36 = arith.addf %34, %35 : vector<8x128xf32>
    %c0_12 = arith.constant 0 : index
    %c0_13 = arith.constant 0 : index
    %c0_14 = arith.constant 0 : index
    %37 = vector.load %arg2[%c0_12, %c0_13, %c0_14] : memref<1x8x384xf32, #tpu.memory_space<vmem>>, vector<1x8x384xf32>
    %38 = vector.shape_cast %37 : vector<1x8x384xf32> to vector<8x384xf32>
    %c0_15 = arith.constant 0 : index
    %c0_16 = arith.constant 0 : index
    %39 = vector.load %arg10[%c0_15, %c0_16] : memref<8x128xf32, #tpu.memory_space<vmem>>, vector<8x128xf32>
    %c0_17 = arith.constant 0 : index
    %c0_18 = arith.constant 0 : index
    %40 = vector.load %arg5[%c0_17, %c0_18] : memref<128x384xf32, #tpu.memory_space<vmem>>, vector<128x384xf32>
    %c0_19 = arith.constant 0 : index
    %c0_20 = arith.constant 0 : index
    %41 = vector.load %arg6[%c0_19, %c0_20] : memref<1x384xf32, #tpu.memory_space<vmem>>, vector<1x384xf32>
    %cst_21 = arith.constant dense<0.000000e+00> : vector<8x384xf32>
    %42 = tpu.matmul %39, %40, %cst_21 {dimension_numbers = #tpu.dot_dimension_numbers<[1], [0], [0], [1], [0, 0, 1, 1], [], []>} : vector<8x128xf32>, vector<128x384xf32>, vector<8x384xf32> -> vector<8x384xf32>
    %43 = vector.broadcast %41 : vector<1x384xf32> to vector<8x384xf32>
    %44 = arith.addf %42, %43 : vector<8x384xf32>
    %45 = vector.extract_strided_slice %38 {offsets = [0, 0], sizes = [8, 128], strides = [1, 1]} : vector<8x384xf32> to vector<8x128xf32>
    %46 = vector.extract_strided_slice %44 {offsets = [0, 0], sizes = [8, 128], strides = [1, 1]} : vector<8x384xf32> to vector<8x128xf32>
    %47 = arith.addf %45, %46 : vector<8x128xf32>
    %48 = arith.negf %47 : vector<8x128xf32>
    %49 = math.exp %48 : vector<8x128xf32>
    %cst_22 = arith.constant 1.000000e+00 : f32
    %50 = vector.broadcast %cst_22 : f32 to vector<8x128xf32>
    %51 = arith.addf %50, %49 : vector<8x128xf32>
    %52 = arith.divf %50, %51 : vector<8x128xf32>
    %53 = vector.extract_strided_slice %38 {offsets = [0, 128], sizes = [8, 128], strides = [1, 1]} : vector<8x384xf32> to vector<8x128xf32>
    %54 = vector.extract_strided_slice %44 {offsets = [0, 128], sizes = [8, 128], strides = [1, 1]} : vector<8x384xf32> to vector<8x128xf32>
    %55 = arith.addf %53, %54 : vector<8x128xf32>
    %56 = arith.negf %55 : vector<8x128xf32>
    %57 = math.exp %56 : vector<8x128xf32>
    %cst_23 = arith.constant 1.000000e+00 : f32
    %58 = vector.broadcast %cst_23 : f32 to vector<8x128xf32>
    %59 = arith.addf %58, %57 : vector<8x128xf32>
    %60 = arith.divf %58, %59 : vector<8x128xf32>
    %61 = vector.extract_strided_slice %38 {offsets = [0, 256], sizes = [8, 128], strides = [1, 1]} : vector<8x384xf32> to vector<8x128xf32>
    %62 = vector.extract_strided_slice %44 {offsets = [0, 256], sizes = [8, 128], strides = [1, 1]} : vector<8x384xf32> to vector<8x128xf32>
    %63 = arith.mulf %52, %62 : vector<8x128xf32>
    %64 = arith.addf %61, %63 : vector<8x128xf32>
    %65 = math.tanh %64 : vector<8x128xf32>
    %cst_24 = arith.constant 1.000000e+00 : f32
    %66 = vector.broadcast %cst_24 : f32 to vector<8x128xf32>
    %67 = arith.subf %66, %60 : vector<8x128xf32>
    %68 = arith.mulf %67, %65 : vector<8x128xf32>
    %69 = arith.mulf %60, %39 : vector<8x128xf32>
    %70 = arith.addf %68, %69 : vector<8x128xf32>
    %c0_25 = arith.constant 0 : index
    %c0_26 = arith.constant 0 : index
    %71 = vector.load %arg9[%c0_25, %c0_26] : memref<8x128xf32, #tpu.memory_space<vmem>>, vector<8x128xf32>
    tpu.vector_store %arg9[%c0_25, %c0_26], %36 {strides = array<i32>} : memref<8x128xf32, #tpu.memory_space<vmem>>, vector<8x128xf32>,
    %c0_27 = arith.constant 0 : index
    %c0_28 = arith.constant 0 : index
    %72 = vector.load %arg10[%c0_27, %c0_28] : memref<8x128xf32, #tpu.memory_space<vmem>>, vector<8x128xf32>
    tpu.vector_store %arg10[%c0_27, %c0_28], %70 {strides = array<i32>} : memref<8x128xf32, #tpu.memory_space<vmem>>, vector<8x128xf32>,
    %c0_29 = arith.constant 0 : index
    %c0_30 = arith.constant 0 : index
    %c0_31 = arith.constant 0 : index
    %73 = vector.load %arg7[%c0_29, %c0_30, %c0_31] : memref<1x8x128xf32, #tpu.memory_space<vmem>>, vector<1x8x128xf32>
    %74 = vector.shape_cast %73 : vector<1x8x128xf32> to vector<8x128xf32>
    %75 = vector.shape_cast %36 : vector<8x128xf32> to vector<1x8x128xf32>
    tpu.vector_store %arg7[%c0_29, %c0_30, %c0_31], %75 {strides = array<i32>} : memref<1x8x128xf32, #tpu.memory_space<vmem>>, vector<1x8x128xf32>,
    %c0_32 = arith.constant 0 : index
    %c0_33 = arith.constant 0 : index
    %c0_34 = arith.constant 0 : index
    %76 = vector.load %arg8[%c0_32, %c0_33, %c0_34] : memref<1x8x128xf32, #tpu.memory_space<vmem>>, vector<1x8x128xf32>
    %77 = vector.shape_cast %76 : vector<1x8x128xf32> to vector<8x128xf32>
    %78 = vector.shape_cast %70 : vector<8x128xf32> to vector<1x8x128xf32>
    tpu.vector_store %arg8[%c0_32, %c0_33, %c0_34], %78 {strides = array<i32>} : memref<1x8x128xf32, #tpu.memory_space<vmem>>, vector<1x8x128xf32>,
    return
  }
  func.func @transform_0(%arg0: i32) -> (i32, i32, i32) {
    %c0_i32 = arith.constant 0 : i32
    %c0_i32_0 = arith.constant 0 : i32
    %c0_i32_1 = arith.constant 0 : i32
    return %arg0, %c0_i32, %c0_i32_0 : i32, i32, i32
  }
  func.func @transform_1(%arg0: i32) -> (i32, i32, i32) {
    %c7_i32 = arith.constant 7 : i32
    %0 = arith.subi %c7_i32, %arg0 : i32
    %c0_i32 = arith.constant 0 : i32
    %c0_i32_0 = arith.constant 0 : i32
    %c0_i32_1 = arith.constant 0 : i32
    return %0, %c0_i32, %c0_i32_0 : i32, i32, i32
  }
  func.func @transform_2(%arg0: i32) -> (i32, i32) {
    %c0_i32 = arith.constant 0 : i32
    %c0_i32_0 = arith.constant 0 : i32
    %c0_i32_1 = arith.constant 0 : i32
    return %c0_i32, %c0_i32_0 : i32, i32
  }
  func.func @transform_3(%arg0: i32) -> (i32, i32) {
    %c0_i32 = arith.constant 0 : i32
    %c0_i32_0 = arith.constant 0 : i32
    %c0_i32_1 = arith.constant 0 : i32
    return %c0_i32, %c0_i32_0 : i32, i32
  }
  func.func @transform_4(%arg0: i32) -> (i32, i32) {
    %c0_i32 = arith.constant 0 : i32
    %c0_i32_0 = arith.constant 0 : i32
    %c0_i32_1 = arith.constant 0 : i32
    return %c0_i32, %c0_i32_0 : i32, i32
  }
  func.func @transform_5(%arg0: i32) -> (i32, i32) {
    %c0_i32 = arith.constant 0 : i32
    %c0_i32_0 = arith.constant 0 : i32
    %c0_i32_1 = arith.constant 0 : i32
    return %c0_i32, %c0_i32_0 : i32, i32
  }
  func.func @transform_6(%arg0: i32) -> (i32, i32, i32) {
    %c0_i32 = arith.constant 0 : i32
    %c0_i32_0 = arith.constant 0 : i32
    %c0_i32_1 = arith.constant 0 : i32
    return %arg0, %c0_i32, %c0_i32_0 : i32, i32, i32
  }
  func.func @transform_7(%arg0: i32) -> (i32, i32, i32) {
    %c0_i32 = arith.constant 0 : i32
    %c0_i32_0 = arith.constant 0 : i32
    %c0_i32_1 = arith.constant 0 : i32
    return %arg0, %c0_i32, %c0_i32_0 : i32, i32, i32
  }
}

module attributes {stable_mosaic.version = 11 : i64} {
  func.func @_dense_kernel(%arg0: memref<8x256xf32, #tpu.memory_space<vmem>>, %arg1: memref<256x128xf32, #tpu.memory_space<vmem>>, %arg2: memref<1x128xf32, #tpu.memory_space<vmem>>, %arg3: memref<8x128xf32, #tpu.memory_space<vmem>>) attributes {dimension_semantics = [], scalar_prefetch = 0 : i64, scratch_operands = 0 : i64, tpu.core_type = #tpu.core_type<tc>} {
    %c0 = arith.constant 0 : index
    %c0_0 = arith.constant 0 : index
    %0 = vector.load %arg0[%c0, %c0_0] : memref<8x256xf32, #tpu.memory_space<vmem>>, vector<8x256xf32>
    %c0_1 = arith.constant 0 : index
    %c0_2 = arith.constant 0 : index
    %1 = vector.load %arg1[%c0_1, %c0_2] : memref<256x128xf32, #tpu.memory_space<vmem>>, vector<256x128xf32>
    %cst = arith.constant dense<0.000000e+00> : vector<8x128xf32>
    %2 = tpu.matmul %0, %1, %cst {dimension_numbers = #tpu.dot_dimension_numbers<[1], [0], [0], [1], [0, 0, 1, 1], [], []>} : vector<8x256xf32>, vector<256x128xf32>, vector<8x128xf32> -> vector<8x128xf32>
    %c0_3 = arith.constant 0 : index
    %c0_4 = arith.constant 0 : index
    %3 = vector.load %arg2[%c0_3, %c0_4] : memref<1x128xf32, #tpu.memory_space<vmem>>, vector<1x128xf32>
    %4 = vector.broadcast %3 : vector<1x128xf32> to vector<8x128xf32>
    %5 = arith.addf %2, %4 : vector<8x128xf32>
    %6 = math.tanh %5 : vector<8x128xf32>
    %c0_5 = arith.constant 0 : index
    %c0_6 = arith.constant 0 : index
    %7 = vector.load %arg3[%c0_5, %c0_6] : memref<8x128xf32, #tpu.memory_space<vmem>>, vector<8x128xf32>
    tpu.vector_store %arg3[%c0_5, %c0_6], %6 {strides = array<i32>} : memref<8x128xf32, #tpu.memory_space<vmem>>, vector<8x128xf32>,
    return
  }
}

module attributes {stable_mosaic.version = 11 : i64} {
  func.func @_dense_kernel(%arg0: memref<64x256xf32, #tpu.memory_space<vmem>>, %arg1: memref<256x128xf32, #tpu.memory_space<vmem>>, %arg2: memref<1x128xf32, #tpu.memory_space<vmem>>, %arg3: memref<64x128xf32, #tpu.memory_space<vmem>>) attributes {dimension_semantics = [], scalar_prefetch = 0 : i64, scratch_operands = 0 : i64, tpu.core_type = #tpu.core_type<tc>} {
    %c0 = arith.constant 0 : index
    %c0_0 = arith.constant 0 : index
    %0 = vector.load %arg0[%c0, %c0_0] : memref<64x256xf32, #tpu.memory_space<vmem>>, vector<64x256xf32>
    %c0_1 = arith.constant 0 : index
    %c0_2 = arith.constant 0 : index
    %1 = vector.load %arg1[%c0_1, %c0_2] : memref<256x128xf32, #tpu.memory_space<vmem>>, vector<256x128xf32>
    %cst = arith.constant dense<0.000000e+00> : vector<64x128xf32>
    %2 = tpu.matmul %0, %1, %cst {dimension_numbers = #tpu.dot_dimension_numbers<[1], [0], [0], [1], [0, 0, 1, 1], [], []>} : vector<64x256xf32>, vector<256x128xf32>, vector<64x128xf32> -> vector<64x128xf32>
    %c0_3 = arith.constant 0 : index
    %c0_4 = arith.constant 0 : index
    %3 = vector.load %arg2[%c0_3, %c0_4] : memref<1x128xf32, #tpu.memory_space<vmem>>, vector<1x128xf32>
    %4 = vector.broadcast %3 : vector<1x128xf32> to vector<64x128xf32>
    %5 = arith.addf %2, %4 : vector<64x128xf32>
    %c0_5 = arith.constant 0 : index
    %c0_6 = arith.constant 0 : index
    %6 = vector.load %arg3[%c0_5, %c0_6] : memref<64x128xf32, #tpu.memory_space<vmem>>, vector<64x128xf32>
    tpu.vector_store %arg3[%c0_5, %c0_6], %5 {strides = array<i32>} : memref<64x128xf32, #tpu.memory_space<vmem>>, vector<64x128xf32>,
    return
  }
}

module attributes {stable_mosaic.version = 11 : i64} {
  func.func @_dense_kernel(%arg0: memref<8x128xf32, #tpu.memory_space<vmem>>, %arg1: memref<128x384xf32, #tpu.memory_space<vmem>>, %arg2: memref<1x384xf32, #tpu.memory_space<vmem>>, %arg3: memref<8x384xf32, #tpu.memory_space<vmem>>) attributes {dimension_semantics = [], scalar_prefetch = 0 : i64, scratch_operands = 0 : i64, tpu.core_type = #tpu.core_type<tc>} {
    %c0 = arith.constant 0 : index
    %c0_0 = arith.constant 0 : index
    %0 = vector.load %arg0[%c0, %c0_0] : memref<8x128xf32, #tpu.memory_space<vmem>>, vector<8x128xf32>
    %c0_1 = arith.constant 0 : index
    %c0_2 = arith.constant 0 : index
    %1 = vector.load %arg1[%c0_1, %c0_2] : memref<128x384xf32, #tpu.memory_space<vmem>>, vector<128x384xf32>
    %cst = arith.constant dense<0.000000e+00> : vector<8x384xf32>
    %2 = tpu.matmul %0, %1, %cst {dimension_numbers = #tpu.dot_dimension_numbers<[1], [0], [0], [1], [0, 0, 1, 1], [], []>} : vector<8x128xf32>, vector<128x384xf32>, vector<8x384xf32> -> vector<8x384xf32>
    %c0_3 = arith.constant 0 : index
    %c0_4 = arith.constant 0 : index
    %3 = vector.load %arg2[%c0_3, %c0_4] : memref<1x384xf32, #tpu.memory_space<vmem>>, vector<1x384xf32>
    %4 = vector.broadcast %3 : vector<1x384xf32> to vector<8x384xf32>
    %5 = arith.addf %2, %4 : vector<8x384xf32>
    %c0_5 = arith.constant 0 : index
    %c0_6 = arith.constant 0 : index
    %6 = vector.load %arg3[%c0_5, %c0_6] : memref<8x384xf32, #tpu.memory_space<vmem>>, vector<8x384xf32>
    tpu.vector_store %arg3[%c0_5, %c0_6], %5 {strides = array<i32>} : memref<8x384xf32, #tpu.memory_space<vmem>>, vector<8x384xf32>,
    return
  }
}

module attributes {stable_mosaic.version = 11 : i64} {
  func.func @_decoder_kernel(%arg0: i32, %arg1: memref<5xi32, #tpu.memory_space<smem>>, %arg2: memref<1x8x128xf32, #tpu.memory_space<vmem>>, %arg3: memref<8x128xf32, #tpu.memory_space<vmem>>, %arg4: memref<8x8x128xf32, #tpu.memory_space<vmem>>, %arg5: memref<8x8x256xf32, #tpu.memory_space<vmem>>, %arg6: memref<128x128xf32, #tpu.memory_space<vmem>>, %arg7: memref<1x128xf32, #tpu.memory_space<vmem>>, %arg8: memref<256x128xf32, #tpu.memory_space<vmem>>, %arg9: memref<128x384xf32, #tpu.memory_space<vmem>>, %arg10: memref<256x384xf32, #tpu.memory_space<vmem>>, %arg11: memref<8x384xf32, #tpu.memory_space<vmem>>, %arg12: memref<128x384xf32, #tpu.memory_space<vmem>>, %arg13: memref<1x384xf32, #tpu.memory_space<vmem>>, %arg14: memref<128x256xf32, #tpu.memory_space<vmem>>, %arg15: memref<256x256xf32, #tpu.memory_space<vmem>>, %arg16: memref<128x256xf32, #tpu.memory_space<vmem>>, %arg17: memref<1x256xf32, #tpu.memory_space<vmem>>, %arg18: memref<1x8x256xf32, #tpu.memory_space<vmem>>, %arg19: memref<8x128xf32, #tpu.memory_space<vmem>>, %arg20: memref<8x256xf32, #tpu.memory_space<vmem>>) attributes {dimension_semantics = [#tpu.dimension_semantics<arbitrary>], iteration_bounds = array<i64: 5>, scalar_prefetch = 1 : i64, scratch_operands = 2 : i64, tpu.core_type = #tpu.core_type<tc>, window_params = [{transform_indices = @transform_0, window_bounds = array<i64: 1, 8, 128>}, {pipeline_mode = #tpu.pipeline_mode<synchronous>, transform_indices = @transform_1, window_bounds = array<i64: 8, 128>}, {pipeline_mode = #tpu.pipeline_mode<synchronous>, transform_indices = @transform_2, window_bounds = array<i64: 8, 8, 128>}, {pipeline_mode = #tpu.pipeline_mode<synchronous>, transform_indices = @transform_3, window_bounds = array<i64: 8, 8, 256>}, {pipeline_mode = #tpu.pipeline_mode<synchronous>, transform_indices = @transform_4, window_bounds = array<i64: 128, 128>}, {pipeline_mode = #tpu.pipeline_mode<synchronous>, transform_indices = @transform_5, window_bounds = array<i64: 1, 128>}, {pipeline_mode = #tpu.pipeline_mode<synchronous>, transform_indices = @transform_6, window_bounds = array<i64: 256, 128>}, {pipeline_mode = #tpu.pipeline_mode<synchronous>, transform_indices = @transform_7, window_bounds = array<i64: 128, 384>}, {pipeline_mode = #tpu.pipeline_mode<synchronous>, transform_indices = @transform_8, window_bounds = array<i64: 256, 384>}, {pipeline_mode = #tpu.pipeline_mode<synchronous>, transform_indices = @transform_9, window_bounds = array<i64: 8, 384>}, {pipeline_mode = #tpu.pipeline_mode<synchronous>, transform_indices = @transform_10, window_bounds = array<i64: 128, 384>}, {pipeline_mode = #tpu.pipeline_mode<synchronous>, transform_indices = @transform_11, window_bounds = array<i64: 1, 384>}, {pipeline_mode = #tpu.pipeline_mode<synchronous>, transform_indices = @transform_12, window_bounds = array<i64: 128, 256>}, {pipeline_mode = #tpu.pipeline_mode<synchronous>, transform_indices = @transform_13, window_bounds = array<i64: 256, 256>}, {pipeline_mode = #tpu.pipeline_mode<synchronous>, transform_indices = @transform_14, window_bounds = array<i64: 128, 256>}, {pipeline_mode = #tpu.pipeline_mode<synchronous>, transform_indices = @transform_15, window_bounds = array<i64: 1, 256>}, {transform_indices = @transform_16, window_bounds = array<i64: 1, 8, 256>}]} {
    %c0_i32 = arith.constant 0 : i32
    %0 = arith.cmpi eq, %arg0, %c0_i32 : i32
    %1 = arith.extui %0 : i1 to i32
    %c0_i32_0 = arith.constant 0 : i32
    %2 = arith.cmpi ne, %1, %c0_i32_0 : i32
    scf.if %2 {
      %c0_64 = arith.constant 0 : index
      %c0_65 = arith.constant 0 : index
      %116 = vector.load %arg3[%c0_64, %c0_65] : memref<8x128xf32, #tpu.memory_space<vmem>>, vector<8x128xf32>
      %c0_66 = arith.constant 0 : index
      %c0_67 = arith.constant 0 : index
      %117 = vector.load %arg19[%c0_66, %c0_67] : memref<8x128xf32, #tpu.memory_space<vmem>>, vector<8x128xf32>
      tpu.vector_store %arg19[%c0_66, %c0_67], %116 {strides = array<i32>} : memref<8x128xf32, #tpu.memory_space<vmem>>, vector<8x128xf32>,
      %cst_68 = arith.constant 0.000000e+00 : f32
      %118 = vector.broadcast %cst_68 : f32 to vector<8x256xf32>
      %c0_69 = arith.constant 0 : index
      %c0_70 = arith.constant 0 : index
      %119 = vector.load %arg20[%c0_69, %c0_70] : memref<8x256xf32, #tpu.memory_space<vmem>>, vector<8x256xf32>
      tpu.vector_store %arg20[%c0_69, %c0_70], %118 {strides = array<i32>} : memref<8x256xf32, #tpu.memory_space<vmem>>, vector<8x256xf32>,
    } else {
    }
    %3 = arith.index_cast %arg0 : i32 to index
    %4 = memref.load %arg1[%3] : memref<5xi32, #tpu.memory_space<smem>>
    %c0_i32_1 = arith.constant 0 : i32
    %5 = arith.cmpi sgt, %4, %c0_i32_1 : i32
    %6 = arith.extui %5 : i1 to i32
    %7 = arith.sitofp %6 : i32 to f32
    %c0 = arith.constant 0 : index
    %c0_2 = arith.constant 0 : index
    %8 = vector.load %arg20[%c0, %c0_2] : memref<8x256xf32, #tpu.memory_space<vmem>>, vector<8x256xf32>
    %c0_3 = arith.constant 0 : index
    %c0_4 = arith.constant 0 : index
    %9 = vector.load %arg8[%c0_3, %c0_4] : memref<256x128xf32, #tpu.memory_space<vmem>>, vector<256x128xf32>
    %cst = arith.constant dense<0.000000e+00> : vector<8x128xf32>
    %10 = tpu.matmul %8, %9, %cst {dimension_numbers = #tpu.dot_dimension_numbers<[1], [0], [0], [1], [0, 0, 1, 1], [], []>} : vector<8x256xf32>, vector<256x128xf32>, vector<8x128xf32> -> vector<8x128xf32>
    %c0_5 = arith.constant 0 : index
    %c0_6 = arith.constant 0 : index
    %c0_7 = arith.constant 0 : index
    %11 = vector.load %arg2[%c0_5, %c0_6, %c0_7] : memref<1x8x128xf32, #tpu.memory_space<vmem>>, vector<1x8x128xf32>
    %12 = vector.shape_cast %11 : vector<1x8x128xf32> to vector<8x128xf32>
    %13 = vector.broadcast %7 : f32 to vector<8x128xf32>
    %14 = arith.mulf %13, %12 : vector<8x128xf32>
    %cst_8 = arith.constant 1.000000e+00 : f32
    %15 = arith.subf %cst_8, %7 : f32
    %16 = vector.broadcast %15 : f32 to vector<8x128xf32>
    %17 = arith.mulf %16, %10 : vector<8x128xf32>
    %18 = arith.addf %14, %17 : vector<8x128xf32>
    %c0_9 = arith.constant 0 : index
    %c0_10 = arith.constant 0 : index
    %19 = vector.load %arg19[%c0_9, %c0_10] : memref<8x128xf32, #tpu.memory_space<vmem>>, vector<8x128xf32>
    %c0_11 = arith.constant 0 : index
    %c0_12 = arith.constant 0 : index
    %20 = vector.load %arg6[%c0_11, %c0_12] : memref<128x128xf32, #tpu.memory_space<vmem>>, vector<128x128xf32>
    %cst_13 = arith.constant dense<0.000000e+00> : vector<8x128xf32>
    %21 = tpu.matmul %19, %20, %cst_13 {dimension_numbers = #tpu.dot_dimension_numbers<[1], [0], [0], [1], [0, 0, 1, 1], [], []>} : vector<8x128xf32>, vector<128x128xf32>, vector<8x128xf32> -> vector<8x128xf32>
    %c0_14 = arith.constant 0 : index
    %c0_15 = arith.constant 0 : index
    %c0_16 = arith.constant 0 : index
    %22 = vector.load %arg4[%c0_14, %c0_15, %c0_16] : memref<8x8x128xf32, #tpu.memory_space<vmem>>, vector<8x8x128xf32>
    %23 = vector.shape_cast %21 : vector<8x128xf32> to vector<8x1x128xf32>
    %24 = vector.broadcast %23 : vector<8x1x128xf32> to vector<8x8x128xf32>
    %25 = arith.addf %22, %24 : vector<8x8x128xf32>
    %26 = math.tanh %25 : vector<8x8x128xf32>
    %c0_17 = arith.constant 0 : index
    %c0_18 = arith.constant 0 : index
    %27 = vector.load %arg7[%c0_17, %c0_18] : memref<1x128xf32, #tpu.memory_space<vmem>>, vector<1x128xf32>
    %28 = vector.shape_cast %27 : vector<1x128xf32> to vector<1x1x128xf32>
    %29 = vector.broadcast %28 : vector<1x1x128xf32> to vector<8x8x128xf32>
    %30 = arith.mulf %26, %29 : vector<8x8x128xf32>
    %cst_19 = arith.constant dense<0.000000e+00> : vector<8x8xf32>
    %31 = vector.multi_reduction <add>, %30, %cst_19 [2] : vector<8x8x128xf32> to vector<8x8xf32>
    %cst_20 = arith.constant dense<0xFF800000> : vector<8xf32>
    %32 = vector.multi_reduction <maximumf>, %31, %cst_20 [1] : vector<8x8xf32> to vector<8xf32>
    %cst_21 = arith.constant 0xFF800000 : f32
    %33 = vector.broadcast %cst_21 : f32 to vector<8xf32>
    %34 = arith.maximumf %33, %32 : vector<8xf32>
    %35 = vector.shape_cast %34 : vector<8xf32> to vector<8x1xf32>
    %36 = vector.broadcast %35 : vector<8x1xf32> to vector<8x8xf32>
    %37 = arith.subf %31, %36 : vector<8x8xf32>
    %38 = math.exp %37 : vector<8x8xf32>
    %cst_22 = arith.constant dense<0.000000e+00> : vector<8xf32>
    %39 = vector.multi_reduction <add>, %38, %cst_22 [1] : vector<8x8xf32> to vector<8xf32>
    %40 = vector.shape_cast %39 : vector<8xf32> to vector<8x1xf32>
    %41 = vector.broadcast %40 : vector<8x1xf32> to vector<8x8xf32>
    %42 = arith.divf %38, %41 : vector<8x8xf32>
    %43 = vector.shape_cast %42 : vector<8x8xf32> to vector<8x8x1xf32>
    %c0_23 = arith.constant 0 : index
    %c0_24 = arith.constant 0 : index
    %c0_25 = arith.constant 0 : index
    %44 = vector.load %arg5[%c0_23, %c0_24, %c0_25] : memref<8x8x256xf32, #tpu.memory_space<vmem>>, vector<8x8x256xf32>
    %45 = vector.broadcast %43 : vector<8x8x1xf32> to vector<8x8x256xf32>
    %46 = arith.mulf %45, %44 : vector<8x8x256xf32>
    %cst_26 = arith.constant dense<0.000000e+00> : vector<8x256xf32>
    %47 = vector.multi_reduction <add>, %46, %cst_26 [1] : vector<8x8x256xf32> to vector<8x256xf32>
    %c0_27 = arith.constant 0 : index
    %c0_28 = arith.constant 0 : index
    %48 = vector.load %arg9[%c0_27, %c0_28] : memref<128x384xf32, #tpu.memory_space<vmem>>, vector<128x384xf32>
    %cst_29 = arith.constant dense<0.000000e+00> : vector<8x384xf32>
    %49 = tpu.matmul %18, %48, %cst_29 {dimension_numbers = #tpu.dot_dimension_numbers<[1], [0], [0], [1], [0, 0, 1, 1], [], []>} : vector<8x128xf32>, vector<128x384xf32>, vector<8x384xf32> -> vector<8x384xf32>
    %c0_30 = arith.constant 0 : index
    %c0_31 = arith.constant 0 : index
    %50 = vector.load %arg10[%c0_30, %c0_31] : memref<256x384xf32, #tpu.memory_space<vmem>>, vector<256x384xf32>
    %cst_32 = arith.constant dense<0.000000e+00> : vector<8x384xf32>
    %51 = tpu.matmul %47, %50, %cst_32 {dimension_numbers = #tpu.dot_dimension_numbers<[1], [0], [0], [1], [0, 0, 1, 1], [], []>} : vector<8x256xf32>, vector<256x384xf32>, vector<8x384xf32> -> vector<8x384xf32>
    %52 = arith.addf %49, %51 : vector<8x384xf32>
    %c0_33 = arith.constant 0 : index
    %c0_34 = arith.constant 0 : index
    %53 = vector.load %arg11[%c0_33, %c0_34] : memref<8x384xf32, #tpu.memory_space<vmem>>, vector<8x384xf32>
    %54 = arith.addf %52, %53 : vector<8x384xf32>
    %c0_35 = arith.constant 0 : index
    %c0_36 = arith.constant 0 : index
    %55 = vector.load %arg12[%c0_35, %c0_36] : memref<128x384xf32, #tpu.memory_space<vmem>>, vector<128x384xf32>
    %cst_37 = arith.constant dense<0.000000e+00> : vector<8x384xf32>
    %56 = tpu.matmul %19, %55, %cst_37 {dimension_numbers = #tpu.dot_dimension_numbers<[1], [0], [0], [1], [0, 0, 1, 1], [], []>} : vector<8x128xf32>, vector<128x384xf32>, vector<8x384xf32> -> vector<8x384xf32>
    %c0_38 = arith.constant 0 : index
    %c0_39 = arith.constant 0 : index
    %57 = vector.load %arg13[%c0_38, %c0_39] : memref<1x384xf32, #tpu.memory_space<vmem>>, vector<1x384xf32>
    %58 = vector.broadcast %57 : vector<1x384xf32> to vector<8x384xf32>
    %59 = arith.addf %56, %58 : vector<8x384xf32>
    %60 = vector.extract_strided_slice %54 {offsets = [0, 0], sizes = [8, 128], strides = [1, 1]} : vector<8x384xf32> to vector<8x128xf32>
    %61 = vector.extract_strided_slice %59 {offsets = [0, 0], sizes = [8, 128], strides = [1, 1]} : vector<8x384xf32> to vector<8x128xf32>
    %62 = arith.addf %60, %61 : vector<8x128xf32>
    %63 = arith.negf %62 : vector<8x128xf32>
    %64 = math.exp %63 : vector<8x128xf32>
    %cst_40 = arith.constant 1.000000e+00 : f32
    %65 = vector.broadcast %cst_40 : f32 to vector<8x128xf32>
    %66 = arith.addf %65, %64 : vector<8x128xf32>
    %67 = arith.divf %65, %66 : vector<8x128xf32>
    %68 = vector.extract_strided_slice %54 {offsets = [0, 128], sizes = [8, 128], strides = [1, 1]} : vector<8x384xf32> to vector<8x128xf32>
    %69 = vector.extract_strided_slice %59 {offsets = [0, 128], sizes = [8, 128], strides = [1, 1]} : vector<8x384xf32> to vector<8x128xf32>
    %70 = arith.addf %68, %69 : vector<8x128xf32>
    %71 = arith.negf %70 : vector<8x128xf32>
    %72 = math.exp %71 : vector<8x128xf32>
    %cst_41 = arith.constant 1.000000e+00 : f32
    %73 = vector.broadcast %cst_41 : f32 to vector<8x128xf32>
    %74 = arith.addf %73, %72 : vector<8x128xf32>
    %75 = arith.divf %73, %74 : vector<8x128xf32>
    %76 = vector.extract_strided_slice %54 {offsets = [0, 256], sizes = [8, 128], strides = [1, 1]} : vector<8x384xf32> to vector<8x128xf32>
    %77 = vector.extract_strided_slice %59 {offsets = [0, 256], sizes = [8, 128], strides = [1, 1]} : vector<8x384xf32> to vector<8x128xf32>
    %78 = arith.mulf %67, %77 : vector<8x128xf32>
    %79 = arith.addf %76, %78 : vector<8x128xf32>
    %80 = math.tanh %79 : vector<8x128xf32>
    %cst_42 = arith.constant 1.000000e+00 : f32
    %81 = vector.broadcast %cst_42 : f32 to vector<8x128xf32>
    %82 = arith.subf %81, %75 : vector<8x128xf32>
    %83 = arith.mulf %82, %80 : vector<8x128xf32>
    %84 = arith.mulf %75, %19 : vector<8x128xf32>
    %85 = arith.addf %83, %84 : vector<8x128xf32>
    %c0_43 = arith.constant 0 : index
    %c0_44 = arith.constant 0 : index
    %86 = vector.load %arg19[%c0_43, %c0_44] : memref<8x128xf32, #tpu.memory_space<vmem>>, vector<8x128xf32>
    tpu.vector_store %arg19[%c0_43, %c0_44], %85 {strides = array<i32>} : memref<8x128xf32, #tpu.memory_space<vmem>>, vector<8x128xf32>,
    %c0_45 = arith.constant 0 : index
    %c0_46 = arith.constant 0 : index
    %87 = vector.load %arg14[%c0_45, %c0_46] : memref<128x256xf32, #tpu.memory_space<vmem>>, vector<128x256xf32>
    %cst_47 = arith.constant dense<0.000000e+00> : vector<8x256xf32>
    %88 = tpu.matmul %85, %87, %cst_47 {dimension_numbers = #tpu.dot_dimension_numbers<[1], [0], [0], [1], [0, 0, 1, 1], [], []>} : vector<8x128xf32>, vector<128x256xf32>, vector<8x256xf32> -> vector<8x256xf32>
    %c0_48 = arith.constant 0 : index
    %c0_49 = arith.constant 0 : index
    %89 = vector.load %arg15[%c0_48, %c0_49] : memref<256x256xf32, #tpu.memory_space<vmem>>, vector<256x256xf32>
    %cst_50 = arith.constant dense<0.000000e+00> : vector<8x256xf32>
    %90 = tpu.matmul %47, %89, %cst_50 {dimension_numbers = #tpu.dot_dimension_numbers<[1], [0], [0], [1], [0, 0, 1, 1], [], []>} : vector<8x256xf32>, vector<256x256xf32>, vector<8x256xf32> -> vector<8x256xf32>
    %91 = arith.addf %88, %90 : vector<8x256xf32>
    %c0_51 = arith.constant 0 : index
    %c0_52 = arith.constant 0 : index
    %92 = vector.load %arg16[%c0_51, %c0_52] : memref<128x256xf32, #tpu.memory_space<vmem>>, vector<128x256xf32>
    %cst_53 = arith.constant dense<0.000000e+00> : vector<8x256xf32>
    %93 = tpu.matmul %18, %92, %cst_53 {dimension_numbers = #tpu.dot_dimension_numbers<[1], [0], [0], [1], [0, 0, 1, 1], [], []>} : vector<8x128xf32>, vector<128x256xf32>, vector<8x256xf32> -> vector<8x256xf32>
    %94 = arith.addf %91, %93 : vector<8x256xf32>
    %c0_54 = arith.constant 0 : index
    %c0_55 = arith.constant 0 : index
    %95 = vector.load %arg17[%c0_54, %c0_55] : memref<1x256xf32, #tpu.memory_space<vmem>>, vector<1x256xf32>
    %96 = vector.broadcast %95 : vector<1x256xf32> to vector<8x256xf32>
    %97 = arith.addf %94, %96 : vector<8x256xf32>
    %c0_56 = arith.constant 0 : index
    %c0_57 = arith.constant 0 : index
    %c0_58 = arith.constant 0 : index
    %98 = vector.load %arg18[%c0_56, %c0_57, %c0_58] : memref<1x8x256xf32, #tpu.memory_space<vmem>>, vector<1x8x256xf32>
    %99 = vector.shape_cast %98 : vector<1x8x256xf32> to vector<8x256xf32>
    %100 = vector.shape_cast %97 : vector<8x256xf32> to vector<1x8x256xf32>
    tpu.vector_store %arg18[%c0_56, %c0_57, %c0_58], %100 {strides = array<i32>} : memref<1x8x256xf32, #tpu.memory_space<vmem>>, vector<1x8x256xf32>,
    %cst_59 = arith.constant dense<0xFF800000> : vector<8xf32>
    %101 = vector.multi_reduction <maximumf>, %97, %cst_59 [1] : vector<8x256xf32> to vector<8xf32>
    %102 = vector.shape_cast %101 : vector<8xf32> to vector<8x1xf32>
    %103 = tpu.iota {dimensions = array<i32: 1>} : vector<8x256xi32>
    %104 = arith.sitofp %103 : vector<8x256xi32> to vector<8x256xf32>
    %105 = vector.broadcast %102 : vector<8x1xf32> to vector<8x256xf32>
    %106 = arith.cmpf oge, %97, %105 : vector<8x256xf32>
    %cst_60 = arith.constant 2.560000e+02 : f32
    %107 = vector.broadcast %cst_60 : f32 to vector<8x256xf32>
    %108 = arith.select %106, %104, %107 : vector<8x256xi1>, vector<8x256xf32>
    %cst_61 = arith.constant dense<0x7F800000> : vector<8xf32>
    %109 = vector.multi_reduction <minimumf>, %108, %cst_61 [1] : vector<8x256xf32> to vector<8xf32>
    %110 = vector.shape_cast %109 : vector<8xf32> to vector<8x1xf32>
    %111 = vector.broadcast %110 : vector<8x1xf32> to vector<8x256xf32>
    %112 = arith.cmpf oeq, %104, %111 : vector<8x256xf32>
    %113 = arith.extui %112 : vector<8x256xi1> to vector<8x256xi32>
    %114 = arith.sitofp %113 : vector<8x256xi32> to vector<8x256xf32>
    %c0_62 = arith.constant 0 : index
    %c0_63 = arith.constant 0 : index
    %115 = vector.load %arg20[%c0_62, %c0_63] : memref<8x256xf32, #tpu.memory_space<vmem>>, vector<8x256xf32>
    tpu.vector_store %arg20[%c0_62, %c0_63], %114 {strides = array<i32>} : memref<8x256xf32, #tpu.memory_space<vmem>>, vector<8x256xf32>,
    return
  }
  func.func @transform_0(%arg0: i32, %arg1: memref<5xi32, #tpu.memory_space<smem>>) -> (i32, i32, i32) {
    %c0_i32 = arith.constant 0 : i32
    %c0_i32_0 = arith.constant 0 : i32
    %c0_i32_1 = arith.constant 0 : i32
    return %arg0, %c0_i32, %c0_i32_0 : i32, i32, i32
  }
  func.func @transform_1(%arg0: i32, %arg1: memref<5xi32, #tpu.memory_space<smem>>) -> (i32, i32) {
    %c0_i32 = arith.constant 0 : i32
    %c0_i32_0 = arith.constant 0 : i32
    %c0_i32_1 = arith.constant 0 : i32
    return %c0_i32, %c0_i32_0 : i32, i32
  }
  func.func @transform_2(%arg0: i32, %arg1: memref<5xi32, #tpu.memory_space<smem>>) -> (i32, i32, i32) {
    %c0_i32 = arith.constant 0 : i32
    %c0_i32_0 = arith.constant 0 : i32
    %c0_i32_1 = arith.constant 0 : i32
    %c0_i32_2 = arith.constant 0 : i32
    return %c0_i32, %c0_i32_0, %c0_i32_1 : i32, i32, i32
  }
  func.func @transform_3(%arg0: i32, %arg1: memref<5xi32, #tpu.memory_space<smem>>) -> (i32, i32, i32) {
    %c0_i32 = arith.constant 0 : i32
    %c0_i32_0 = arith.constant 0 : i32
    %c0_i32_1 = arith.constant 0 : i32
    %c0_i32_2 = arith.constant 0 : i32
    return %c0_i32, %c0_i32_0, %c0_i32_1 : i32, i32, i32
  }
  func.func @transform_4(%arg0: i32, %arg1: memref<5xi32, #tpu.memory_space<smem>>) -> (i32, i32) {
    %c0_i32 = arith.constant 0 : i32
    %c0_i32_0 = arith.constant 0 : i32
    %c0_i32_1 = arith.constant 0 : i32
    return %c0_i32, %c0_i32_0 : i32, i32
  }
  func.func @transform_5(%arg0: i32, %arg1: memref<5xi32, #tpu.memory_space<smem>>) -> (i32, i32) {
    %c0_i32 = arith.constant 0 : i32
    %c0_i32_0 = arith.constant 0 : i32
    %c0_i32_1 = arith.constant 0 : i32
    return %c0_i32, %c0_i32_0 : i32, i32
  }
  func.func @transform_6(%arg0: i32, %arg1: memref<5xi32, #tpu.memory_space<smem>>) -> (i32, i32) {
    %c0_i32 = arith.constant 0 : i32
    %c0_i32_0 = arith.constant 0 : i32
    %c0_i32_1 = arith.constant 0 : i32
    return %c0_i32, %c0_i32_0 : i32, i32
  }
  func.func @transform_7(%arg0: i32, %arg1: memref<5xi32, #tpu.memory_space<smem>>) -> (i32, i32) {
    %c0_i32 = arith.constant 0 : i32
    %c0_i32_0 = arith.constant 0 : i32
    %c0_i32_1 = arith.constant 0 : i32
    return %c0_i32, %c0_i32_0 : i32, i32
  }
  func.func @transform_8(%arg0: i32, %arg1: memref<5xi32, #tpu.memory_space<smem>>) -> (i32, i32) {
    %c0_i32 = arith.constant 0 : i32
    %c0_i32_0 = arith.constant 0 : i32
    %c0_i32_1 = arith.constant 0 : i32
    return %c0_i32, %c0_i32_0 : i32, i32
  }
  func.func @transform_9(%arg0: i32, %arg1: memref<5xi32, #tpu.memory_space<smem>>) -> (i32, i32) {
    %c0_i32 = arith.constant 0 : i32
    %c0_i32_0 = arith.constant 0 : i32
    %c0_i32_1 = arith.constant 0 : i32
    return %c0_i32, %c0_i32_0 : i32, i32
  }
  func.func @transform_10(%arg0: i32, %arg1: memref<5xi32, #tpu.memory_space<smem>>) -> (i32, i32) {
    %c0_i32 = arith.constant 0 : i32
    %c0_i32_0 = arith.constant 0 : i32
    %c0_i32_1 = arith.constant 0 : i32
    return %c0_i32, %c0_i32_0 : i32, i32
  }
  func.func @transform_11(%arg0: i32, %arg1: memref<5xi32, #tpu.memory_space<smem>>) -> (i32, i32) {
    %c0_i32 = arith.constant 0 : i32
    %c0_i32_0 = arith.constant 0 : i32
    %c0_i32_1 = arith.constant 0 : i32
    return %c0_i32, %c0_i32_0 : i32, i32
  }
  func.func @transform_12(%arg0: i32, %arg1: memref<5xi32, #tpu.memory_space<smem>>) -> (i32, i32) {
    %c0_i32 = arith.constant 0 : i32
    %c0_i32_0 = arith.constant 0 : i32
    %c0_i32_1 = arith.constant 0 : i32
    return %c0_i32, %c0_i32_0 : i32, i32
  }
  func.func @transform_13(%arg0: i32, %arg1: memref<5xi32, #tpu.memory_space<smem>>) -> (i32, i32) {
    %c0_i32 = arith.constant 0 : i32
    %c0_i32_0 = arith.constant 0 : i32
    %c0_i32_1 = arith.constant 0 : i32
    return %c0_i32, %c0_i32_0 : i32, i32
  }
  func.func @transform_14(%arg0: i32, %arg1: memref<5xi32, #tpu.memory_space<smem>>) -> (i32, i32) {
    %c0_i32 = arith.constant 0 : i32
    %c0_i32_0 = arith.constant 0 : i32
    %c0_i32_1 = arith.constant 0 : i32
    return %c0_i32, %c0_i32_0 : i32, i32
  }
  func.func @transform_15(%arg0: i32, %arg1: memref<5xi32, #tpu.memory_space<smem>>) -> (i32, i32) {
    %c0_i32 = arith.constant 0 : i32
    %c0_i32_0 = arith.constant 0 : i32
    %c0_i32_1 = arith.constant 0 : i32
    return %c0_i32, %c0_i32_0 : i32, i32
  }
  func.func @transform_16(%arg0: i32, %arg1: memref<5xi32, #tpu.memory_space<smem>>) -> (i32, i32, i32) {
    %c0_i32 = arith.constant 0 : i32
    %c0_i32_0 = arith.constant 0 : i32
    %c0_i32_1 = arith.constant 0 : i32
    return %arg0, %c0_i32, %c0_i32_0 : i32, i32, i32
  }
}

</mosaic_0001>

<bundles_post_ra>
// kernel: seq2seq_forward.8
= control target key start
LH: loop header
LB: loop body
LE: loop exit
PB: predicated region body
PF: predicated region fallthrough
CT: control target
= control target key end

     0   :  { %s329_s1 = inlined_call_operand.vmem [shape: f32[256,128], index: 1, kind: input, shape index: {}]   ;;  %s330_s0 = inlined_call_operand.vmem [shape: f32[8,256], index: 0, kind: input, shape index: {}]   ;;  %s331_s2 = inlined_call_operand.vmem [shape: f32[1,128], index: 2, kind: input, shape index: {}]   ;;  %s332_s3 = inlined_call_operand.vmem [shape: f32[8,128], index: 3, kind: output, shape index: {}]  }
   0x1   :  { %v32_v0 = vld [vmem:[%s329_s1 + $0x80] sm:$0xff]  ;;  %v33_v1 = vld [vmem:[%s329_s1 + $0x88] sm:$0xff]  ;;  %v34_v5 = vld [vmem:[%s329_s1 + $0x90] sm:$0xff] }
   0x2   :  { %v16_v2 = vld [vmem:[%s329_s1] sm:$0xff]  ;;  %v167_v3 = vpack.c.bf16 %v33_v1, %v32_v0  ;;  %v17_v4 = vld [vmem:[%s329_s1 + $0x8] sm:$0xff]  ;;  %v35_v6 = vld [vmem:[%s329_s1 + $0x98] sm:$0xff] }
   0x3   :  { %v169_v7 = vpack.c.bf16 %v17_v4, %v16_v2  ;;  %v171_v8 = vpack.c.bf16 %v35_v6, %v34_v5  ;;  %v18_v9 = vld [vmem:[%s329_s1 + $0x10] sm:$0xff]  ;;  %v19_v10 = vld [vmem:[%s329_s1 + $0x18] sm:$0xff]  ;;  %v36_v11 = vld [vmem:[%s329_s1 + $0xa0] sm:$0xff] }
   0x4   :  { %168 = vmatprep.subr.bf16.mxu0 %v167_v3  ;;  %v37_v12 = vld [vmem:[%s329_s1 + $0xa8] sm:$0xff]  ;;  %v173_v13 = vpack.c.bf16 %v19_v10, %v18_v9  ;;  %v20_v15 = vld [vmem:[%s329_s1 + $0x20] sm:$0xff]  ;;  %v38_v17 = vld [vmem:[%s329_s1 + $0xb0] sm:$0xff] }
   0x5   :  { %170 = vmatpush3.bf16.msra.mxu0 %v169_v7  ;;  %v175_v14 = vpack.c.bf16 %v37_v12, %v36_v11  ;;  %v21_v16 = vld [vmem:[%s329_s1 + $0x28] sm:$0xff]  ;;  %v39_v18 = vld [vmem:[%s329_s1 + $0xb8] sm:$0xff]  ;;  %v22_v21 = vld [vmem:[%s329_s1 + $0x30] sm:$0xff] }
   0x6   :  { %172 = vmatprep.subr.bf16.mxu0 %v171_v8  ;;  %v177_v19 = vpack.c.bf16 %v21_v16, %v20_v15  ;;  %v179_v20 = vpack.c.bf16 %v39_v18, %v38_v17  ;;  %v23_v22 = vld [vmem:[%s329_s1 + $0x38] sm:$0xff]  ;;  %v40_v23 = vld [vmem:[%s329_s1 + $0xc0] sm:$0xff]  ;;  %v41_v24 = vld [vmem:[%s329_s1 + $0xc8] sm:$0xff] }
   0x7   :  { %v15_v25 = vld [vmem:[%s330_s0 + $0x8] sm:$0xff]  ;;  %v181_v26 = vpack.c.bf16 %v23_v22, %v22_v21  ;;  %v183_v27 = vpack.c.bf16 %v41_v24, %v40_v23  ;;  %v24_v28 = vld [vmem:[%s329_s1 + $0x40] sm:$0xff]  ;;  %v42_v30 = vld [vmem:[%s329_s1 + $0xd0] sm:$0xff] }
   0x8   :  { %119 = vmatprep.mubr.f32.mxu0 %v15_v25  ;;  %v25_v29 = vld [vmem:[%s329_s1 + $0x48] sm:$0xff]  ;;  %v43_v31 = vld [vmem:[%s329_s1 + $0xd8] sm:$0xff]  ;;  %v26_v34 = vld [vmem:[%s329_s1 + $0x50] sm:$0xff] }
   0x9   :  { %174 = vmatpush3.bf16.msra.mxu0 %v173_v13  ;;  %v185_v32 = vpack.c.bf16 %v25_v29, %v24_v28  ;;  %v187_v33 = vpack.c.bf16 %v43_v31, %v42_v30  ;;  %v27_v35 = vld [vmem:[%s329_s1 + $0x58] sm:$0xff]  ;;  %v44_v36 = vld [vmem:[%s329_s1 + $0xe0] sm:$0xff]  ;;  %v45_v37 = vld [vmem:[%s329_s1 + $0xe8] sm:$0xff] }
   0xa   :  { %176 = vmatprep.subr.bf16.mxu0 %v175_v14  ;;  %v189_v38 = vpack.c.bf16 %v27_v35, %v26_v34  ;;  %v191_v39 = vpack.c.bf16 %v45_v37, %v44_v36  ;;  %v28_v40 = vld [vmem:[%s329_s1 + $0x60] sm:$0xff]  ;;  %v29_v41 = vld [vmem:[%s329_s1 + $0x68] sm:$0xff]  ;;  %v46_v42 = vld [vmem:[%s329_s1 + $0xf0] sm:$0xff] }
   0xb   :  { %v47_v43 = vld [vmem:[%s329_s1 + $0xf8] sm:$0xff]  ;;  %v193_v44 = vpack.c.bf16 %v29_v41, %v28_v40  ;;  %v30_v46 = vld [vmem:[%s329_s1 + $0x70] sm:$0xff]  ;;  %v14_v49 = vld [vmem:[%s330_s0] sm:$0xff] }
   0xc   :  { %v195_v45 = vpack.c.bf16 %v47_v43, %v46_v42  ;;  %v31_v47 = vld [vmem:[%s329_s1 + $0x78] sm:$0xff]  ;;  %v131_v51 = vld [vmem:[%s331_s2] ss:$0 sm:$0xff] }
   0xd   :  { %178 = vmatpush3.bf16.msra.mxu0 %v177_v19  ;;  %v197_v48 = vpack.c.bf16 %v31_v47, %v30_v46 }
   0xe   :  { %180 = vmatprep.subr.bf16.mxu0 %v179_v20 }
  0x11   :  { %182 = vmatpush3.bf16.msra.mxu0 %v181_v26 }
  0x12   :  { %184 = vmatprep.subr.bf16.mxu0 %v183_v27 }
  0x15   :  { %186 = vmatpush3.bf16.msra.mxu0 %v185_v32 }
  0x16   :  { %188 = vmatprep.subr.bf16.mxu0 %v187_v33 }
  0x19   :  { %190 = vmatpush3.bf16.msra.mxu0 %v189_v38 }
  0x1a   :  { %192 = vmatprep.subr.bf16.mxu0 %v191_v39 }
  0x1d   :  { %194 = vmatpush3.bf16.msra.mxu0 %v193_v44 }
  0x1e   :  { %196 = vmatprep.subr.bf16.mxu0 %v195_v45 }
  0x21   :  { %198 = vmatpush3.bf16.msra.mxu0 %v197_v48 }
  0x24   :  { %120 = vmatmul.mubr.f32.vlgmr.msra.gmra.mrb[0].mxu0 %v14_v49 }
  0xf7   :  { %v164_v50 = vpop.f32.mrb[0].mxu0 }
  0xf8   :  { %v165_v52 = vpop.f32.mrb[1].mxu0 }
  0xf9   :  { %v166_v53 = vadd.f32 %v165_v52, %v164_v50 }
  0xfb   :  { %v122_v54 = vadd.f32 %v166_v53, %v131_v51 }
  0xfd   :  { %199 = vtanh.f32 %v122_v54 }
 0x107   :  { %v200_v55 = vpop.eup %199 }
 0x108   :  { %126 = vst [vmem:[%s332_s3] sm:$0xff] %v200_v55 }

// kernel: seq2seq_forward.6
= control target key start
LH: loop header
LB: loop body
LE: loop exit
PB: predicated region body
PF: predicated region fallthrough
CT: control target
= control target key end

     0   :  { %v654_v3 = vmov 0.0   ;;  %s1234_s1 = inlined_call_operand.vmem [shape: f32[128,768], index: 1, kind: input, shape index: {}]   ;;  %s1235_s0 = inlined_call_operand.vmem [shape: f32[64,128], index: 0, kind: input, shape index: {}]   ;;  %s1236_s2 = inlined_call_operand.vmem [shape: f32[1,768], index: 2, kind: input, shape index: {}]   ;;  %s1237_s3 = inlined_call_operand.vmem [shape: f32[64,768], index: 3, kind: output, shape index: {}]  }
   0x1   :  { %v23_v0 = vld [vmem:[%s1234_s1 + $0x8] sm:$0xff]  ;;  %v29_v1 = vld [vmem:[%s1234_s1 + $0x38] sm:$0xff]  ;;  %214 = vmatprep.mubr.f32.mxu0 %v654_v3  ;;  %327 = vmatprep.mubr.f32.mxu1 %v654_v3  ;;  %v22_v6 = vld [vmem:[%s1234_s1] sm:$0xff] }
   0x2   :  { %v25_v2 = vld [vmem:[%s1234_s1 + $0x18] sm:$0xff]  ;;  %v541_v4 = vpack.c.bf16 %v29_v1, %v23_v0  ;;  %v31_v5 = vld [vmem:[%s1234_s1 + $0x48] sm:$0xff]  ;;  %v28_v7 = vld [vmem:[%s1234_s1 + $0x30] sm:$0xff] }
   0x3   :  { %v573_v8 = vpack.c.bf16 %v31_v5, %v25_v2  ;;  %v543_v9 = vpack.c.bf16 %v28_v7, %v22_v6  ;;  %v24_v10 = vld [vmem:[%s1234_s1 + $0x10] sm:$0xff]  ;;  %v30_v11 = vld [vmem:[%s1234_s1 + $0x40] sm:$0xff]  ;;  %v35_v12 = vld [vmem:[%s1234_s1 + $0x68] sm:$0xff] }
   0x4   :  { %542 = vmatprep.subr.bf16.mxu0 %v541_v4  ;;  %v575_v13 = vpack.c.bf16 %v30_v11, %v24_v10  ;;  %v41_v14 = vld [vmem:[%s1234_s1 + $0x98] sm:$0xff]  ;;  %v43_v16 = vld [vmem:[%s1234_s1 + $0xa8] sm:$0xff]  ;;  %v34_v19 = vld [vmem:[%s1234_s1 + $0x60] sm:$0xff] }
   0x5   :  { %v37_v15 = vld [vmem:[%s1234_s1 + $0x78] sm:$0xff]  ;;  %574 = vmatprep.subr.bf16.mxu1 %v573_v8  ;;  %544 = vmatpush1.bf16.msra.mxu0 %v543_v9  ;;  %v545_v17 = vpack.c.bf16 %v41_v14, %v35_v12  ;;  %v40_v20 = vld [vmem:[%s1234_s1 + $0x90] sm:$0xff]  ;;  %v42_v23 = vld [vmem:[%s1234_s1 + $0xa0] sm:$0xff] }
   0x6   :  { %v577_v18 = vpack.c.bf16 %v43_v16, %v37_v15  ;;  %v36_v21 = vld [vmem:[%s1234_s1 + $0x70] sm:$0xff]  ;;  %576 = vmatpush1.bf16.msra.mxu1 %v575_v13  ;;  %v547_v22 = vpack.c.bf16 %v40_v20, %v34_v19  ;;  %v47_v24 = vld [vmem:[%s1234_s1 + $0xc8] sm:$0xff]  ;;  %v53_v25 = vld [vmem:[%s1234_s1 + $0xf8] sm:$0xff] }
   0x7   :  { %546 = vmatprep.subr.bf16.mxu0 %v545_v17  ;;  %v579_v26 = vpack.c.bf16 %v42_v23, %v36_v21  ;;  %v549_v27 = vpack.c.bf16 %v53_v25, %v47_v24  ;;  %v49_v28 = vld [vmem:[%s1234_s1 + $0xd8] sm:$0xff]  ;;  %v55_v29 = vld [vmem:[%s1234_s1 + $0x108] sm:$0xff]  ;;  %v46_v30 = vld [vmem:[%s1234_s1 + $0xc0] sm:$0xff] }
   0x8   :  { %578 = vmatprep.subr.bf16.mxu1 %v577_v18  ;;  %v581_v31 = vpack.c.bf16 %v55_v29, %v49_v28  ;;  %v52_v32 = vld [vmem:[%s1234_s1 + $0xf0] sm:$0xff]  ;;  %v54_v34 = vld [vmem:[%s1234_s1 + $0x100] sm:$0xff]  ;;  %v59_v36 = vld [vmem:[%s1234_s1 + $0x128] sm:$0xff] }
   0x9   :  { %v48_v33 = vld [vmem:[%s1234_s1 + $0xd0] sm:$0xff]  ;;  %548 = vmatpush1.bf16.msra.mxu0 %v547_v22  ;;  %v551_v35 = vpack.c.bf16 %v52_v32, %v46_v30  ;;  %v65_v37 = vld [vmem:[%s1234_s1 + $0x158] sm:$0xff]  ;;  %v67_v41 = vld [vmem:[%s1234_s1 + $0x168] sm:$0xff] }
   0xa   :  { %v61_v38 = vld [vmem:[%s1234_s1 + $0x138] sm:$0xff]  ;;  %580 = vmatpush1.bf16.msra.mxu1 %v579_v26  ;;  %550 = vmatprep.subr.bf16.mxu0 %v549_v27  ;;  %v583_v39 = vpack.c.bf16 %v54_v34, %v48_v33  ;;  %v553_v40 = vpack.c.bf16 %v65_v37, %v59_v36  ;;  %v58_v42 = vld [vmem:[%s1234_s1 + $0x120] sm:$0xff]  ;;  %v64_v43 = vld [vmem:[%s1234_s1 + $0x150] sm:$0xff] }
   0xb   :  { %582 = vmatprep.subr.bf16.mxu1 %v581_v31  ;;  %v585_v44 = vpack.c.bf16 %v67_v41, %v61_v38  ;;  %v60_v45 = vld [vmem:[%s1234_s1 + $0x130] sm:$0xff]  ;;  %v66_v46 = vld [vmem:[%s1234_s1 + $0x160] sm:$0xff]  ;;  %v71_v47 = vld [vmem:[%s1234_s1 + $0x188] sm:$0xff]  ;;  %v555_v51 = vpack.c.bf16 %v64_v43, %v58_v42 }
   0xc   :  { %v77_v48 = vld [vmem:[%s1234_s1 + $0x1b8] sm:$0xff]  ;;  %v79_v50 = vld [vmem:[%s1234_s1 + $0x1c8] sm:$0xff]  ;;  %v587_v52 = vpack.c.bf16 %v66_v46, %v60_v45  ;;  %v70_v54 = vld [vmem:[%s1234_s1 + $0x180] sm:$0xff] }
   0xd   :  { %v73_v49 = vld [vmem:[%s1234_s1 + $0x198] sm:$0xff]  ;;  %552 = vmatpush1.bf16.msra.mxu0 %v551_v35  ;;  %v557_v53 = vpack.c.bf16 %v77_v48, %v71_v47  ;;  %v76_v55 = vld [vmem:[%s1234_s1 + $0x1b0] sm:$0xff]  ;;  %v78_v58 = vld [vmem:[%s1234_s1 + $0x1c0] sm:$0xff] }
   0xe   :  { %584 = vmatpush1.bf16.msra.mxu1 %v583_v39  ;;  %554 = vmatprep.subr.bf16.mxu0 %v553_v40  ;;  %v72_v56 = vld [vmem:[%s1234_s1 + $0x190] sm:$0xff]  ;;  %v589_v57 = vpack.c.bf16 %v79_v50, %v73_v49  ;;  %v83_v59 = vld [vmem:[%s1234_s1 + $0x1e8] sm:$0xff]  ;;  %v89_v60 = vld [vmem:[%s1234_s1 + $0x218] sm:$0xff]  ;;  %v559_v63 = vpack.c.bf16 %v76_v55, %v70_v54 }
   0xf   :  { %586 = vmatprep.subr.bf16.mxu1 %v585_v44  ;;  %v85_v61 = vld [vmem:[%s1234_s1 + $0x1f8] sm:$0xff]  ;;  %v91_v62 = vld [vmem:[%s1234_s1 + $0x228] sm:$0xff]  ;;  %v591_v0 = vpack.c.bf16 %v78_v58, %v72_v56  ;;  %v561_v1 = vpack.c.bf16 %v89_v60, %v83_v59  ;;  %v82_v2 = vld [vmem:[%s1234_s1 + $0x1e0] sm:$0xff] }
  0x10   :  { %v88_v4 = vld [vmem:[%s1234_s1 + $0x210] sm:$0xff]  ;;  %v593_v6 = vpack.c.bf16 %v91_v62, %v85_v61  ;;  %v90_v7 = vld [vmem:[%s1234_s1 + $0x220] sm:$0xff]  ;;  %v95_v8 = vld [vmem:[%s1234_s1 + $0x248] sm:$0xff] }
  0x11   :  { %556 = vmatpush1.bf16.msra.mxu0 %v555_v51  ;;  %v84_v5 = vld [vmem:[%s1234_s1 + $0x1f0] sm:$0xff]  ;;  %v101_v9 = vld [vmem:[%s1234_s1 + $0x278] sm:$0xff]  ;;  %v103_v11 = vld [vmem:[%s1234_s1 + $0x288] sm:$0xff]  ;;  %v563_v12 = vpack.c.bf16 %v88_v4, %v82_v2 }
  0x12   :  { %588 = vmatpush1.bf16.msra.mxu1 %v587_v52  ;;  %558 = vmatprep.subr.bf16.mxu0 %v557_v53  ;;  %v97_v10 = vld [vmem:[%s1234_s1 + $0x258] sm:$0xff]  ;;  %v595_v13 = vpack.c.bf16 %v90_v7, %v84_v5  ;;  %v565_v14 = vpack.c.bf16 %v101_v9, %v95_v8  ;;  %v94_v15 = vld [vmem:[%s1234_s1 + $0x240] sm:$0xff]  ;;  %v100_v16 = vld [vmem:[%s1234_s1 + $0x270] sm:$0xff] }
  0x13   :  { %590 = vmatprep.subr.bf16.mxu1 %v589_v57  ;;  %v96_v17 = vld [vmem:[%s1234_s1 + $0x250] sm:$0xff]  ;;  %v597_v18 = vpack.c.bf16 %v103_v11, %v97_v10  ;;  %v102_v19 = vld [vmem:[%s1234_s1 + $0x280] sm:$0xff]  ;;  %v107_v20 = vld [vmem:[%s1234_s1 + $0x2a8] sm:$0xff]  ;;  %v567_v24 = vpack.c.bf16 %v100_v16, %v94_v15 }
  0x14   :  { %v113_v21 = vld [vmem:[%s1234_s1 + $0x2d8] sm:$0xff]  ;;  %v115_v23 = vld [vmem:[%s1234_s1 + $0x2e8] sm:$0xff]  ;;  %v599_v25 = vpack.c.bf16 %v102_v19, %v96_v17  ;;  %v106_v27 = vld [vmem:[%s1234_s1 + $0x2a0] sm:$0xff] }
  0x15   :  { %560 = vmatpush1.bf16.msra.mxu0 %v559_v63  ;;  %v109_v22 = vld [vmem:[%s1234_s1 + $0x2b8] sm:$0xff]  ;;  %v569_v26 = vpack.c.bf16 %v113_v21, %v107_v20  ;;  %v112_v28 = vld [vmem:[%s1234_s1 + $0x2d0] sm:$0xff]  ;;  %v114_v31 = vld [vmem:[%s1234_s1 + $0x2e0] sm:$0xff] }
  0x16   :  { %592 = vmatpush1.bf16.msra.mxu1 %v591_v0  ;;  %562 = vmatprep.subr.bf16.mxu0 %v561_v1  ;;  %v108_v29 = vld [vmem:[%s1234_s1 + $0x2b0] sm:$0xff]  ;;  %v601_v30 = vpack.c.bf16 %v115_v23, %v109_v22  ;;  %v27_v32 = vld [vmem:[%s1234_s1 + $0x28] sm:$0xff]  ;;  %v33_v33 = vld [vmem:[%s1234_s1 + $0x58] sm:$0xff]  ;;  %v571_v34 = vpack.c.bf16 %v112_v28, %v106_v27  ;;  %v120_v27 = vlaneseq }
  0x17   :  { %594 = vmatprep.subr.bf16.mxu1 %v593_v6  ;;  %v603_v35 = vpack.c.bf16 %v114_v31, %v108_v29  ;;  %v605_v36 = vpack.c.bf16 %v33_v33, %v27_v32  ;;  %v26_v37 = vld [vmem:[%s1234_s1 + $0x20] sm:$0xff]  ;;  %v32_v38 = vld [vmem:[%s1234_s1 + $0x50] sm:$0xff]  ;;  %v39_v39 = vld [vmem:[%s1234_s1 + $0x88] sm:$0xff] }
  0x18   :  { %v45_v40 = vld [vmem:[%s1234_s1 + $0xb8] sm:$0xff]  ;;  %v890_v41 = vld [vmem:[%s1235_s0] sm:$0xff]  ;;  %v607_v42 = vpack.c.bf16 %v32_v38, %v26_v37  ;;  %v44_v44 = vld [vmem:[%s1234_s1 + $0xb0] sm:$0xff]  ;;  %v1031_v28 = vshrl.u32 %v120_v27, 7 }
  0x19   :  { %564 = vmatpush1.bf16.msra.mxu0 %v563_v12  ;;  %v38_v43 = vld [vmem:[%s1234_s1 + $0x80] sm:$0xff]  ;;  %v609_v45 = vpack.c.bf16 %v45_v40, %v39_v39  ;;  %v51_v46 = vld [vmem:[%s1234_s1 + $0xe8] sm:$0xff]  ;;  %v57_v47 = vld [vmem:[%s1234_s1 + $0x118] sm:$0xff] }
  0x1a   :  { %596 = vmatpush1.bf16.msra.mxu1 %v595_v13  ;;  %566 = vmatprep.subr.bf16.mxu0 %v565_v14  ;;  %v909_v48 = vld [vmem:[%s1235_s0 + $0x8] sm:$0xff]  ;;  %v611_v49 = vpack.c.bf16 %v44_v44, %v38_v43  ;;  %v50_v50 = vld [vmem:[%s1234_s1 + $0xe0] sm:$0xff]  ;;  %v56_v51 = vld [vmem:[%s1234_s1 + $0x110] sm:$0xff]  ;;  %v613_v52 = vpack.c.bf16 %v57_v47, %v51_v46  ;;  %v122_v29 = vsub.s32 0, %v1031_v28  ;;  %v130_v31 = vsub.s32 2, %v1031_v28 }
  0x1b   :  { %598 = vmatprep.subr.bf16.mxu1 %v597_v18  ;;  %v63_v53 = vld [vmem:[%s1234_s1 + $0x148] sm:$0xff]  ;;  %v69_v54 = vld [vmem:[%s1234_s1 + $0x178] sm:$0xff]  ;;  %v930_v55 = vld [vmem:[%s1235_s0 + $0x10] sm:$0xff]  ;;  %v615_v56 = vpack.c.bf16 %v56_v51, %v50_v50  ;;  %v126_v32 = vsub.s32 1, %v1031_v28  ;;  %v134_v33 = vsub.s32 3, %v1031_v28 }
  0x1c   :  { %v62_v57 = vld [vmem:[%s1234_s1 + $0x140] sm:$0xff]  ;;  %v68_v58 = vld [vmem:[%s1234_s1 + $0x170] sm:$0xff]  ;;  %v617_v59 = vpack.c.bf16 %v69_v54, %v63_v53  ;;  %v75_v60 = vld [vmem:[%s1234_s1 + $0x1a8] sm:$0xff] }
  0x1d   :  { %568 = vmatpush1.bf16.msra.mxu0 %v567_v24  ;;  %v81_v61 = vld [vmem:[%s1234_s1 + $0x1d8] sm:$0xff]  ;;  %v619_v63 = vpack.c.bf16 %v68_v58, %v62_v57  ;;  %v74_v0 = vld [vmem:[%s1234_s1 + $0x1a0] sm:$0xff]  ;;  %v80_v1 = vld [vmem:[%s1234_s1 + $0x1d0] sm:$0xff] }
  0x1e   :  { %600 = vmatpush1.bf16.msra.mxu1 %v599_v25  ;;  %570 = vmatprep.subr.bf16.mxu0 %v569_v26  ;;  %v951_v62 = vld [vmem:[%s1235_s0 + $0x18] sm:$0xff]  ;;  %v621_v2 = vpack.c.bf16 %v81_v61, %v75_v60  ;;  %v87_v4 = vld [vmem:[%s1234_s1 + $0x208] sm:$0xff]  ;;  %v18_v6 = vld [vmem:[%s1235_s0 + $0x20] sm:$0xff]  ;;  %v623_v7 = vpack.c.bf16 %v80_v1, %v74_v0 }
  0x1f   :  { %602 = vmatprep.subr.bf16.mxu1 %v601_v30  ;;  %v93_v5 = vld [vmem:[%s1234_s1 + $0x238] sm:$0xff]  ;;  %v86_v8 = vld [vmem:[%s1234_s1 + $0x200] sm:$0xff]  ;;  %v92_v9 = vld [vmem:[%s1234_s1 + $0x230] sm:$0xff] }
  0x20   :  { %v625_v10 = vpack.c.bf16 %v93_v5, %v87_v4  ;;  %v99_v11 = vld [vmem:[%s1234_s1 + $0x268] sm:$0xff]  ;;  %v105_v12 = vld [vmem:[%s1234_s1 + $0x298] sm:$0xff]  ;;  %v627_v14 = vpack.c.bf16 %v92_v9, %v86_v8  ;;  %v98_v15 = vld [vmem:[%s1234_s1 + $0x260] sm:$0xff] }
  0x21   :  { %572 = vmatpush1.bf16.msra.mxu0 %v571_v34  ;;  %v19_v13 = vld [vmem:[%s1235_s0 + $0x28] sm:$0xff]  ;;  %v104_v16 = vld [vmem:[%s1234_s1 + $0x290] sm:$0xff]  ;;  %v629_v17 = vpack.c.bf16 %v105_v12, %v99_v11  ;;  %v117_v19 = vld [vmem:[%s1234_s1 + $0x2f8] sm:$0xff] }
  0x22   :  { %604 = vmatpush1.bf16.msra.mxu1 %v603_v35  ;;  %606 = vmatprep.subr.bf16.mxu0 %v605_v36  ;;  %v111_v18 = vld [vmem:[%s1234_s1 + $0x2c8] sm:$0xff]  ;;  %v20_v20 = vld [vmem:[%s1235_s0 + $0x30] sm:$0xff]  ;;  %v631_v21 = vpack.c.bf16 %v104_v16, %v98_v15  ;;  %v110_v22 = vld [vmem:[%s1234_s1 + $0x2c0] sm:$0xff] }
  0x23   :  { %637 = vmatprep.subr.bf16.mxu1 %v605_v36  ;;  %v116_v23 = vld [vmem:[%s1234_s1 + $0x2f0] sm:$0xff]  ;;  %v633_v24 = vpack.c.bf16 %v117_v19, %v111_v18  ;;  %v21_v25 = vld [vmem:[%s1235_s0 + $0x38] sm:$0xff]  ;;  %v1037_v30 = vld [vmem:[%s1236_s2] sm:$0x3f] }
  0x24   :  { %215 = vmatmul.mubr.f32.vlgmr.msra.gmra.mrb[0].mxu0 %v890_v41  ;;  %v635_v26 = vpack.c.bf16 %v116_v23, %v110_v22  ;;  %v1046_v34 = vrot.slane %v1037_v30, %v130_v31  ;;  %v1049_v35 = vrot.slane %v1037_v30, %v126_v32  ;;  %v1052_v36 = vrot.slane %v1037_v30, %v134_v33 }
  0x25   :  { %328 = vmatmul.mubr.f32.vlgmr.msra.gmra.mrb[0].mxu1 %v890_v41  ;;  %608 = vmatpush1.bf16.msra.mxu0 %v607_v42  ;;  %v142_v32 = vsub.s32 5, %v1031_v28 }
  0x26   :  { %645 = vmatpush1.bf16.msra.mxu1 %v607_v42  ;;  %220 = vmatprep.mubr.f32.mxu0 %v654_v3 }
  0x27   :  { %333 = vmatprep.mubr.f32.mxu1 %v654_v3  ;;  %610 = vmatprep.subr.bf16.mxu0 %v609_v45 }
  0x28   :  { %221 = vmatmul.mubr.f32.gmra.mrb[2].mxu0 %v909_v48  ;;  %638 = vmatprep.subr.bf16.mxu1 %v609_v45 }
  0x29   :  { %334 = vmatmul.mubr.f32.gmra.mrb[2].mxu1 %v909_v48  ;;  %612 = vmatpush1.bf16.msra.mxu0 %v611_v49 }
  0x2a   :  { %646 = vmatpush1.bf16.msra.mxu1 %v611_v49  ;;  %226 = vmatprep.mubr.f32.mxu0 %v654_v3 }
  0x2b   :  { %339 = vmatprep.mubr.f32.mxu1 %v654_v3  ;;  %614 = vmatprep.subr.bf16.mxu0 %v613_v52 }
  0x2c   :  { %227 = vmatmul.mubr.f32.gmra.mrb[4].mxu0 %v930_v55  ;;  %639 = vmatprep.subr.bf16.mxu1 %v613_v52 }
  0x2d   :  { %340 = vmatmul.mubr.f32.gmra.mrb[4].mxu1 %v930_v55  ;;  %616 = vmatpush1.bf16.msra.mxu0 %v615_v56 }
  0x2e   :  { %647 = vmatpush1.bf16.msra.mxu1 %v615_v56  ;;  %232 = vmatprep.mubr.f32.mxu0 %v654_v3 }
  0x2f   :  { %345 = vmatprep.mubr.f32.mxu1 %v654_v3  ;;  %618 = vmatprep.subr.bf16.mxu0 %v617_v59 }
  0x30   :  { %233 = vmatmul.mubr.f32.gmra.mrb[6].mxu0 %v951_v62  ;;  %640 = vmatprep.subr.bf16.mxu1 %v617_v59 }
  0x31   :  { %346 = vmatmul.mubr.f32.gmra.mrb[6].mxu1 %v951_v62  ;;  %620 = vmatpush1.bf16.msra.mxu0 %v619_v63 }
  0x32   :  { %648 = vmatpush1.bf16.msra.mxu1 %v619_v63  ;;  %238 = vmatprep.mubr.f32.mxu0 %v654_v3 }
  0x33   :  { %351 = vmatprep.mubr.f32.mxu1 %v654_v3  ;;  %622 = vmatprep.subr.bf16.mxu0 %v621_v2 }
  0x34   :  { %239 = vmatmul.mubr.f32.gmra.mrb[8].mxu0 %v18_v6  ;;  %641 = vmatprep.subr.bf16.mxu1 %v621_v2 }
  0x35   :  { %352 = vmatmul.mubr.f32.gmra.mrb[8].mxu1 %v18_v6  ;;  %624 = vmatpush1.bf16.msra.mxu0 %v623_v7 }
  0x36   :  { %649 = vmatpush1.bf16.msra.mxu1 %v623_v7  ;;  %244 = vmatprep.mubr.f32.mxu0 %v654_v3 }
  0x37   :  { %357 = vmatprep.mubr.f32.mxu1 %v654_v3  ;;  %626 = vmatprep.subr.bf16.mxu0 %v625_v10 }
  0x38   :  { %245 = vmatmul.mubr.f32.gmra.mrb[10].mxu0 %v19_v13  ;;  %642 = vmatprep.subr.bf16.mxu1 %v625_v10 }
  0x39   :  { %358 = vmatmul.mubr.f32.gmra.mrb[10].mxu1 %v19_v13  ;;  %628 = vmatpush1.bf16.msra.mxu0 %v627_v14 }
  0x3a   :  { %650 = vmatpush1.bf16.msra.mxu1 %v627_v14  ;;  %250 = vmatprep.mubr.f32.mxu0 %v654_v3 }
  0x3b   :  { %363 = vmatprep.mubr.f32.mxu1 %v654_v3  ;;  %630 = vmatprep.subr.bf16.mxu0 %v629_v17 }
  0x3c   :  { %251 = vmatmul.mubr.f32.gmra.mrb[12].mxu0 %v20_v20  ;;  %643 = vmatprep.subr.bf16.mxu1 %v629_v17 }
  0x3d   :  { %364 = vmatmul.mubr.f32.gmra.mrb[12].mxu1 %v20_v20  ;;  %632 = vmatpush1.bf16.msra.mxu0 %v631_v21 }
  0x3e   :  { %651 = vmatpush1.bf16.msra.mxu1 %v631_v21  ;;  %256 = vmatprep.mubr.f32.mxu0 %v654_v3 }
  0x3f   :  { %369 = vmatprep.mubr.f32.mxu1 %v654_v3  ;;  %634 = vmatprep.subr.bf16.mxu0 %v633_v24 }
  0x40   :  { %257 = vmatmul.mubr.f32.gmra.mrb[14].mxu0 %v21_v25  ;;  %644 = vmatprep.subr.bf16.mxu1 %v633_v24 }
  0x41   :  { %370 = vmatmul.mubr.f32.gmra.mrb[14].mxu1 %v21_v25  ;;  %636 = vmatpush1.bf16.msra.mxu0 %v635_v26 }
  0x42   :  { %652 = vmatpush1.bf16.msra.mxu1 %v635_v26  ;;  %440 = vmatprep.mubr.f32.mxu0 %v654_v3  ;;  %v138_v26 = vsub.s32 4, %v1031_v28 }
  0x43   :  { %464 = vmatprep.mubr.f32.mxu1 %v654_v3 }
  0x44   :  { %441 = vmatmul.mubr.f32.vlgmr.msra.gmra.mrb[16].mxu0 %v890_v41 }
  0x45   :  { %465 = vmatmul.mubr.f32.vlgmr.msra.gmra.mrb[16].mxu1 %v18_v6  ;;  %446 = vmatprep.mubr.f32.mxu0 %v654_v3 }
  0x46   :  { %470 = vmatprep.mubr.f32.mxu1 %v654_v3 }
  0x48   :  { %447 = vmatmul.mubr.f32.gmra.mrb[18].mxu0 %v909_v48 }
  0x49   :  { %471 = vmatmul.mubr.f32.gmra.mrb[18].mxu1 %v19_v13  ;;  %452 = vmatprep.mubr.f32.mxu0 %v654_v3 }
  0x4a   :  { %476 = vmatprep.mubr.f32.mxu1 %v654_v3 }
  0x4c   :  { %453 = vmatmul.mubr.f32.gmra.mrb[20].mxu0 %v930_v55 }
  0x4d   :  { %477 = vmatmul.mubr.f32.gmra.mrb[20].mxu1 %v20_v20  ;;  %458 = vmatprep.mubr.f32.mxu0 %v654_v3 }
  0x4e   :  { %482 = vmatprep.mubr.f32.mxu1 %v654_v3  ;;  %v1043_v3 = vrot.slane %v1037_v30, %v122_v29 }
  0x50   :  { %459 = vmatmul.mubr.f32.gmra.mrb[22].mxu0 %v951_v62 }
  0x51   :  { %483 = vmatmul.mubr.f32.gmra.mrb[22].mxu1 %v21_v25 }
  0xf7   :  { %v216_v37 = vpop.f32.mrb[0].mxu0 }
  0xf8   :  { %v217_v38 = vadd.f32 %v216_v37, %v1043_v3  ;;  %v329_v39 = vpop.f32.mrb[0].mxu1  ;;  %v218_v40 = vpop.f32.mrb[1].mxu0 }
  0xf9   :  { %v330_v41 = vadd.f32 %v329_v39, %v1046_v34  ;;  %v219_v42 = vadd.f32 %v218_v40, %v1049_v35  ;;  %v331_v43 = vpop.f32.mrb[1].mxu1  ;;  %v139_v40 = vrot.slane %v1037_v30, %v138_v26 }
  0xfa   :  { %489 = vst [vmem:[%s1237_s3] sm:$0xff] %v217_v38  ;;  %v332_v44 = vadd.f32 %v331_v43, %v1052_v36 }
  0xfb   :  { %491 = vst [vmem:[%s1237_s3 + $0x10] sm:$0xff] %v330_v41  ;;  %490 = vst [vmem:[%s1237_s3 + $0x8] sm:$0xff] %v219_v42  ;;  %v222_v45 = vpop.f32.mrb[2].mxu0 }
  0xfc   :  { %492 = vst [vmem:[%s1237_s3 + $0x18] sm:$0xff] %v332_v44  ;;  %v223_v46 = vadd.f32 %v222_v45, %v1043_v3  ;;  %v335_v47 = vpop.f32.mrb[2].mxu1  ;;  %v224_v48 = vpop.f32.mrb[3].mxu0  ;;  %v143_v44 = vrot.slane %v1037_v30, %v142_v32 }
  0xfd   :  { %v336_v49 = vadd.f32 %v335_v47, %v1046_v34  ;;  %v225_v50 = vadd.f32 %v224_v48, %v1049_v35  ;;  %v337_v51 = vpop.f32.mrb[3].mxu1 }
  0xfe   :  { %495 = vst [vmem:[%s1237_s3 + $0x30] sm:$0xff] %v223_v46  ;;  %v338_v52 = vadd.f32 %v337_v51, %v1052_v36 }
  0xff   :  { %497 = vst [vmem:[%s1237_s3 + $0x40] sm:$0xff] %v336_v49  ;;  %496 = vst [vmem:[%s1237_s3 + $0x38] sm:$0xff] %v225_v50  ;;  %v228_v53 = vpop.f32.mrb[4].mxu0 }
 0x100   :  { %498 = vst [vmem:[%s1237_s3 + $0x48] sm:$0xff] %v338_v52  ;;  %v229_v54 = vadd.f32 %v228_v53, %v1043_v3  ;;  %v341_v55 = vpop.f32.mrb[4].mxu1  ;;  %v230_v56 = vpop.f32.mrb[5].mxu0 }
 0x101   :  { %v342_v57 = vadd.f32 %v341_v55, %v1046_v34  ;;  %v231_v58 = vadd.f32 %v230_v56, %v1049_v35  ;;  %v343_v59 = vpop.f32.mrb[5].mxu1 }
 0x102   :  { %501 = vst [vmem:[%s1237_s3 + $0x60] sm:$0xff] %v229_v54  ;;  %v344_v60 = vadd.f32 %v343_v59, %v1052_v36 }
 0x103   :  { %503 = vst [vmem:[%s1237_s3 + $0x70] sm:$0xff] %v342_v57  ;;  %502 = vst [vmem:[%s1237_s3 + $0x68] sm:$0xff] %v231_v58  ;;  %v234_v61 = vpop.f32.mrb[6].mxu0 }
 0x104   :  { %504 = vst [vmem:[%s1237_s3 + $0x78] sm:$0xff] %v344_v60  ;;  %v235_v62 = vadd.f32 %v234_v61, %v1043_v3  ;;  %v347_v63 = vpop.f32.mrb[6].mxu1  ;;  %v236_v0 = vpop.f32.mrb[7].mxu0 }
 0x105   :  { %v348_v1 = vadd.f32 %v347_v63, %v1046_v34  ;;  %v237_v2 = vadd.f32 %v236_v0, %v1049_v35  ;;  %v349_v4 = vpop.f32.mrb[7].mxu1 }
 0x106   :  { %507 = vst [vmem:[%s1237_s3 + $0x90] sm:$0xff] %v235_v62  ;;  %v350_v5 = vadd.f32 %v349_v4, %v1052_v36 }
 0x107   :  { %509 = vst [vmem:[%s1237_s3 + $0xa0] sm:$0xff] %v348_v1  ;;  %508 = vst [vmem:[%s1237_s3 + $0x98] sm:$0xff] %v237_v2  ;;  %v240_v6 = vpop.f32.mrb[8].mxu0 }
 0x108   :  { %510 = vst [vmem:[%s1237_s3 + $0xa8] sm:$0xff] %v350_v5  ;;  %v241_v7 = vadd.f32 %v240_v6, %v1043_v3  ;;  %v353_v8 = vpop.f32.mrb[8].mxu1  ;;  %v242_v9 = vpop.f32.mrb[9].mxu0 }
 0x109   :  { %v354_v10 = vadd.f32 %v353_v8, %v1046_v34  ;;  %v243_v11 = vadd.f32 %v242_v9, %v1049_v35  ;;  %v355_v12 = vpop.f32.mrb[9].mxu1 }
 0x10a   :  { %513 = vst [vmem:[%s1237_s3 + $0xc0] sm:$0xff] %v241_v7  ;;  %v356_v13 = vadd.f32 %v355_v12, %v1052_v36 }
 0x10b   :  { %515 = vst [vmem:[%s1237_s3 + $0xd0] sm:$0xff] %v354_v10  ;;  %514 = vst [vmem:[%s1237_s3 + $0xc8] sm:$0xff] %v243_v11  ;;  %v246_v14 = vpop.f32.mrb[10].mxu0 }
 0x10c   :  { %516 = vst [vmem:[%s1237_s3 + $0xd8] sm:$0xff] %v356_v13  ;;  %v247_v15 = vadd.f32 %v246_v14, %v1043_v3  ;;  %v359_v16 = vpop.f32.mrb[10].mxu1  ;;  %v248_v17 = vpop.f32.mrb[11].mxu0 }
 0x10d   :  { %v360_v18 = vadd.f32 %v359_v16, %v1046_v34  ;;  %v249_v19 = vadd.f32 %v248_v17, %v1049_v35  ;;  %v361_v20 = vpop.f32.mrb[11].mxu1 }
 0x10e   :  { %519 = vst [vmem:[%s1237_s3 + $0xf0] sm:$0xff] %v247_v15  ;;  %v362_v21 = vadd.f32 %v361_v20, %v1052_v36 }
 0x10f   :  { %521 = vst [vmem:[%s1237_s3 + $0x100] sm:$0xff] %v360_v18  ;;  %520 = vst [vmem:[%s1237_s3 + $0xf8] sm:$0xff] %v249_v19  ;;  %v252_v22 = vpop.f32.mrb[12].mxu0 }
 0x110   :  { %522 = vst [vmem:[%s1237_s3 + $0x108] sm:$0xff] %v362_v21  ;;  %v253_v23 = vadd.f32 %v252_v22, %v1043_v3  ;;  %v365_v24 = vpop.f32.mrb[12].mxu1  ;;  %v254_v25 = vpop.f32.mrb[13].mxu0 }
 0x111   :  { %v366_v27 = vadd.f32 %v365_v24, %v1046_v34  ;;  %v255_v29 = vadd.f32 %v254_v25, %v1049_v35  ;;  %v367_v31 = vpop.f32.mrb[13].mxu1 }
 0x112   :  { %525 = vst [vmem:[%s1237_s3 + $0x120] sm:$0xff] %v253_v23  ;;  %v368_v33 = vadd.f32 %v367_v31, %v1052_v36 }
 0x113   :  { %527 = vst [vmem:[%s1237_s3 + $0x130] sm:$0xff] %v366_v27  ;;  %526 = vst [vmem:[%s1237_s3 + $0x128] sm:$0xff] %v255_v29  ;;  %v258_v37 = vpop.f32.mrb[14].mxu0 }
 0x114   :  { %528 = vst [vmem:[%s1237_s3 + $0x138] sm:$0xff] %v368_v33  ;;  %v259_v28 = vadd.f32 %v258_v37, %v1043_v3  ;;  %v371_v38 = vpop.f32.mrb[14].mxu1  ;;  %v260_v39 = vpop.f32.mrb[15].mxu0 }
 0x115   :  { %v372_v41 = vadd.f32 %v371_v38, %v1046_v34  ;;  %v261_v42 = vadd.f32 %v260_v39, %v1049_v35  ;;  %v373_v43 = vpop.f32.mrb[15].mxu1 }
 0x116   :  { %531 = vst [vmem:[%s1237_s3 + $0x150] sm:$0xff] %v259_v28  ;;  %v374_v45 = vadd.f32 %v373_v43, %v1052_v36 }
 0x117   :  { %533 = vst [vmem:[%s1237_s3 + $0x160] sm:$0xff] %v372_v41  ;;  %532 = vst [vmem:[%s1237_s3 + $0x158] sm:$0xff] %v261_v42  ;;  %v442_v3 = vpop.f32.mrb[16].mxu0 }
 0x118   :  { %534 = vst [vmem:[%s1237_s3 + $0x168] sm:$0xff] %v374_v45  ;;  %v443_v30 = vadd.f32 %v442_v3, %v139_v40  ;;  %v466_v34 = vpop.f32.mrb[16].mxu1  ;;  %v444_v35 = vpop.f32.mrb[17].mxu0 }
 0x119   :  { %v467_v46 = vadd.f32 %v466_v34, %v139_v40  ;;  %v445_v47 = vadd.f32 %v444_v35, %v143_v44  ;;  %v468_v48 = vpop.f32.mrb[17].mxu1 }
 0x11a   :  { %493 = vst [vmem:[%s1237_s3 + $0x20] sm:$0xff] %v443_v30  ;;  %v469_v36 = vadd.f32 %v468_v48, %v143_v44 }
 0x11b   :  { %517 = vst [vmem:[%s1237_s3 + $0xe0] sm:$0xff] %v467_v46  ;;  %494 = vst [vmem:[%s1237_s3 + $0x28] sm:$0xff] %v445_v47  ;;  %v448_v49 = vpop.f32.mrb[18].mxu0 }
 0x11c   :  { %518 = vst [vmem:[%s1237_s3 + $0xe8] sm:$0xff] %v469_v36  ;;  %v449_v50 = vadd.f32 %v448_v49, %v139_v40  ;;  %v472_v51 = vpop.f32.mrb[18].mxu1  ;;  %v450_v52 = vpop.f32.mrb[19].mxu0 }
 0x11d   :  { %v473_v53 = vadd.f32 %v472_v51, %v139_v40  ;;  %v451_v54 = vadd.f32 %v450_v52, %v143_v44  ;;  %v474_v55 = vpop.f32.mrb[19].mxu1 }
 0x11e   :  { %499 = vst [vmem:[%s1237_s3 + $0x50] sm:$0xff] %v449_v50  ;;  %v475_v56 = vadd.f32 %v474_v55, %v143_v44 }
 0x11f   :  { %523 = vst [vmem:[%s1237_s3 + $0x110] sm:$0xff] %v473_v53  ;;  %500 = vst [vmem:[%s1237_s3 + $0x58] sm:$0xff] %v451_v54  ;;  %v454_v57 = vpop.f32.mrb[20].mxu0 }
 0x120   :  { %524 = vst [vmem:[%s1237_s3 + $0x118] sm:$0xff] %v475_v56  ;;  %v455_v58 = vadd.f32 %v454_v57, %v139_v40  ;;  %v478_v59 = vpop.f32.mrb[20].mxu1  ;;  %v456_v60 = vpop.f32.mrb[21].mxu0 }
 0x121   :  { %v479_v61 = vadd.f32 %v478_v59, %v139_v40  ;;  %v457_v62 = vadd.f32 %v456_v60, %v143_v44  ;;  %v480_v63 = vpop.f32.mrb[21].mxu1 }
 0x122   :  { %505 = vst [vmem:[%s1237_s3 + $0x80] sm:$0xff] %v455_v58  ;;  %v481_v0 = vadd.f32 %v480_v63, %v143_v44 }
 0x123   :  { %529 = vst [vmem:[%s1237_s3 + $0x140] sm:$0xff] %v479_v61  ;;  %506 = vst [vmem:[%s1237_s3 + $0x88] sm:$0xff] %v457_v62  ;;  %v460_v1 = vpop.f32.mrb[22].mxu0 }
 0x124   :  { %530 = vst [vmem:[%s1237_s3 + $0x148] sm:$0xff] %v481_v0  ;;  %v461_v2 = vadd.f32 %v460_v1, %v139_v40  ;;  %v484_v4 = vpop.f32.mrb[22].mxu1  ;;  %v462_v5 = vpop.f32.mrb[23].mxu0 }
 0x125   :  { %v485_v6 = vadd.f32 %v484_v4, %v139_v40  ;;  %v463_v7 = vadd.f32 %v462_v5, %v143_v44  ;;  %v486_v8 = vpop.f32.mrb[23].mxu1 }
 0x126   :  { %511 = vst [vmem:[%s1237_s3 + $0xb0] sm:$0xff] %v461_v2  ;;  %v487_v9 = vadd.f32 %v486_v8, %v143_v44 }
 0x127   :  { %535 = vst [vmem:[%s1237_s3 + $0x170] sm:$0xff] %v485_v6  ;;  %512 = vst [vmem:[%s1237_s3 + $0xb8] sm:$0xff] %v463_v7 }
 0x128   :  { %536 = vst [vmem:[%s1237_s3 + $0x178] sm:$0xff] %v487_v9 }

// kernel: seq2seq_forward.7
= control target key start
LH: loop header
LB: loop body
LE: loop exit
PB: predicated region body
PF: predicated region fallthrough
CT: control target
= control target key end

     0   :  { %s1201_s24 = smov 0   ;;  %s1571_s0 = inlined_call_operand.vmem [shape: f32[8,8,384], index: 0, kind: input, shape index: {}]   ;;  %s1572_s1 = inlined_call_operand.vmem [shape: f32[8,8,384], index: 1, kind: input, shape index: {}]   ;;  %s1573_s2 = inlined_call_operand.vmem [shape: f32[128,384], index: 2, kind: input, shape index: {}]   ;;  %s1574_s3 = inlined_call_operand.vmem [shape: f32[1,384], index: 3, kind: input, shape index: {}]   ;;  %s1575_s4 = inlined_call_operand.vmem [shape: f32[128,384], index: 4, kind: input, shape index: {}]   ;;  %s1576_s5 = inlined_call_operand.vmem [shape: f32[1,384], index: 5, kind: input, shape index: {}]   ;;  %s1577_s6 = inlined_call_operand.vmem [shape: f32[8,8,128], index: 6, kind: output, shape index: {0}]   ;;  %s1578_s7 = inlined_call_operand.vmem [shape: f32[8,8,128], index: 7, kind: output, shape index: {1}]  }
   0x1 LB: > { %s883_s25 = sadd.s32 4294967295, %s1155_s24   ;;  %p887_p0 = scmp.ge.s32.totalorder %s1155_s24, 1  ;;  %s1155_s24 = sphi %s1201_s24, %s18_s24  }
   0x2   : > { %p254_p1 = scmp.lt.s32.totalorder %s1155_s24, 9 }
   0x4   : > { %p255_p2 = pnand %p887_p0, %p254_p1 }
   0x5   : > { %p295_p3 = scmp.lt.s32.totalorder (!%p255_p2), %s883_s25, 7  ;;  %s300_s26 = ssub.s32 (!%p255_p2), 7, %s883_s25 }
   0x6   : > { %258 = sbr.rel (%p255_p2) target bundleno = 350 (0x15e), region = 44  ;;  %p301_p4 = scmp.lt.s32.totalorder (!%p255_p2), %s300_s26, 7 }
   0x7   : > { %p892_p5 = scmp.ne.s32.totalorder (!%p255_p2), %s883_s25, 0 }
   0xd   : > { %s296_s27 = scalar_select %p295_p3, %s883_s25, 7 }
   0xe   : > { %s1580_s26 = smov (!%p301_p4, %s300_s26), 7  ;;  %318 = sbr.rel (%p892_p5) target bundleno = 21 (0x15), region = 48 }
   0xf   : > { %s1115_s28 = smul.u32 24, %s296_s27  ;;  %s890_s29 = sshll.u32 %s296_s27, 3  ;;  %v1157_v0 = vmov (!%p892_p5), 0.0  }
  0x10   : > { %s1116_s30 = smul.u32 24, %s1580_s26  ;;  %s1212_s10 = scalar_lea.vmem %s1577_s6, %s890_s29  ;;  %319 = vst [vmem:[#allocation2] sm:$0xff] (!%p892_p5), %v1157_v0  ;;  %320 = vst [vmem:[#allocation3] sm:$0xff] (!%p892_p5), %v1157_v0 }
  0x11   : > { %s1217_s13 = scalar_lea.vmem %s1571_s0, %s1115_s28  ;;  %s1222_s16 = scalar_lea.vmem %s1578_s7, %s890_s29 }
  0x12   : > { %s1227_s19 = scalar_lea.vmem %s1572_s1, %s1116_s30 }
  0x15 PF: > { %v326_v1 = vld [vmem:[%s1573_s2 + $0x8] sm:$0xff]  ;;  %v329_v2 = vld [vmem:[%s1573_s2 + $0x20] sm:$0xff]  ;;  %v328_v5 = vld [vmem:[%s1573_s2 + $0x18] sm:$0xff]  ;;  %v1158_v8 = vmov 0.0|0.0   ;;  %v1159_v9 = vmov 0.0   ;;  %vm1160_vm0 = vmmov 0  }
  0x16   : > { %v325_v3 = vld [vmem:[%s1573_s2] sm:$0xff]  ;;  %v1003_v4 = vpack.c.bf16 %v329_v2, %v326_v1  ;;  %v332_v6 = vld [vmem:[%s1573_s2 + $0x38] sm:$0xff]  ;;  %v335_v7 = vld [vmem:[%s1573_s2 + $0x50] sm:$0xff]  ;;  %1035 = vmatprep.subr.bf16.mxu1 %v1158_v8  ;;  %454 = vmatprep.mubr.f32.mxu0 %v1159_v9 }
  0x17   : > { %v1005_v10 = vpack.c.bf16 %v328_v5, %v325_v3  ;;  %v1007_v11 = vpack.c.bf16 %v335_v7, %v332_v6  ;;  %v331_v12 = vld [vmem:[%s1573_s2 + $0x30] sm:$0xff]  ;;  %v334_v13 = vld [vmem:[%s1573_s2 + $0x48] sm:$0xff]  ;;  %965 = vmatprep.mubr.msk.f32.mxu1 %vm1160_vm0, %v1159_v9  ;;  %v341_v15 = vld [vmem:[%s1573_s2 + $0x80] sm:$0xff] }
  0x18   : > { %v338_v14 = vld [vmem:[%s1573_s2 + $0x68] sm:$0xff]  ;;  %1004 = vmatprep.subr.bf16.mxu0 %v1003_v4  ;;  %v1009_v16 = vpack.c.bf16 %v334_v13, %v331_v12  ;;  %v337_v18 = vld [vmem:[%s1573_s2 + $0x60] sm:$0xff]  ;;  %v340_v19 = vld [vmem:[%s1573_s2 + $0x78] sm:$0xff] }
  0x19   : > { %1006 = vmatpush1.bf16.msra.mxu0 %v1005_v10  ;;  %v1011_v17 = vpack.c.bf16 %v341_v15, %v338_v14  ;;  %v344_v20 = vld [vmem:[%s1573_s2 + $0x98] sm:$0xff]  ;;  %v347_v21 = vld [vmem:[%s1573_s2 + $0xb0] sm:$0xff]  ;;  %v1013_v22 = vpack.c.bf16 %v340_v19, %v337_v18  ;;  %v346_v25 = vld [vmem:[%s1573_s2 + $0xa8] sm:$0xff] }
  0x1a   : > { %1008 = vmatprep.subr.bf16.mxu0 %v1007_v11  ;;  %v1015_v23 = vpack.c.bf16 %v347_v21, %v344_v20  ;;  %v343_v24 = vld [vmem:[%s1573_s2 + $0x90] sm:$0xff]  ;;  %v350_v26 = vld [vmem:[%s1573_s2 + $0xc8] sm:$0xff]  ;;  %v353_v27 = vld [vmem:[%s1573_s2 + $0xe0] sm:$0xff] }
  0x1b   : > { %v327_v28 = vld [vmem:[%s1573_s2 + $0x10] sm:$0xff]  ;;  %v330_v29 = vld [vmem:[%s1573_s2 + $0x28] sm:$0xff]  ;;  %v333_v31 = vld [vmem:[%s1573_s2 + $0x40] sm:$0xff]  ;;  %v1017_v32 = vpack.c.bf16 %v346_v25, %v343_v24  ;;  %v1019_v34 = vpack.c.bf16 %v353_v27, %v350_v26 }
  0x1c   : > { %v1036_v30 = vpack.c.bf16 %v330_v29, %v327_v28  ;;  %v336_v33 = vld [vmem:[%s1573_s2 + $0x58] sm:$0xff]  ;;  %v349_v35 = vld [vmem:[%s1573_s2 + $0xc0] sm:$0xff]  ;;  %v359_v39 = vld [vmem:[%s1573_s2 + $0x110] sm:$0xff] }
  0x1d   : > { %1010 = vmatpush1.bf16.msra.mxu0 %v1009_v16  ;;  %v352_v36 = vld [vmem:[%s1573_s2 + $0xd8] sm:$0xff]  ;;  %v1039_v38 = vpack.c.bf16 %v336_v33, %v333_v31  ;;  %v339_v40 = vld [vmem:[%s1573_s2 + $0x70] sm:$0xff]  ;;  %v342_v41 = vld [vmem:[%s1573_s2 + $0x88] sm:$0xff] }
  0x1e   : > { %1012 = vmatprep.subr.bf16.mxu0 %v1011_v17  ;;  %v356_v37 = vld [vmem:[%s1573_s2 + $0xf8] sm:$0xff]  ;;  %1037 = vmatpush3.bf16.msra.mxu1 %v1036_v30  ;;  %v1021_v42 = vpack.c.bf16 %v352_v36, %v349_v35  ;;  %v355_v44 = vld [vmem:[%s1573_s2 + $0xf0] sm:$0xff]  ;;  %v358_v45 = vld [vmem:[%s1573_s2 + $0x108] sm:$0xff]  ;;  %v1042_v47 = vpack.c.bf16 %v342_v41, %v339_v40 }
  0x1f   : > { %1038 = vmatprep.subr.bf16.mxu1 %v1158_v8  ;;  %v1023_v43 = vpack.c.bf16 %v359_v39, %v356_v37  ;;  %v362_v46 = vld [vmem:[%s1573_s2 + $0x128] sm:$0xff]  ;;  %v365_v48 = vld [vmem:[%s1573_s2 + $0x140] sm:$0xff]  ;;  %v348_v50 = vld [vmem:[%s1573_s2 + $0xb8] sm:$0xff]  ;;  %v1025_v51 = vpack.c.bf16 %v358_v45, %v355_v44 }
  0x20   : > { %v345_v49 = vld [vmem:[%s1573_s2 + $0xa0] sm:$0xff]  ;;  %v1027_v52 = vpack.c.bf16 %v365_v48, %v362_v46  ;;  %v364_v54 = vld [vmem:[%s1573_s2 + $0x138] sm:$0xff]  ;;  %v371_v57 = vld [vmem:[%s1573_s2 + $0x170] sm:$0xff] }
  0x21   : > { %1014 = vmatpush1.bf16.msra.mxu0 %v1013_v22  ;;  %v361_v53 = vld [vmem:[%s1573_s2 + $0x120] sm:$0xff]  ;;  %v368_v55 = vld [vmem:[%s1573_s2 + $0x158] sm:$0xff]  ;;  %v1045_v56 = vpack.c.bf16 %v348_v50, %v345_v49  ;;  %v351_v58 = vld [vmem:[%s1573_s2 + $0xd0] sm:$0xff] }
  0x22   : > { %1016 = vmatprep.subr.bf16.mxu0 %v1015_v23  ;;  %1040 = vmatpush3.bf16.msra.mxu1 %v1039_v38  ;;  %v354_v59 = vld [vmem:[%s1573_s2 + $0xe8] sm:$0xff]  ;;  %v1029_v60 = vpack.c.bf16 %v364_v54, %v361_v53  ;;  %v1031_v61 = vpack.c.bf16 %v371_v57, %v368_v55  ;;  %v367_v62 = vld [vmem:[%s1573_s2 + $0x150] sm:$0xff]  ;;  %v560_v2 = vld [vmem:[%s1575_s4 + $0x20] sm:$0xff] }
  0x23   : > { %1041 = vmatprep.subr.bf16.mxu1 %v1158_v8  ;;  %v370_v63 = vld [vmem:[%s1573_s2 + $0x168] sm:$0xff]  ;;  %v1048_v1 = vpack.c.bf16 %v354_v59, %v351_v58  ;;  %v357_v3 = vld [vmem:[%s1573_s2 + $0x100] sm:$0xff]  ;;  %v360_v4 = vld [vmem:[%s1573_s2 + $0x118] sm:$0xff] }
  0x24   : > { %v557_v0 = vld [vmem:[%s1575_s4 + $0x8] sm:$0xff]  ;;  %v1033_v5 = vpack.c.bf16 %v370_v63, %v367_v62  ;;  %v556_v7 = vld [vmem:[%s1575_s4] sm:$0xff]  ;;  %v559_v10 = vld [vmem:[%s1575_s4 + $0x18] sm:$0xff]  ;;  %v1051_v12 = vpack.c.bf16 %v360_v4, %v357_v3 }
  0x25   : > { %1018 = vmatpush1.bf16.msra.mxu0 %v1017_v32  ;;  %v1059_v6 = vpack.c.bf16 %v560_v2, %v557_v0  ;;  %v563_v11 = vld [vmem:[%s1575_s4 + $0x38] sm:$0xff]  ;;  %v566_v13 = vld [vmem:[%s1575_s4 + $0x50] sm:$0xff]  ;;  %v366_v15 = vld [vmem:[%s1573_s2 + $0x148] sm:$0xff]  ;;  %v1061_v17 = vpack.c.bf16 %v559_v10, %v556_v7 }
  0x26   : > { %1020 = vmatprep.subr.bf16.mxu0 %v1019_v34  ;;  %1043 = vmatpush3.bf16.msra.mxu1 %v1042_v47  ;;  %v363_v14 = vld [vmem:[%s1573_s2 + $0x130] sm:$0xff]  ;;  %v1394_v16 = vld [vmem:[#allocation2] sm:$0xff]  ;;  %v1063_v18 = vpack.c.bf16 %v566_v13, %v563_v11  ;;  %v565_v20 = vld [vmem:[%s1575_s4 + $0x48] sm:$0xff] }
  0x27   : > { %1044 = vmatprep.subr.bf16.mxu1 %v1158_v8  ;;  %v562_v19 = vld [vmem:[%s1575_s4 + $0x30] sm:$0xff]  ;;  %v569_v21 = vld [vmem:[%s1575_s4 + $0x68] sm:$0xff]  ;;  %v1054_v22 = vpack.c.bf16 %v366_v15, %v363_v14  ;;  %v572_v23 = vld [vmem:[%s1575_s4 + $0x80] sm:$0xff] }
  0x28   : > { %v369_v24 = vld [vmem:[%s1573_s2 + $0x160] sm:$0xff]  ;;  %v372_v25 = vld [vmem:[%s1573_s2 + $0x178] sm:$0xff]  ;;  %v1065_v26 = vpack.c.bf16 %v565_v20, %v562_v19  ;;  %v1067_v27 = vpack.c.bf16 %v572_v23, %v569_v21  ;;  %v578_v32 = vld [vmem:[%s1575_s4 + $0xb0] sm:$0xff] }
  0x29   : > { %1022 = vmatpush1.bf16.msra.mxu0 %v1021_v42  ;;  %v568_v28 = vld [vmem:[%s1575_s4 + $0x60] sm:$0xff]  ;;  %v571_v29 = vld [vmem:[%s1575_s4 + $0x78] sm:$0xff]  ;;  %v1057_v31 = vpack.c.bf16 %v372_v25, %v369_v24  ;;  %v558_v33 = vld [vmem:[%s1575_s4 + $0x10] sm:$0xff]  ;;  %v375_v25 = vlaneseq }
  0x2a   : > { %1024 = vmatprep.subr.bf16.mxu0 %v1023_v43  ;;  %1046 = vmatpush3.bf16.msra.mxu1 %v1045_v56  ;;  %v575_v30 = vld [vmem:[%s1575_s4 + $0x98] sm:$0xff]  ;;  %v561_v34 = vld [vmem:[%s1575_s4 + $0x28] sm:$0xff]  ;;  %v1069_v35 = vpack.c.bf16 %v571_v29, %v568_v28  ;;  %v574_v37 = vld [vmem:[%s1575_s4 + $0x90] sm:$0xff] }
  0x2b   : > { %1047 = vmatprep.subr.bf16.mxu1 %v1158_v8  ;;  %v1071_v36 = vpack.c.bf16 %v578_v32, %v575_v30  ;;  %v577_v38 = vld [vmem:[%s1575_s4 + $0xa8] sm:$0xff]  ;;  %v1092_v40 = vpack.c.bf16 %v561_v34, %v558_v33  ;;  %v584_v41 = vld [vmem:[%s1575_s4 + $0xe0] sm:$0xff]  ;;  %v567_v43 = vld [vmem:[%s1575_s4 + $0x58] sm:$0xff] }
  0x2c   : > { %v581_v39 = vld [vmem:[%s1575_s4 + $0xc8] sm:$0xff]  ;;  %v564_v42 = vld [vmem:[%s1575_s4 + $0x40] sm:$0xff]  ;;  %v1073_v44 = vpack.c.bf16 %v577_v38, %v574_v37  ;;  %v583_v47 = vld [vmem:[%s1575_s4 + $0xd8] sm:$0xff] }
  0x2d   : > { %1026 = vmatpush1.bf16.msra.mxu0 %v1025_v51  ;;  %v1075_v45 = vpack.c.bf16 %v584_v41, %v581_v39  ;;  %v580_v46 = vld [vmem:[%s1575_s4 + $0xc0] sm:$0xff]  ;;  %v587_v48 = vld [vmem:[%s1575_s4 + $0xf8] sm:$0xff]  ;;  %v1095_v49 = vpack.c.bf16 %v567_v43, %v564_v42  ;;  %v590_v50 = vld [vmem:[%s1575_s4 + $0x110] sm:$0xff] }
  0x2e   : > { %1028 = vmatprep.subr.bf16.mxu0 %v1027_v52  ;;  %1049 = vmatpush3.bf16.msra.mxu1 %v1048_v1  ;;  %v570_v51 = vld [vmem:[%s1575_s4 + $0x70] sm:$0xff]  ;;  %v573_v52 = vld [vmem:[%s1575_s4 + $0x88] sm:$0xff]  ;;  %v1077_v53 = vpack.c.bf16 %v583_v47, %v580_v46  ;;  %v1079_v54 = vpack.c.bf16 %v590_v50, %v587_v48  ;;  %v576_v59 = vld [vmem:[%s1575_s4 + $0xa0] sm:$0xff] }
  0x2f   : > { %1050 = vmatprep.subr.bf16.mxu1 %v1158_v8  ;;  %v586_v55 = vld [vmem:[%s1575_s4 + $0xf0] sm:$0xff]  ;;  %v589_v56 = vld [vmem:[%s1575_s4 + $0x108] sm:$0xff]  ;;  %v1098_v58 = vpack.c.bf16 %v573_v52, %v570_v51  ;;  %v592_v63 = vld [vmem:[%s1575_s4 + $0x120] sm:$0xff] }
  0x30   : > { %v593_v57 = vld [vmem:[%s1575_s4 + $0x128] sm:$0xff]  ;;  %v595_v0 = vld [vmem:[%s1575_s4 + $0x138] sm:$0xff]  ;;  %v602_v3 = vld [vmem:[%s1575_s4 + $0x170] sm:$0xff] }
  0x31   : > { %1030 = vmatpush1.bf16.msra.mxu0 %v1029_v60  ;;  %v579_v60 = vld [vmem:[%s1575_s4 + $0xb8] sm:$0xff]  ;;  %v582_v4 = vld [vmem:[%s1575_s4 + $0xd0] sm:$0xff]  ;;  %v601_v11 = vld [vmem:[%s1575_s4 + $0x168] sm:$0xff] }
  0x32   : > { %1032 = vmatprep.subr.bf16.mxu0 %v1031_v61  ;;  %1052 = vmatpush3.bf16.msra.mxu1 %v1051_v12  ;;  %v1081_v61 = vpack.c.bf16 %v589_v56, %v586_v55  ;;  %v599_v1 = vld [vmem:[%s1575_s4 + $0x158] sm:$0xff]  ;;  %v1101_v2 = vpack.c.bf16 %v579_v60, %v576_v59  ;;  %v598_v10 = vld [vmem:[%s1575_s4 + $0x150] sm:$0xff]  ;;  %v588_v13 = vld [vmem:[%s1575_s4 + $0x100] sm:$0xff] }
  0x33   : > { %1053 = vmatprep.subr.bf16.mxu1 %v1158_v8  ;;  %v1087_v7 = vpack.c.bf16 %v602_v3, %v599_v1  ;;  %v591_v14 = vld [vmem:[%s1575_s4 + $0x118] sm:$0xff]  ;;  %v1089_v15 = vpack.c.bf16 %v601_v11, %v598_v10  ;;  %v597_v19 = vld [vmem:[%s1575_s4 + $0x148] sm:$0xff]  ;;  %v373_v28 = vld [vmem:[%s1574_s3] sm:$0x7] }
  0x34   : > { %v1535_v20 = vld [vmem:[#allocation3] sm:$0xff]  ;;  %v603_v23 = vld [vmem:[%s1575_s4 + $0x178] sm:$0xff]  ;;  %v321_v32 = vld [vmem:[%s1217_s13] sm:$0xff] }
  0x35   : > { %1034 = vmatpush1.bf16.msra.mxu0 %v1033_v5  ;;  %v585_v5 = vld [vmem:[%s1575_s4 + $0xe8] sm:$0xff]  ;;  %v604_v48 = vld [vmem:[%s1576_s5] sm:$0x7] }
  0x36   : > { %1060 = vmatprep.subr.bf16.mxu0 %v1059_v6  ;;  %1055 = vmatpush3.bf16.msra.mxu1 %v1054_v22  ;;  %v1085_v6 = vpack.c.bf16 %v595_v0, %v592_v63  ;;  %v1104_v12 = vpack.c.bf16 %v585_v5, %v582_v4  ;;  %v600_v22 = vld [vmem:[%s1575_s4 + $0x160] sm:$0xff]  ;;  %v322_v37 = vld [vmem:[%s1217_s13 + $0x8] sm:$0xff] }
  0x37   : > { %1056 = vmatprep.subr.bf16.mxu1 %v1158_v8  ;;  %v1113_v24 = vpack.c.bf16 %v603_v23, %v600_v22  ;;  %v552_v56 = vld [vmem:[%s1227_s19] sm:$0xff] }
  0x38   : > { %455 = vmatmul.mubr.f32.vlgmr.msra.gmra.mrb[0].mxu0 %v1394_v16 }
  0x39   : > { %1062 = vmatpush1.bf16.msra.mxu0 %v1061_v17  ;;  %685 = vmatprep.mubr.f32.mxu0 %v1159_v9  ;;  %v1107_v17 = vpack.c.bf16 %v591_v14, %v588_v13 }
  0x3a   : > { %1064 = vmatprep.subr.bf16.mxu0 %v1063_v18  ;;  %1058 = vmatpush3.bf16.msra.mxu1 %v1057_v31  ;;  %v594_v18 = vld [vmem:[%s1575_s4 + $0x130] sm:$0xff] }
  0x3b   : > { %1091 = vmatprep.subr.bf16.mxu1 %v1158_v8  ;;  %v1110_v21 = vpack.c.bf16 %v597_v19, %v594_v18 }
  0x3d   : > { %1066 = vmatpush1.bf16.msra.mxu0 %v1065_v26  ;;  %966 = vmatmul.mubr.f32.vlgmr.msra.gmra.mrb[0].mxu1 %v1394_v16  ;;  %v1547_v26 = vshrl.u32 %v375_v25, 7 }
  0x3e   : > { %1068 = vmatprep.subr.bf16.mxu0 %v1067_v27  ;;  %1093 = vmatpush3.bf16.msra.mxu1 %v1092_v40 }
  0x3f   : > { %1094 = vmatprep.subr.bf16.mxu1 %v1158_v8  ;;  %1000 = vmatprep.mubr.msk.f32.mxu1 %vm1160_vm0, %v1159_v9  ;;  %v596_v9 = vld [vmem:[%s1575_s4 + $0x140] sm:$0xff]  ;;  %v377_v27 = vsub.s32 0, %v1547_v26  ;;  %v381_v29 = vsub.s32 1, %v1547_v26 }
  0x40   : > { %v1083_v62 = vpack.c.bf16 %v596_v9, %v593_v57 }
  0x41   : > { %1070 = vmatpush1.bf16.msra.mxu0 %v1069_v35  ;;  %v378_v30 = vrot.slane %v373_v28, %v377_v27  ;;  %v382_v31 = vrot.slane %v373_v28, %v381_v29  ;;  %v609_v51 = vrot.slane %v604_v48, %v377_v27 }
  0x42   : > { %1072 = vmatprep.subr.bf16.mxu0 %v1071_v36  ;;  %1096 = vmatpush3.bf16.msra.mxu1 %v1095_v49 }
  0x43   : > { %1097 = vmatprep.subr.bf16.mxu1 %v1158_v8 }
  0x45   : > { %1074 = vmatpush1.bf16.msra.mxu0 %v1073_v44 }
  0x46   : > { %1076 = vmatprep.subr.bf16.mxu0 %v1075_v45  ;;  %1099 = vmatpush3.bf16.msra.mxu1 %v1098_v58  ;;  %v385_v45 = vsub.s32 2, %v1547_v26 }
  0x47   : > { %1100 = vmatprep.subr.bf16.mxu1 %v1158_v8 }
  0x48   : > { %v386_v46 = vrot.slane %v373_v28, %v385_v45  ;;  %v617_v14 = vrot.slane %v604_v48, %v385_v45 }
  0x49   : > { %1078 = vmatpush1.bf16.msra.mxu0 %v1077_v53  ;;  %v323_v53 = vld [vmem:[%s1217_s13 + $0x10] sm:$0xff] }
  0x4a   : > { %1080 = vmatprep.subr.bf16.mxu0 %v1079_v54  ;;  %1102 = vmatpush3.bf16.msra.mxu1 %v1101_v2  ;;  %v613_v54 = vrot.slane %v604_v48, %v381_v29 }
  0x4b   : > { %1103 = vmatprep.subr.bf16.mxu1 %v1158_v8 }
  0x4d   : > { %1082 = vmatpush1.bf16.msra.mxu0 %v1081_v61 }
  0x4e   : > { %1084 = vmatprep.subr.bf16.mxu0 %v1083_v62  ;;  %1105 = vmatpush3.bf16.msra.mxu1 %v1104_v12  ;;  %v553_v62 = vld [vmem:[%s1227_s19 + $0x8] sm:$0xff] }
  0x4f   : > { %1106 = vmatprep.subr.bf16.mxu1 %v1158_v8 }
  0x51   : > { %1086 = vmatpush1.bf16.msra.mxu0 %v1085_v6 }
  0x52   : > { %1088 = vmatprep.subr.bf16.mxu0 %v1087_v7  ;;  %1108 = vmatpush3.bf16.msra.mxu1 %v1107_v17 }
  0x53   : > { %1109 = vmatprep.subr.bf16.mxu1 %v1158_v8 }
  0x55   : > { %1090 = vmatpush1.bf16.msra.mxu0 %v1089_v15 }
  0x56   : > { %1111 = vmatpush3.bf16.msra.mxu1 %v1110_v21  ;;  %v554_v21 = vld [vmem:[%s1227_s19 + $0x10] sm:$0xff] }
  0x57   : > { %1112 = vmatprep.subr.bf16.mxu1 %v1158_v8 }
  0x58   : > { %686 = vmatmul.mubr.f32.vlgmr.msra.gmra.mrb[2].mxu0 %v1535_v20 }
  0x5a   : > { %1114 = vmatpush3.bf16.msra.mxu1 %v1113_v24 }
  0x5d   : > { %1001 = vmatmul.mubr.f32.vlgmr.msra.gmra.mrb[2].mxu1 %v1535_v20 }
 0x10b   : > { %v456_v33 = vpop.f32.mrb[0].mxu0 }
 0x10c   : > { %v457_v8 = vadd.f32 %v456_v33, %v378_v30  ;;  %v458_v34 = vpop.f32.mrb[1].mxu0 }
 0x10d   : > { %v459_v35 = vadd.f32 %v458_v34, %v382_v31 }
 0x10e   : > { %v531_v36 = vadd.f32 %v457_v8, %v321_v32 }
 0x10f   : > { %v538_v39 = vadd.f32 %v459_v35, %v322_v37 }
 0x110   : > { %v893_v38 = vmul.f32 -1.442695, %v531_v36  ;;  %v527_v40 = vpop.f32.mrb[0].mxu1 }
 0x111   : > { %v894_v41 = vmul.f32 -1.442695, %v538_v39  ;;  %v967_v42 = vpop.f32.mrb[1].mxu1  ;;  %v528_v50 = vadd.f32 %v527_v40, %v386_v46 }
 0x112   : > { %1129 = vpow2.f32 %v893_v38 }
 0x113   : > { %1131 = vpow2.f32 %v894_v41 }
 0x11c   : > { %v1130_v43 = vpop.eup %1129 }
 0x11d   : > { %v535_v44 = vadd.f32 1.0, %v1130_v43  ;;  %v1132_v47 = vpop.eup %1131 }
 0x11e   : > { %v542_v49 = vadd.f32 1.0, %v1132_v47 }
 0x11f   : > { %1133 = vrcp.f32 %v535_v44 }
 0x120   : > { %1135 = vrcp.f32 %v542_v49 }
 0x129   : > { %v1134_v52 = vpop.eup %1133 }
 0x12a   : > { %v545_v55 = vmul.f32 %v1134_v52, %v528_v50  ;;  %v1136_v1 = vpop.eup %1135 }
 0x12b   : > { %v687_v57 = vpop.f32.mrb[2].mxu0  ;;  %v548_v5 = vsub.f32 1.0, %v1136_v1  ;;  %v550_v7 = vmul.f32 %v1136_v1, %v1394_v16 }
 0x12c   : > { %v546_v58 = vadd.f32 %v545_v55, %v323_v53  ;;  %v688_v9 = vadd.f32 %v687_v57, %v609_v51  ;;  %v689_v59 = vpop.f32.mrb[3].mxu0 }
 0x12d   : > { %v690_v60 = vadd.f32 %v689_v59, %v613_v54 }
 0x12e   : > { %1137 = vtanh.f32 %v546_v58  ;;  %v762_v61 = vadd.f32 %v688_v9, %v552_v56 }
 0x12f   : > { %v769_v0 = vadd.f32 %v690_v60, %v553_v62 }
 0x130   : > { %v895_v63 = vmul.f32 -1.442695, %v762_v61  ;;  %v758_v2 = vpop.f32.mrb[2].mxu1 }
 0x131   : > { %v896_v3 = vmul.f32 -1.442695, %v769_v0  ;;  %v1002_v4 = vpop.f32.mrb[3].mxu1  ;;  %v759_v18 = vadd.f32 %v758_v2, %v617_v14 }
 0x132   : > { %1139 = vpow2.f32 %v895_v63 }
 0x133   : > { %1141 = vpow2.f32 %v896_v3 }
 0x138   : > { %v1138_v6 = vpop.eup %1137 }
 0x139   : > { %v549_v10 = vmul.f32 %v1138_v6, %v548_v5 }
 0x13b   : > { %v551_v11 = vadd.f32 %v550_v7, %v549_v10 }
 0x13c   : > { %v1140_v12 = vpop.eup %1139 }
 0x13d   : > { %783 = vst [vmem:[#allocation2] sm:$0xff] %v551_v11  ;;  %785 = vst [vmem:[%s1212_s10] sm:$0xff] %v551_v11  ;;  %v766_v13 = vadd.f32 1.0, %v1140_v12  ;;  %v1142_v15 = vpop.eup %1141 }
 0x13e   : > { %v773_v17 = vadd.f32 1.0, %v1142_v15 }
 0x13f   : > { %1143 = vrcp.f32 %v766_v13 }
 0x140   : > { %1145 = vrcp.f32 %v773_v17 }
 0x149   : > { %v1144_v19 = vpop.eup %1143 }
 0x14a   : > { %v776_v22 = vmul.f32 %v1144_v19, %v759_v18  ;;  %v1146_v16 = vpop.eup %1145 }
 0x14b   : > { %v779_v24 = vsub.f32 1.0, %v1146_v16  ;;  %v781_v26 = vmul.f32 %v1146_v16, %v1535_v20 }
 0x14c   : > { %v777_v23 = vadd.f32 %v776_v22, %v554_v21 }
 0x14e   : > { %1147 = vtanh.f32 %v777_v23 }
 0x158   : > { %v1148_v25 = vpop.eup %1147 }
 0x159   : > { %v780_v27 = vmul.f32 %v1148_v25, %v779_v24 }
 0x15b   : > { %v782_v28 = vadd.f32 %v781_v26, %v780_v27 }
 0x15d   : > { %784 = vst [vmem:[#allocation3] sm:$0xff] %v782_v28  ;;  %786 = vst [vmem:[%s1222_s16] sm:$0xff] %v782_v28 }
 0x15e PF: > { %s18_s24 = sadd.s32 1, %s1155_s24  }
 0x15f   : > { %p15_p6 = scmp.ge.s32.totalorder %s18_s24, 10  }
 0x161   :  { %17 = sbr.rel (!%p15_p6) target bundleno = 1 (0x1), region = 93 }

// kernel: seq2seq_forward.9
= control target key start
LH: loop header
LB: loop body
LE: loop exit
PB: predicated region body
PF: predicated region fallthrough
CT: control target
= control target key end

     0   :  { %s482_s1 = inlined_call_operand.vmem [shape: f32[256,128], index: 1, kind: input, shape index: {}]   ;;  %s483_s0 = inlined_call_operand.vmem [shape: f32[64,256], index: 0, kind: input, shape index: {}]   ;;  %s484_s2 = inlined_call_operand.vmem [shape: f32[1,128], index: 2, kind: input, shape index: {}]   ;;  %s485_s3 = inlined_call_operand.vmem [shape: f32[64,128], index: 3, kind: output, shape index: {}]  }
   0x1   :  { %v46_v0 = vld [vmem:[%s482_s1 + $0x80] sm:$0xff]  ;;  %v47_v1 = vld [vmem:[%s482_s1 + $0x88] sm:$0xff]  ;;  %v48_v5 = vld [vmem:[%s482_s1 + $0x90] sm:$0xff] }
   0x2   :  { %v30_v2 = vld [vmem:[%s482_s1] sm:$0xff]  ;;  %v243_v3 = vpack.c.bf16 %v47_v1, %v46_v0  ;;  %v31_v4 = vld [vmem:[%s482_s1 + $0x8] sm:$0xff]  ;;  %v49_v6 = vld [vmem:[%s482_s1 + $0x98] sm:$0xff] }
   0x3   :  { %v245_v7 = vpack.c.bf16 %v31_v4, %v30_v2  ;;  %v247_v8 = vpack.c.bf16 %v49_v6, %v48_v5  ;;  %v32_v9 = vld [vmem:[%s482_s1 + $0x10] sm:$0xff]  ;;  %v33_v10 = vld [vmem:[%s482_s1 + $0x18] sm:$0xff]  ;;  %v50_v11 = vld [vmem:[%s482_s1 + $0xa0] sm:$0xff] }
   0x4   :  { %244 = vmatprep.subr.bf16.mxu0 %v243_v3  ;;  %275 = vmatprep.subr.bf16.mxu1 %v243_v3  ;;  %v51_v12 = vld [vmem:[%s482_s1 + $0xa8] sm:$0xff]  ;;  %v249_v13 = vpack.c.bf16 %v33_v10, %v32_v9  ;;  %v34_v15 = vld [vmem:[%s482_s1 + $0x20] sm:$0xff]  ;;  %v52_v17 = vld [vmem:[%s482_s1 + $0xb0] sm:$0xff] }
   0x5   :  { %246 = vmatpush3.bf16.msra.mxu0 %v245_v7  ;;  %283 = vmatpush3.bf16.msra.mxu1 %v245_v7  ;;  %v251_v14 = vpack.c.bf16 %v51_v12, %v50_v11  ;;  %v35_v16 = vld [vmem:[%s482_s1 + $0x28] sm:$0xff]  ;;  %v53_v18 = vld [vmem:[%s482_s1 + $0xb8] sm:$0xff]  ;;  %v36_v21 = vld [vmem:[%s482_s1 + $0x30] sm:$0xff] }
   0x6   :  { %248 = vmatprep.subr.bf16.mxu0 %v247_v8  ;;  %276 = vmatprep.subr.bf16.mxu1 %v247_v8  ;;  %v253_v19 = vpack.c.bf16 %v35_v16, %v34_v15  ;;  %v255_v20 = vpack.c.bf16 %v53_v18, %v52_v17  ;;  %v37_v22 = vld [vmem:[%s482_s1 + $0x38] sm:$0xff]  ;;  %v54_v23 = vld [vmem:[%s482_s1 + $0xc0] sm:$0xff]  ;;  %v55_v24 = vld [vmem:[%s482_s1 + $0xc8] sm:$0xff] }
   0x7   :  { %v15_v25 = vld [vmem:[%s483_s0 + $0x8] sm:$0xff]  ;;  %v257_v27 = vpack.c.bf16 %v37_v22, %v36_v21  ;;  %v259_v28 = vpack.c.bf16 %v55_v24, %v54_v23  ;;  %v38_v29 = vld [vmem:[%s482_s1 + $0x40] sm:$0xff]  ;;  %v56_v31 = vld [vmem:[%s482_s1 + $0xd0] sm:$0xff] }
   0x8   :  { %133 = vmatprep.mubr.f32.mxu0 %v15_v25  ;;  %v23_v26 = vld [vmem:[%s483_s0 + $0x48] sm:$0xff]  ;;  %v57_v32 = vld [vmem:[%s482_s1 + $0xd8] sm:$0xff]  ;;  %v40_v35 = vld [vmem:[%s482_s1 + $0x50] sm:$0xff] }
   0x9   :  { %250 = vmatpush3.bf16.msra.mxu0 %v249_v13  ;;  %284 = vmatpush3.bf16.msra.mxu1 %v249_v13  ;;  %v39_v30 = vld [vmem:[%s482_s1 + $0x48] sm:$0xff]  ;;  %v263_v34 = vpack.c.bf16 %v57_v32, %v56_v31  ;;  %v41_v36 = vld [vmem:[%s482_s1 + $0x58] sm:$0xff]  ;;  %v58_v37 = vld [vmem:[%s482_s1 + $0xe0] sm:$0xff] }
   0xa   :  { %252 = vmatprep.subr.bf16.mxu0 %v251_v14  ;;  %277 = vmatprep.subr.bf16.mxu1 %v251_v14  ;;  %v261_v33 = vpack.c.bf16 %v39_v30, %v38_v29  ;;  %v59_v38 = vld [vmem:[%s482_s1 + $0xe8] sm:$0xff]  ;;  %v265_v39 = vpack.c.bf16 %v41_v36, %v40_v35  ;;  %v42_v41 = vld [vmem:[%s482_s1 + $0x60] sm:$0xff]  ;;  %v60_v43 = vld [vmem:[%s482_s1 + $0xf0] sm:$0xff] }
   0xb   :  { %153 = vmatprep.mubr.f32.mxu1 %v23_v26  ;;  %v267_v40 = vpack.c.bf16 %v59_v38, %v58_v37  ;;  %v43_v42 = vld [vmem:[%s482_s1 + $0x68] sm:$0xff]  ;;  %v61_v44 = vld [vmem:[%s482_s1 + $0xf8] sm:$0xff]  ;;  %v44_v47 = vld [vmem:[%s482_s1 + $0x70] sm:$0xff] }
   0xc   :  { %v269_v45 = vpack.c.bf16 %v43_v42, %v42_v41  ;;  %v271_v46 = vpack.c.bf16 %v61_v44, %v60_v43  ;;  %v45_v48 = vld [vmem:[%s482_s1 + $0x78] sm:$0xff]  ;;  %v14_v50 = vld [vmem:[%s483_s0] sm:$0xff]  ;;  %v16_v54 = vld [vmem:[%s483_s0 + $0x10] sm:$0xff] }
   0xd   :  { %254 = vmatpush3.bf16.msra.mxu0 %v253_v19  ;;  %285 = vmatpush3.bf16.msra.mxu1 %v253_v19  ;;  %v273_v49 = vpack.c.bf16 %v45_v48, %v44_v47  ;;  %v22_v51 = vld [vmem:[%s483_s0 + $0x40] sm:$0xff]  ;;  %v17_v52 = vld [vmem:[%s483_s0 + $0x18] sm:$0xff]  ;;  %v24_v55 = vld [vmem:[%s483_s0 + $0x50] sm:$0xff] }
   0xe   :  { %256 = vmatprep.subr.bf16.mxu0 %v255_v20  ;;  %278 = vmatprep.subr.bf16.mxu1 %v255_v20  ;;  %v25_v53 = vld [vmem:[%s483_s0 + $0x58] sm:$0xff]  ;;  %v19_v56 = vld [vmem:[%s483_s0 + $0x28] sm:$0xff]  ;;  %v18_v58 = vld [vmem:[%s483_s0 + $0x20] sm:$0xff] }
   0xf   :  { %v27_v57 = vld [vmem:[%s483_s0 + $0x68] sm:$0xff]  ;;  %v26_v59 = vld [vmem:[%s483_s0 + $0x60] sm:$0xff]  ;;  %v21_v60 = vld [vmem:[%s483_s0 + $0x38] sm:$0xff] }
  0x10   :  { %v29_v61 = vld [vmem:[%s483_s0 + $0x78] sm:$0xff]  ;;  %v20_v62 = vld [vmem:[%s483_s0 + $0x30] sm:$0xff]  ;;  %v186_v2 = vld [vmem:[%s484_s2] ss:$0 sm:$0xff] }
  0x11   :  { %258 = vmatpush3.bf16.msra.mxu0 %v257_v27  ;;  %286 = vmatpush3.bf16.msra.mxu1 %v257_v27  ;;  %v28_v63 = vld [vmem:[%s483_s0 + $0x70] sm:$0xff] }
  0x12   :  { %260 = vmatprep.subr.bf16.mxu0 %v259_v28  ;;  %279 = vmatprep.subr.bf16.mxu1 %v259_v28 }
  0x15   :  { %262 = vmatpush3.bf16.msra.mxu0 %v261_v33  ;;  %287 = vmatpush3.bf16.msra.mxu1 %v261_v33 }
  0x16   :  { %264 = vmatprep.subr.bf16.mxu0 %v263_v34  ;;  %280 = vmatprep.subr.bf16.mxu1 %v263_v34 }
  0x19   :  { %266 = vmatpush3.bf16.msra.mxu0 %v265_v39  ;;  %288 = vmatpush3.bf16.msra.mxu1 %v265_v39 }
  0x1a   :  { %268 = vmatprep.subr.bf16.mxu0 %v267_v40  ;;  %281 = vmatprep.subr.bf16.mxu1 %v267_v40 }
  0x1d   :  { %270 = vmatpush3.bf16.msra.mxu0 %v269_v45  ;;  %289 = vmatpush3.bf16.msra.mxu1 %v269_v45 }
  0x1e   :  { %272 = vmatprep.subr.bf16.mxu0 %v271_v46  ;;  %282 = vmatprep.subr.bf16.mxu1 %v271_v46 }
  0x21   :  { %274 = vmatpush3.bf16.msra.mxu0 %v273_v49  ;;  %290 = vmatpush3.bf16.msra.mxu1 %v273_v49 }
  0x24   :  { %134 = vmatmul.mubr.f32.vlgmr.msra.gmra.mrb[0].mxu0 %v14_v50  ;;  %154 = vmatmul.mubr.f32.vlgmr.msra.gmra.mrb[0].mxu1 %v22_v51 }
  0x25   :  { %138 = vmatprep.mubr.f32.mxu0 %v17_v52  ;;  %158 = vmatprep.mubr.f32.mxu1 %v25_v53 }
  0x28   :  { %139 = vmatmul.mubr.f32.gmra.mrb[2].mxu0 %v16_v54  ;;  %159 = vmatmul.mubr.f32.gmra.mrb[2].mxu1 %v24_v55 }
  0x29   :  { %143 = vmatprep.mubr.f32.mxu0 %v19_v56  ;;  %163 = vmatprep.mubr.f32.mxu1 %v27_v57 }
  0x2c   :  { %144 = vmatmul.mubr.f32.gmra.mrb[4].mxu0 %v18_v58  ;;  %164 = vmatmul.mubr.f32.gmra.mrb[4].mxu1 %v26_v59 }
  0x2d   :  { %148 = vmatprep.mubr.f32.mxu0 %v21_v60  ;;  %168 = vmatprep.mubr.f32.mxu1 %v29_v61 }
  0x30   :  { %149 = vmatmul.mubr.f32.gmra.mrb[6].mxu0 %v20_v62  ;;  %169 = vmatmul.mubr.f32.gmra.mrb[6].mxu1 %v28_v63 }
  0xf7   :  { %v219_v0 = vpop.f32.mrb[0].mxu0  ;;  %v231_v1 = vpop.f32.mrb[0].mxu1 }
  0xf8   :  { %v220_v3 = vpop.f32.mrb[1].mxu0  ;;  %v232_v4 = vpop.f32.mrb[1].mxu1 }
  0xf9   :  { %v221_v5 = vadd.f32 %v220_v3, %v219_v0  ;;  %v233_v6 = vadd.f32 %v232_v4, %v231_v1 }
  0xfb   :  { %v136_v7 = vadd.f32 %v221_v5, %v186_v2  ;;  %v156_v8 = vadd.f32 %v233_v6, %v186_v2  ;;  %v222_v9 = vpop.f32.mrb[2].mxu0  ;;  %v234_v10 = vpop.f32.mrb[2].mxu1 }
  0xfc   :  { %v223_v11 = vpop.f32.mrb[3].mxu0  ;;  %v235_v12 = vpop.f32.mrb[3].mxu1 }
  0xfd   :  { %174 = vst [vmem:[%s485_s3] sm:$0xff] %v136_v7  ;;  %178 = vst [vmem:[%s485_s3 + $0x20] sm:$0xff] %v156_v8  ;;  %v224_v13 = vadd.f32 %v223_v11, %v222_v9  ;;  %v236_v14 = vadd.f32 %v235_v12, %v234_v10 }
  0xff   :  { %v141_v15 = vadd.f32 %v224_v13, %v186_v2  ;;  %v161_v16 = vadd.f32 %v236_v14, %v186_v2  ;;  %v225_v17 = vpop.f32.mrb[4].mxu0  ;;  %v237_v18 = vpop.f32.mrb[4].mxu1 }
 0x100   :  { %v226_v19 = vpop.f32.mrb[5].mxu0  ;;  %v238_v20 = vpop.f32.mrb[5].mxu1 }
 0x101   :  { %175 = vst [vmem:[%s485_s3 + $0x8] sm:$0xff] %v141_v15  ;;  %179 = vst [vmem:[%s485_s3 + $0x28] sm:$0xff] %v161_v16  ;;  %v227_v21 = vadd.f32 %v226_v19, %v225_v17  ;;  %v239_v22 = vadd.f32 %v238_v20, %v237_v18 }
 0x103   :  { %v146_v23 = vadd.f32 %v227_v21, %v186_v2  ;;  %v166_v24 = vadd.f32 %v239_v22, %v186_v2  ;;  %v228_v25 = vpop.f32.mrb[6].mxu0  ;;  %v240_v26 = vpop.f32.mrb[6].mxu1 }
 0x104   :  { %v229_v27 = vpop.f32.mrb[7].mxu0  ;;  %v241_v28 = vpop.f32.mrb[7].mxu1 }
 0x105   :  { %176 = vst [vmem:[%s485_s3 + $0x10] sm:$0xff] %v146_v23  ;;  %180 = vst [vmem:[%s485_s3 + $0x30] sm:$0xff] %v166_v24  ;;  %v230_v29 = vadd.f32 %v229_v27, %v228_v25  ;;  %v242_v30 = vadd.f32 %v241_v28, %v240_v26 }
 0x107   :  { %v151_v31 = vadd.f32 %v230_v29, %v186_v2  ;;  %v171_v32 = vadd.f32 %v242_v30, %v186_v2 }
 0x109   :  { %177 = vst [vmem:[%s485_s3 + $0x18] sm:$0xff] %v151_v31  ;;  %181 = vst [vmem:[%s485_s3 + $0x38] sm:$0xff] %v171_v32 }

// kernel: seq2seq_forward.10
= control target key start
LH: loop header
LB: loop body
LE: loop exit
PB: predicated region body
PF: predicated region fallthrough
CT: control target
= control target key end

     0   :  { %v339_v2 = vmov 0.0|0.0   ;;  %v340_v4 = vmov 0.0   ;;  %vm341_vm0 = vmmov 0   ;;  %s529_s1 = inlined_call_operand.vmem [shape: f32[128,384], index: 1, kind: input, shape index: {}]   ;;  %s530_s0 = inlined_call_operand.vmem [shape: f32[8,128], index: 0, kind: input, shape index: {}]   ;;  %s531_s2 = inlined_call_operand.vmem [shape: f32[1,384], index: 2, kind: input, shape index: {}]   ;;  %s532_s3 = inlined_call_operand.vmem [shape: f32[8,384], index: 3, kind: output, shape index: {}]  }
   0x1   :  { %v16_v0 = vld [vmem:[%s529_s1 + $0x8] sm:$0xff]  ;;  %v19_v1 = vld [vmem:[%s529_s1 + $0x20] sm:$0xff]  ;;  %312 = vmatprep.subr.bf16.mxu1 %v339_v2  ;;  %144 = vmatprep.mubr.f32.mxu0 %v340_v4  ;;  %v18_v6 = vld [vmem:[%s529_s1 + $0x18] sm:$0xff] }
   0x2   :  { %v15_v3 = vld [vmem:[%s529_s1] sm:$0xff]  ;;  %v280_v5 = vpack.c.bf16 %v19_v1, %v16_v0  ;;  %v17_v7 = vld [vmem:[%s529_s1 + $0x10] sm:$0xff]  ;;  %v20_v8 = vld [vmem:[%s529_s1 + $0x28] sm:$0xff]  ;;  %277 = vmatprep.mubr.msk.f32.mxu1 %vm341_vm0, %v340_v4 }
   0x3   :  { %v282_v9 = vpack.c.bf16 %v18_v6, %v15_v3  ;;  %v313_v10 = vpack.c.bf16 %v20_v8, %v17_v7  ;;  %v22_v11 = vld [vmem:[%s529_s1 + $0x38] sm:$0xff]  ;;  %v25_v12 = vld [vmem:[%s529_s1 + $0x50] sm:$0xff]  ;;  %v24_v15 = vld [vmem:[%s529_s1 + $0x48] sm:$0xff] }
   0x4   :  { %v21_v13 = vld [vmem:[%s529_s1 + $0x30] sm:$0xff]  ;;  %281 = vmatprep.subr.bf16.mxu0 %v280_v5  ;;  %v284_v14 = vpack.c.bf16 %v25_v12, %v22_v11  ;;  %v23_v16 = vld [vmem:[%s529_s1 + $0x40] sm:$0xff]  ;;  %v26_v17 = vld [vmem:[%s529_s1 + $0x58] sm:$0xff]  ;;  %v65_v12 = vlaneseq }
   0x5   :  { %283 = vmatpush1.bf16.msra.mxu0 %v282_v9  ;;  %314 = vmatpush3.bf16.msra.mxu1 %v313_v10  ;;  %v286_v18 = vpack.c.bf16 %v24_v15, %v21_v13  ;;  %v316_v19 = vpack.c.bf16 %v26_v17, %v23_v16  ;;  %v28_v20 = vld [vmem:[%s529_s1 + $0x68] sm:$0xff]  ;;  %v31_v21 = vld [vmem:[%s529_s1 + $0x80] sm:$0xff]  ;;  %v30_v24 = vld [vmem:[%s529_s1 + $0x78] sm:$0xff] }
   0x6   :  { %v27_v22 = vld [vmem:[%s529_s1 + $0x60] sm:$0xff]  ;;  %285 = vmatprep.subr.bf16.mxu0 %v284_v14  ;;  %315 = vmatprep.subr.bf16.mxu1 %v339_v2  ;;  %v288_v23 = vpack.c.bf16 %v31_v21, %v28_v20  ;;  %v29_v25 = vld [vmem:[%s529_s1 + $0x70] sm:$0xff]  ;;  %v32_v26 = vld [vmem:[%s529_s1 + $0x88] sm:$0xff]  ;;  %v66_v13 = vshrl.u32 %v65_v12, 7 }
   0x7   :  { %v34_v27 = vld [vmem:[%s529_s1 + $0x98] sm:$0xff]  ;;  %v37_v28 = vld [vmem:[%s529_s1 + $0xb0] sm:$0xff]  ;;  %v290_v29 = vpack.c.bf16 %v30_v24, %v27_v22  ;;  %v319_v30 = vpack.c.bf16 %v32_v26, %v29_v25  ;;  %v36_v33 = vld [vmem:[%s529_s1 + $0xa8] sm:$0xff] }
   0x8   :  { %v33_v31 = vld [vmem:[%s529_s1 + $0x90] sm:$0xff]  ;;  %v292_v32 = vpack.c.bf16 %v37_v28, %v34_v27  ;;  %v35_v34 = vld [vmem:[%s529_s1 + $0xa0] sm:$0xff]  ;;  %v38_v35 = vld [vmem:[%s529_s1 + $0xb8] sm:$0xff]  ;;  %v67_v14 = vsub.s32 0, %v66_v13  ;;  %v75_v15 = vsub.s32 2, %v66_v13  ;;  %v71_v17 = vsub.s32 1, %v66_v13 }
   0x9   :  { %287 = vmatpush1.bf16.msra.mxu0 %v286_v18  ;;  %317 = vmatpush3.bf16.msra.mxu1 %v316_v19  ;;  %v40_v36 = vld [vmem:[%s529_s1 + $0xc8] sm:$0xff]  ;;  %v43_v37 = vld [vmem:[%s529_s1 + $0xe0] sm:$0xff]  ;;  %v294_v38 = vpack.c.bf16 %v36_v33, %v33_v31  ;;  %v322_v39 = vpack.c.bf16 %v38_v35, %v35_v34  ;;  %v42_v42 = vld [vmem:[%s529_s1 + $0xd8] sm:$0xff] }
   0xa   :  { %289 = vmatprep.subr.bf16.mxu0 %v288_v23  ;;  %318 = vmatprep.subr.bf16.mxu1 %v339_v2  ;;  %v39_v40 = vld [vmem:[%s529_s1 + $0xc0] sm:$0xff]  ;;  %v296_v41 = vpack.c.bf16 %v43_v37, %v40_v36  ;;  %v41_v43 = vld [vmem:[%s529_s1 + $0xd0] sm:$0xff]  ;;  %v44_v44 = vld [vmem:[%s529_s1 + $0xe8] sm:$0xff] }
   0xb   :  { %v46_v45 = vld [vmem:[%s529_s1 + $0xf8] sm:$0xff]  ;;  %v49_v46 = vld [vmem:[%s529_s1 + $0x110] sm:$0xff]  ;;  %v298_v47 = vpack.c.bf16 %v42_v42, %v39_v40  ;;  %v325_v48 = vpack.c.bf16 %v44_v44, %v41_v43  ;;  %v48_v51 = vld [vmem:[%s529_s1 + $0x108] sm:$0xff] }
   0xc   :  { %v45_v49 = vld [vmem:[%s529_s1 + $0xf0] sm:$0xff]  ;;  %v300_v50 = vpack.c.bf16 %v49_v46, %v46_v45  ;;  %v47_v52 = vld [vmem:[%s529_s1 + $0x100] sm:$0xff]  ;;  %v50_v53 = vld [vmem:[%s529_s1 + $0x118] sm:$0xff] }
   0xd   :  { %291 = vmatpush1.bf16.msra.mxu0 %v290_v29  ;;  %320 = vmatpush3.bf16.msra.mxu1 %v319_v30  ;;  %v52_v54 = vld [vmem:[%s529_s1 + $0x128] sm:$0xff]  ;;  %v55_v55 = vld [vmem:[%s529_s1 + $0x140] sm:$0xff]  ;;  %v302_v56 = vpack.c.bf16 %v48_v51, %v45_v49  ;;  %v328_v57 = vpack.c.bf16 %v50_v53, %v47_v52  ;;  %v54_v60 = vld [vmem:[%s529_s1 + $0x138] sm:$0xff] }
   0xe   :  { %293 = vmatprep.subr.bf16.mxu0 %v292_v32  ;;  %321 = vmatprep.subr.bf16.mxu1 %v339_v2  ;;  %v51_v58 = vld [vmem:[%s529_s1 + $0x120] sm:$0xff]  ;;  %v304_v59 = vpack.c.bf16 %v55_v55, %v52_v54  ;;  %v53_v61 = vld [vmem:[%s529_s1 + $0x130] sm:$0xff]  ;;  %v56_v62 = vld [vmem:[%s529_s1 + $0x148] sm:$0xff] }
   0xf   :  { %v58_v63 = vld [vmem:[%s529_s1 + $0x158] sm:$0xff]  ;;  %v61_v0 = vld [vmem:[%s529_s1 + $0x170] sm:$0xff]  ;;  %v306_v1 = vpack.c.bf16 %v54_v60, %v51_v58  ;;  %v331_v3 = vpack.c.bf16 %v56_v62, %v53_v61  ;;  %v60_v6 = vld [vmem:[%s529_s1 + $0x168] sm:$0xff] }
  0x10   :  { %v57_v4 = vld [vmem:[%s529_s1 + $0x150] sm:$0xff]  ;;  %v308_v5 = vpack.c.bf16 %v61_v0, %v58_v63  ;;  %v59_v7 = vld [vmem:[%s529_s1 + $0x160] sm:$0xff]  ;;  %v62_v8 = vld [vmem:[%s529_s1 + $0x178] sm:$0xff] }
  0x11   :  { %295 = vmatpush1.bf16.msra.mxu0 %v294_v38  ;;  %323 = vmatpush3.bf16.msra.mxu1 %v322_v39  ;;  %v310_v9 = vpack.c.bf16 %v60_v6, %v57_v4  ;;  %v334_v10 = vpack.c.bf16 %v62_v8, %v59_v7  ;;  %v14_v11 = vld [vmem:[%s530_s0] sm:$0xff] }
  0x12   :  { %297 = vmatprep.subr.bf16.mxu0 %v296_v41  ;;  %324 = vmatprep.subr.bf16.mxu1 %v339_v2  ;;  %v63_v16 = vld [vmem:[%s531_s2] sm:$0x7] }
  0x13   :  { %v68_v18 = vrot.slane %v63_v16, %v67_v14  ;;  %v76_v19 = vrot.slane %v63_v16, %v75_v15 }
  0x15   :  { %299 = vmatpush1.bf16.msra.mxu0 %v298_v47  ;;  %326 = vmatpush3.bf16.msra.mxu1 %v325_v48 }
  0x16   :  { %301 = vmatprep.subr.bf16.mxu0 %v300_v50  ;;  %327 = vmatprep.subr.bf16.mxu1 %v339_v2 }
  0x19   :  { %303 = vmatpush1.bf16.msra.mxu0 %v302_v56  ;;  %329 = vmatpush3.bf16.msra.mxu1 %v328_v57 }
  0x1a   :  { %305 = vmatprep.subr.bf16.mxu0 %v304_v59  ;;  %330 = vmatprep.subr.bf16.mxu1 %v339_v2 }
  0x1d   :  { %307 = vmatpush1.bf16.msra.mxu0 %v306_v1  ;;  %332 = vmatpush3.bf16.msra.mxu1 %v331_v3 }
  0x1e   :  { %309 = vmatprep.subr.bf16.mxu0 %v308_v5  ;;  %333 = vmatprep.subr.bf16.mxu1 %v339_v2  ;;  %v72_v2 = vrot.slane %v63_v16, %v71_v17 }
  0x21   :  { %311 = vmatpush1.bf16.msra.mxu0 %v310_v9  ;;  %335 = vmatpush3.bf16.msra.mxu1 %v334_v10 }
  0x24   :  { %145 = vmatmul.mubr.f32.vlgmr.msra.gmra.mrb[0].mxu0 %v14_v11  ;;  %278 = vmatmul.mubr.f32.vlgmr.msra.gmra.mrb[0].mxu1 %v14_v11 }
  0xf7   :  { %v146_v20 = vpop.f32.mrb[0].mxu0  ;;  %v217_v21 = vpop.f32.mrb[0].mxu1 }
  0xf8   :  { %v147_v22 = vadd.f32 %v146_v20, %v68_v18  ;;  %v218_v23 = vadd.f32 %v217_v21, %v76_v19  ;;  %v148_v24 = vpop.f32.mrb[1].mxu0  ;;  %v279_v25 = vpop.f32.mrb[1].mxu1 }
  0xf9   :  { %v149_v26 = vadd.f32 %v148_v24, %v72_v2 }
  0xfa   :  { %221 = vst [vmem:[%s532_s3] sm:$0xff] %v147_v22  ;;  %223 = vst [vmem:[%s532_s3 + $0x10] sm:$0xff] %v218_v23 }
  0xfb   :  { %222 = vst [vmem:[%s532_s3 + $0x8] sm:$0xff] %v149_v26 }

// kernel: seq2seq_forward.11
= control target key start
LH: loop header
LB: loop body
LE: loop exit
PB: predicated region body
PF: predicated region fallthrough
CT: control target
= control target key end

     0   :  { %s4717_s0 = inlined_call_operand.vmem [shape: s32[5], index: 0, kind: input, shape index: {}]   ;;  %s4718_s1 = inlined_call_operand.vmem [shape: f32[5,8,128], index: 1, kind: input, shape index: {}]   ;;  %s4719_s2 = inlined_call_operand.vmem [shape: f32[8,128], index: 2, kind: input, shape index: {}]   ;;  %s4720_s3 = inlined_call_operand.vmem [shape: f32[8,8,128], index: 3, kind: input, shape index: {}]   ;;  %s4721_s4 = inlined_call_operand.vmem [shape: f32[8,8,256], index: 4, kind: input, shape index: {}]   ;;  %s4722_s5 = inlined_call_operand.vmem [shape: f32[128,128], index: 5, kind: input, shape index: {}]   ;;  %s4723_s6 = inlined_call_operand.vmem [shape: f32[1,128], index: 6, kind: input, shape index: {}]   ;;  %s4724_s7 = inlined_call_operand.vmem [shape: f32[256,128], index: 7, kind: input, shape index: {}]   ;;  %s4725_s8 = inlined_call_operand.vmem [shape: f32[128,384], index: 8, kind: input, shape index: {}]   ;;  %s4726_s9 = inlined_call_operand.vmem [shape: f32[256,384], index: 9, kind: input, shape index: {}]   ;;  %s4727_s10 = inlined_call_operand.vmem [shape: f32[8,384], index: 10, kind: input, shape index: {}]   ;;  %s4728_s11 = inlined_call_operand.vmem [shape: f32[128,384], index: 11, kind: input, shape index: {}]   ;;  %s4729_s12 = inlined_call_operand.vmem [shape: f32[1,384], index: 12, kind: input, shape index: {}]   ;;  %s4730_s13 = inlined_call_operand.vmem [shape: f32[128,256], index: 13, kind: input, shape index: {}]   ;;  %s4731_s14 = inlined_call_operand.vmem [shape: f32[256,256], index: 14, kind: input, shape index: {}]   ;;  %s4732_s15 = inlined_call_operand.vmem [shape: f32[128,256], index: 15, kind: input, shape index: {}]   ;;  %s4733_s16 = inlined_call_operand.vmem [shape: f32[1,256], index: 16, kind: input, shape index: {}]   ;;  %s4734_s17 = inlined_call_operand.vmem [shape: f32[5,8,256], index: 17, kind: output, shape index: {}]  }
   0x1   :  { %4736 = sst [smem:[#allocation7_spill]] %s4717_s0 }
   0x2   :  { %4737 = sst [smem:[#allocation8_spill]] %s4718_s1  ;;  %s4739_s26 = sld [smem:[#allocation7_spill]] }
   0x3   :  { %4738 = sst [smem:[#allocation9_spill]] %s4727_s10 }
   0x8   :  { %s22_s10 = sshll.u32 %s4739_s26, 4  ;;  %s23_s10 = int_to_ptr.vmem [resolvable:$true] %s22_s10 }
   0x9   :  { %s3157_s27 = scalar_lea.vmem %s23_s10, 16  ;;  %p3162_p1 = scmp.lt.s32.totalorder %s23_s10, %s23_s10 }
   0xa   :  { %p3158_p0 = scmp.ne.s32.totalorder %s23_s10, %s3157_s27  ;;  %p3163_p2 = scmp.lt.s32.totalorder %s3157_s27, %s3157_s27 }
   0xc   :  { %p3164_p3 = por %p3163_p2, %p3162_p1 }
   0xe   :  { %p3165_p4 = pnand %p3164_p3, %p3158_p0 }
  0x10   :  { %3168 = shalt.err (!%p3165_p4)  }
  0x11   :  { %s3179_s28 = smov [#allocation5]  }
  0x12   :  { %25 = dma.vmem_to_smem %s23_s10, 16, %s3179_s28, [#allocation4] }
  0x13   :  { %3173 = dma.done.wait [#allocation4], 16 }
  0x14   :  { %3174 = vsyncadd [#allocation4], 4294967280 }
  0x15   :  { %27 = sfence }
  0x16   :  { %s3279_s29 = smov 0  }
  0x17 LB: > { %s3285_s0 = sadd.s32 4294967295, %s3177_s29   ;;  %p2438_p5 = scmp.ge.s32.totalorder %s3177_s29, 1  ;;  %s3177_s29 = sphi %s3279_s29, %s33_s29  }
  0x18   : > { %p468_p6 = scmp.lt.s32.totalorder %s3177_s29, 6 }
  0x1a   : > { %p469_p7 = pnand %p2438_p5, %p468_p6 }
  0x1b   : > { %p517_p8 = scmp.lt.s32.totalorder (!%p469_p7), %s3285_s0, 4  ;;  %s4740_s20 = sld [smem:[#allocation8_spill]] (!%p469_p7) }
  0x1c   : > { %472 = sbr.rel (%p469_p7) target bundleno = 2012 (0x7dc), region = 84  ;;  %p2442_p9 = scmp.ne.s32.totalorder (!%p469_p7), %s3285_s0, 0 }
  0x23   : > { %s518_s10 = scalar_select %p517_p8, %s3285_s0, 4 }
  0x24   : > { %529 = sbr.rel (%p2442_p9) target bundleno = 43 (0x2b), region = 88  ;;  %v530_v0 = vld [vmem:[%s4719_s2] sm:$0xff] (!%p2442_p9)  ;;  %v3180_v1 = vmov (!%p2442_p9), 0.0  }
  0x25   : > { %s2439_s30 = sshll.u32 %s518_s10, 3  ;;  %s2450_s18 = sshll.u32 %s518_s10, 4  ;;  %531 = vst [vmem:[#allocation2] sm:$0xff] (!%p2442_p9), %v530_v0  ;;  %532 = vst [vmem:[#allocation3] sm:$0xff] (!%p2442_p9), %v3180_v1 }
  0x26   : > { %s3294_s21 = scalar_lea.vmem %s4740_s20, %s2439_s30  ;;  %s3299_s24 = scalar_lea.vmem %s4734_s17, %s2450_s18  ;;  %533 = vst [vmem:[#allocation3 + $0x8] sm:$0xff] (!%p2442_p9), %v3180_v1 }
  0x2b PF: > { %v556_v2 = vld [vmem:[%s4724_s7 + $0x80] sm:$0xff]  ;;  %v557_v3 = vld [vmem:[%s4724_s7 + $0x88] sm:$0xff]  ;;  %v558_v7 = vld [vmem:[%s4724_s7 + $0x90] sm:$0xff]  ;;  %v3181_v55 = vmov 0.0|0.0   ;;  %vm3182_vm0 = vmmov 0   ;;  %v3183_v59 = vmov 0.0  }
  0x2c   : > { %v540_v4 = vld [vmem:[%s4724_s7] sm:$0xff]  ;;  %v2677_v5 = vpack.c.bf16 %v557_v3, %v556_v2  ;;  %v541_v6 = vld [vmem:[%s4724_s7 + $0x8] sm:$0xff]  ;;  %v559_v8 = vld [vmem:[%s4724_s7 + $0x98] sm:$0xff]  ;;  %vm923_vm1 = vcmask 1041409   ;;  %vm925_vm2 = vcmask 1042434   ;;  %vm927_vm3 = vcmask 1043459  }
  0x2d   : > { %v2679_v9 = vpack.c.bf16 %v541_v6, %v540_v4  ;;  %v2681_v10 = vpack.c.bf16 %v559_v8, %v558_v7  ;;  %v542_v11 = vld [vmem:[%s4724_s7 + $0x10] sm:$0xff]  ;;  %v543_v12 = vld [vmem:[%s4724_s7 + $0x18] sm:$0xff]  ;;  %v560_v13 = vld [vmem:[%s4724_s7 + $0xa0] sm:$0xff]  ;;  %vm929_vm4 = vcmask 1044484   ;;  %vm931_vm5 = vcmask 1045509   ;;  %s4003_s10 = sld [smem:[#allocation5 + %s3285_s0]] }
  0x2e   : > { %2678 = vmatprep.subr.bf16.mxu0 %v2677_v5  ;;  %v561_v14 = vld [vmem:[%s4724_s7 + $0xa8] sm:$0xff]  ;;  %v2683_v15 = vpack.c.bf16 %v543_v12, %v542_v11  ;;  %v544_v17 = vld [vmem:[%s4724_s7 + $0x20] sm:$0xff]  ;;  %v562_v19 = vld [vmem:[%s4724_s7 + $0xb0] sm:$0xff]  ;;  %vm933_vm6 = vcmask 1046534   ;;  %vm935_vm7 = vcmask 1047559   ;;  %vm938_vm8 = vcmask 64512  }
  0x2f   : > { %2680 = vmatpush3.bf16.msra.mxu0 %v2679_v9  ;;  %v2685_v16 = vpack.c.bf16 %v561_v14, %v560_v13  ;;  %v545_v18 = vld [vmem:[%s4724_s7 + $0x28] sm:$0xff]  ;;  %v563_v20 = vld [vmem:[%s4724_s7 + $0xb8] sm:$0xff]  ;;  %v546_v23 = vld [vmem:[%s4724_s7 + $0x30] sm:$0xff]  ;;  %s4741_s20 = sld [smem:[#allocation9_spill]] }
  0x30   : > { %2682 = vmatprep.subr.bf16.mxu0 %v2681_v10  ;;  %v2687_v21 = vpack.c.bf16 %v545_v18, %v544_v17  ;;  %v2689_v22 = vpack.c.bf16 %v563_v20, %v562_v19  ;;  %v547_v24 = vld [vmem:[%s4724_s7 + $0x38] sm:$0xff]  ;;  %v564_v25 = vld [vmem:[%s4724_s7 + $0xc0] sm:$0xff]  ;;  %v565_v26 = vld [vmem:[%s4724_s7 + $0xc8] sm:$0xff]  ;;  %v3184_v18 = vmov 1966171168   ;;  %v749_v20 = vlaneseq }
  0x31   : > { %v539_v27 = vld [vmem:[#allocation3 + $0x8] sm:$0xff]  ;;  %v2691_v28 = vpack.c.bf16 %v547_v24, %v546_v23  ;;  %v2693_v29 = vpack.c.bf16 %v565_v26, %v564_v25  ;;  %v548_v30 = vld [vmem:[%s4724_s7 + $0x40] sm:$0xff]  ;;  %v549_v31 = vld [vmem:[%s4724_s7 + $0x48] sm:$0xff]  ;;  %v747_v19 = vunpack.c.l.s4 %v3184_v18 }
  0x32   : > { %636 = vmatprep.mubr.f32.mxu0 %v539_v27  ;;  %v566_v32 = vld [vmem:[%s4724_s7 + $0xd0] sm:$0xff]  ;;  %v567_v33 = vld [vmem:[%s4724_s7 + $0xd8] sm:$0xff]  ;;  %v2695_v34 = vpack.c.bf16 %v549_v31, %v548_v30  ;;  %v568_v38 = vld [vmem:[%s4724_s7 + $0xe0] sm:$0xff] }
  0x33   : > { %2684 = vmatpush3.bf16.msra.mxu0 %v2683_v15  ;;  %v2697_v35 = vpack.c.bf16 %v567_v33, %v566_v32  ;;  %v550_v36 = vld [vmem:[%s4724_s7 + $0x50] sm:$0xff]  ;;  %v551_v37 = vld [vmem:[%s4724_s7 + $0x58] sm:$0xff]  ;;  %v569_v39 = vld [vmem:[%s4724_s7 + $0xe8] sm:$0xff]  ;;  %p535_p10 = scmp.gt.s32.totalorder %s4003_s10, 0 }
  0x34   : > { %2686 = vmatprep.subr.bf16.mxu0 %v2685_v16  ;;  %v2699_v40 = vpack.c.bf16 %v551_v37, %v550_v36  ;;  %v2701_v41 = vpack.c.bf16 %v569_v39, %v568_v38  ;;  %v552_v42 = vld [vmem:[%s4724_s7 + $0x60] sm:$0xff]  ;;  %v553_v43 = vld [vmem:[%s4724_s7 + $0x68] sm:$0xff]  ;;  %v570_v44 = vld [vmem:[%s4724_s7 + $0xf0] sm:$0xff] }
  0x35   : > { %v571_v45 = vld [vmem:[%s4724_s7 + $0xf8] sm:$0xff]  ;;  %v2703_v46 = vpack.c.bf16 %v553_v43, %v552_v42  ;;  %v554_v48 = vld [vmem:[%s4724_s7 + $0x70] sm:$0xff]  ;;  %v650_v51 = vld [vmem:[%s4722_s5] sm:$0xff]  ;;  %s4072_s30 = scalar_select %p535_p10, 1, 0 }
  0x36   : > { %v2705_v47 = vpack.c.bf16 %v571_v45, %v570_v44  ;;  %v555_v49 = vld [vmem:[%s4724_s7 + $0x78] sm:$0xff]  ;;  %v651_v52 = vld [vmem:[%s4722_s5 + $0x8] sm:$0xff]  ;;  %v652_v56 = vld [vmem:[%s4722_s5 + $0x10] sm:$0xff] }
  0x37   : > { %2688 = vmatpush3.bf16.msra.mxu0 %v2687_v21  ;;  %v2707_v50 = vpack.c.bf16 %v555_v49, %v554_v48  ;;  %v538_v53 = vld [vmem:[#allocation3] sm:$0xff]  ;;  %v2710_v54 = vpack.c.bf16 %v651_v52, %v650_v51  ;;  %v653_v57 = vld [vmem:[%s4722_s5 + $0x18] sm:$0xff]  ;;  %v654_v60 = vld [vmem:[%s4722_s5 + $0x20] sm:$0xff]  ;;  %v748_v21 = vunpack.c.0.s8 %v747_v19  ;;  %s537_s18 = scvt.s32.f32 %s4072_s30 }
  0x38   : > { %2690 = vmatprep.subr.bf16.mxu0 %v2689_v22  ;;  %v2713_v58 = vpack.c.bf16 %v653_v57, %v652_v56  ;;  %v655_v61 = vld [vmem:[%s4722_s5 + $0x28] sm:$0xff]  ;;  %v656_v63 = vld [vmem:[%s4722_s5 + $0x30] sm:$0xff]  ;;  %v657_v0 = vld [vmem:[%s4722_s5 + $0x38] sm:$0xff]  ;;  %v3462_v22 = vshrl.u32 %v749_v20, 7 }
  0x39   : > { %v2716_v62 = vpack.c.bf16 %v655_v61, %v654_v60  ;;  %v2719_v1 = vpack.c.bf16 %v657_v0, %v656_v63  ;;  %v658_v2 = vld [vmem:[%s4722_s5 + $0x40] sm:$0xff]  ;;  %v659_v3 = vld [vmem:[%s4722_s5 + $0x48] sm:$0xff]  ;;  %v660_v5 = vld [vmem:[%s4722_s5 + $0x50] sm:$0xff]  ;;  %s645_s19 = ssub.f32 1.0, %s537_s18 }
  0x3a   : > { %v2722_v4 = vpack.c.bf16 %v659_v3, %v658_v2  ;;  %v661_v6 = vld [vmem:[%s4722_s5 + $0x58] sm:$0xff]  ;;  %v662_v8 = vld [vmem:[%s4722_s5 + $0x60] sm:$0xff]  ;;  %v663_v9 = vld [vmem:[%s4722_s5 + $0x68] sm:$0xff]  ;;  %v751_v23 = vsub.s32 %v748_v21, %v3462_v22  ;;  %v3504_v21 = vand.u32 127, %v749_v20 }
  0x3b   : > { %2692 = vmatpush3.bf16.msra.mxu0 %v2691_v28  ;;  %v2725_v7 = vpack.c.bf16 %v661_v6, %v660_v5  ;;  %v2728_v10 = vpack.c.bf16 %v663_v9, %v662_v8  ;;  %v664_v11 = vld [vmem:[%s4722_s5 + $0x70] sm:$0xff]  ;;  %v665_v12 = vld [vmem:[%s4722_s5 + $0x78] sm:$0xff]  ;;  %v649_v14 = vld [vmem:[#allocation2] sm:$0xff]  ;;  %v3466_v28 = vsub.s32 0, %v3462_v22 }
  0x3c   : > { %2694 = vmatprep.subr.bf16.mxu0 %v2693_v29  ;;  %v2731_v13 = vpack.c.bf16 %v665_v12, %v664_v11  ;;  %v736_v32 = vld [vmem:[%s4720_s3] sm:$0xff]  ;;  %v737_v38 = vld [vmem:[%s4720_s3 + $0x8] sm:$0xff]  ;;  %v738_v39 = vld [vmem:[%s4720_s3 + $0x10] sm:$0xff] }
  0x3d   : > { %v739_v43 = vld [vmem:[%s4720_s3 + $0x18] sm:$0xff]  ;;  %v740_v48 = vld [vmem:[%s4720_s3 + $0x20] sm:$0xff]  ;;  %v741_v56 = vld [vmem:[%s4720_s3 + $0x28] sm:$0xff] }
  0x3e   : > { %v742_v60 = vld [vmem:[%s4720_s3 + $0x30] sm:$0xff]  ;;  %v743_v0 = vld [vmem:[%s4720_s3 + $0x38] sm:$0xff] }
  0x3f   : > { %2696 = vmatpush3.bf16.msra.mxu0 %v2695_v34 }
  0x40   : > { %2698 = vmatprep.subr.bf16.mxu0 %v2697_v35 }
  0x43   : > { %2700 = vmatpush3.bf16.msra.mxu0 %v2699_v40 }
  0x44   : > { %2702 = vmatprep.subr.bf16.mxu0 %v2701_v41 }
  0x47   : > { %2704 = vmatpush3.bf16.msra.mxu0 %v2703_v46 }
  0x48   : > { %2706 = vmatprep.subr.bf16.mxu0 %v2705_v47 }
  0x4b   : > { %2708 = vmatpush3.bf16.msra.mxu0 %v2707_v50 }
  0x4c   : > { %2709 = vmatprep.subr.bf16.mxu0 %v3181_v55 }
  0x4e   : > { %637 = vmatmul.mubr.f32.vlgmr.msra.gmra.mrb[0].mxu0 %v538_v53 }
  0x4f   : > { %2711 = vmatpush3.bf16.msra.mxu0 %v2710_v54  ;;  %2604 = vmatprep.mubr.msk.f32.mxu0 %vm3182_vm0, %v3183_v59 }
  0x50   : > { %2712 = vmatprep.subr.bf16.mxu0 %v3181_v55 }
  0x53   : > { %2714 = vmatpush3.bf16.msra.mxu0 %v2713_v58 }
  0x54   : > { %2715 = vmatprep.subr.bf16.mxu0 %v3181_v55 }
  0x57   : > { %2717 = vmatpush3.bf16.msra.mxu0 %v2716_v62 }
  0x58   : > { %2718 = vmatprep.subr.bf16.mxu0 %v3181_v55 }
  0x5b   : > { %2720 = vmatpush3.bf16.msra.mxu0 %v2719_v1  ;;  %v2443_v1 = vld [vmem:[%s4723_s6] ss:$0 sm:$0xff] }
  0x5c   : > { %2721 = vmatprep.subr.bf16.mxu0 %v3181_v55 }
  0x5f   : > { %2723 = vmatpush3.bf16.msra.mxu0 %v2722_v4 }
  0x60   : > { %2724 = vmatprep.subr.bf16.mxu0 %v3181_v55 }
  0x63   : > { %2726 = vmatpush3.bf16.msra.mxu0 %v2725_v7 }
  0x64   : > { %2727 = vmatprep.subr.bf16.mxu0 %v3181_v55 }
  0x67   : > { %2729 = vmatpush3.bf16.msra.mxu0 %v2728_v10 }
  0x68   : > { %2730 = vmatprep.subr.bf16.mxu0 %v3181_v55 }
  0x6b   : > { %2732 = vmatpush3.bf16.msra.mxu0 %v2731_v13 }
  0x6e   : > { %2605 = vmatmul.mubr.f32.vlgmr.msra.gmra.mrb[2].mxu0 %v649_v14 }
 0x121   : > { %v2483_v15 = vpop.f32.mrb[0].mxu0 }
 0x122   : > { %v2484_v16 = vpop.f32.mrb[1].mxu0 }
 0x123   : > { %v3459_v17 = vadd.f32 %v2484_v16, %v2483_v15 }
 0x141   : > { %v732_v24 = vpop.f32.mrb[2].mxu0 }
 0x142   : > { %v745_v25 = vcombine.high %v732_v24, %v732_v24  ;;  %v752_v26 = vrot.slane %v732_v24, %v751_v23  ;;  %v2606_v27 = vpop.f32.mrb[3].mxu0  ;;  %v3508_v24 = vsub.s32 %v3504_v21, %v3462_v22 }
 0x144   : > { %v759_v29 = vrot.slane %v745_v25, %v751_v23  ;;  %v760_v30 = vcombine.high %v752_v26, %v752_v26  ;;  %v768_v31 = vrot.slane %v752_v26, %v751_v23 }
 0x146   : > { %v761_v33 = vcombine.high %v759_v29, %v759_v29  ;;  %v775_v34 = vrot.slane %v759_v29, %v751_v23  ;;  %v782_v35 = vrot.slane %v760_v30, %v751_v23  ;;  %v790_v36 = vcombine.high %v768_v31, %v768_v31 }
 0x147   : > { %v797_v37 = vrot.slane %v768_v31, %v3466_v28 }
 0x148   : > { %v789_v40 = vrot.slane %v761_v33, %v751_v23  ;;  %v792_v41 = vcombine.high %v782_v35, %v782_v35  ;;  %v801_v42 = vrot.slane %v782_v35, %v3466_v28  ;;  %v791_v44 = vcombine.high %v775_v34, %v775_v34 }
 0x149   : > { %v805_v45 = vrot.slane %v790_v36, %v3466_v28  ;;  %v813_v46 = vrot.slane %v775_v34, %v3466_v28  ;;  %v834_v47 = vadd.f32 %v797_v37, %v736_v32 }
 0x14a   : > { %v809_v49 = vrot.slane %v792_v41, %v3466_v28  ;;  %v835_v50 = vadd.f32 %v801_v42, %v737_v38  ;;  %v793_v52 = vcombine.high %v789_v40, %v789_v40  ;;  %v817_v53 = vrot.slane %v789_v40, %v3466_v28 }
 0x14b   : > { %v836_v51 = vadd.f32 %v805_v45, %v738_v39  ;;  %3098 = vtanh.f32 %v834_v47  ;;  %v821_v57 = vrot.slane %v791_v44, %v3466_v28  ;;  %v838_v58 = vadd.f32 %v813_v46, %v740_v48 }
 0x14c   : > { %v837_v54 = vadd.f32 %v809_v49, %v739_v43  ;;  %3100 = vtanh.f32 %v835_v50  ;;  %v825_v61 = vrot.slane %v793_v52, %v3466_v28  ;;  %v839_v62 = vadd.f32 %v817_v53, %v741_v56 }
 0x14d   : > { %3102 = vtanh.f32 %v836_v51  ;;  %v840_v63 = vadd.f32 %v821_v57, %v742_v60  ;;  %v3185_v48 = vmov 0   ;;  %v3527_v49 = vsub.s32 1, %v3462_v22 }
 0x14e   : > { %3104 = vtanh.f32 %v837_v54  ;;  %v841_v2 = vadd.f32 %v825_v61, %v743_v0  ;;  %3097 = vset.pattern.permute.xlu0 %v3185_v48  ;;  %3096 = vset.pattern.permute.xlu1 %v3185_v48  ;;  %v3530_v50 = vsub.s32 2, %v3462_v22  ;;  %v957_v51 = vsub.s32 3, %v3462_v22 }
 0x14f   : > { %3106 = vtanh.f32 %v838_v58  ;;  %v961_v57 = vsub.s32 4, %v3462_v22 }
 0x150   : > { %3108 = vtanh.f32 %v839_v62 }
 0x151   : > { %3110 = vtanh.f32 %v840_v63 }
 0x152   : > { %3112 = vtanh.f32 %v841_v2 }
 0x155   : > { %v3099_v3 = vpop.eup %3098 }
 0x156   : > { %v857_v4 = vmul.f32 %v3099_v3, %v2443_v1  ;;  %v3101_v5 = vpop.eup %3100 }
 0x157   : > { %v3103_v6 = vpop.eup %3102  ;;  %v858_v9 = vmul.f32 %v3101_v5, %v2443_v1  ;;  %v969_v5 = vsub.s32 6, %v3462_v22 }
 0x158   : > { %865 = vadd.xlane.f32.xlu0 %v857_v4  ;;  %v859_v7 = vmul.f32 %v3103_v6, %v2443_v1  ;;  %v3105_v8 = vpop.eup %3104 }
 0x159   : > { %v3107_v10 = vpop.eup %3106  ;;  %v860_v11 = vmul.f32 %v3105_v8, %v2443_v1 }
 0x15a   : > { %869 = vadd.xlane.f32.xlu1 %v859_v7  ;;  %v3109_v12 = vpop.eup %3108  ;;  %v861_v13 = vmul.f32 %v3107_v10, %v2443_v1 }
 0x15b   : > { %v3111_v14 = vpop.eup %3110  ;;  %v862_v15 = vmul.f32 %v3109_v12, %v2443_v1 }
 0x15c   : > { %867 = vadd.xlane.f32.xlu0 %v858_v9  ;;  %v3113_v16 = vpop.eup %3112  ;;  %v863_v18 = vmul.f32 %v3111_v14, %v2443_v1  ;;  %v973_v9 = vsub.s32 7, %v3462_v22 }
 0x15d   : > { %v864_v19 = vmul.f32 %v3113_v16, %v2443_v1  ;;  %v965_v1 = vsub.s32 5, %v3462_v22  ;;  %v1397_v22 = vld [vmem:[%s4726_s9 + $0x150] sm:$0xff] }
 0x15e   : > { %871 = vadd.xlane.f32.xlu1 %v860_v11 }
 0x160   : > { %873 = vadd.xlane.f32.xlu0 %v861_v13 }
 0x162   : > { %875 = vadd.xlane.f32.xlu1 %v862_v15 }
 0x164   : > { %877 = vadd.xlane.f32.xlu0 %v863_v18 }
 0x166   : > { %879 = vadd.xlane.f32.xlu1 %v864_v19 }
 0x1e5   : > { %v866_v23 = vpop.xlane.xlu0 %865 }
 0x1e6   : > { %v894_v27 = vrot.slane %v866_v23, %v3508_v24 }
 0x1e7   : > { %v870_v25 = vpop.xlane.xlu1 %869 }
 0x1e8   : > { %v902_v30 = vrot.slane %v870_v25, %v3508_v24 }
 0x1e9   : > { %v868_v26 = vpop.xlane.xlu0 %867 }
 0x1ea   : > { %v898_v29 = vrot.slane %v868_v26, %v3508_v24 }
 0x1eb   : > { %v872_v20 = vpop.xlane.xlu1 %871 }
 0x1ec   : > { %v924_v31 = vsel %vm923_vm1, %v898_v29, %v894_v27  ;;  %v906_v33 = vrot.slane %v872_v20, %v3508_v24 }
 0x1ed   : > { %v926_v32 = vsel %vm925_vm2, %v902_v30, %v924_v31  ;;  %v874_v34 = vpop.xlane.xlu0 %873 }
 0x1ee   : > { %v910_v35 = vrot.slane %v874_v34, %v3508_v24  ;;  %v928_v36 = vsel %vm927_vm3, %v906_v33, %v926_v32 }
 0x1ef   : > { %v876_v38 = vpop.xlane.xlu1 %875 }
 0x1f0   : > { %v930_v37 = vsel %vm929_vm4, %v910_v35, %v928_v36  ;;  %v914_v39 = vrot.slane %v876_v38, %v3508_v24 }
 0x1f1   : > { %v878_v40 = vpop.xlane.xlu0 %877 }
 0x1f2   : > { %v918_v41 = vrot.slane %v878_v40, %v3508_v24  ;;  %v932_v42 = vsel %vm931_vm5, %v914_v39, %v930_v37 }
 0x1f3   : > { %v880_v43 = vpop.xlane.xlu1 %879 }
 0x1f4   : > { %v934_v44 = vsel %vm933_vm6, %v918_v41, %v932_v42  ;;  %v922_v45 = vrot.slane %v880_v43, %v3508_v24 }
 0x1f6   : > { %v936_v46 = vsel %vm935_vm7, %v922_v45, %v934_v44 }
 0x1f7   : > { %v939_v47 = vsel %vm938_vm8, %v936_v46, -inf }
 0x1f8   : > { %940 = vmax.xlane.f32.xlu0 %v939_v47 }
 0x285   : > { %v941_v52 = vpop.xlane.xlu0 %940 }
 0x286   : > { %v946_v53 = vrot.slane %v941_v52, %v3466_v28  ;;  %v950_v54 = vrot.slane %v941_v52, %v3527_v49  ;;  %v954_v56 = vrot.slane %v941_v52, %v3530_v50  ;;  %v958_v58 = vrot.slane %v941_v52, %v957_v51 }
 0x287   : > { %v962_v2 = vrot.slane %v941_v52, %v961_v57  ;;  %v966_v6 = vrot.slane %v941_v52, %v965_v1  ;;  %v970_v10 = vrot.slane %v941_v52, %v969_v5  ;;  %v974_v15 = vrot.slane %v941_v52, %v973_v9 }
 0x288   : > { %v983_v60 = vsub.f32 %v866_v23, %v946_v53  ;;  %v984_v61 = vsub.f32 %v868_v26, %v950_v54  ;;  %v985_v62 = vsub.f32 %v870_v25, %v954_v56  ;;  %v986_v3 = vsub.f32 %v872_v20, %v958_v58 }
 0x289   : > { %v987_v7 = vsub.f32 %v874_v34, %v962_v2  ;;  %v988_v11 = vsub.f32 %v876_v38, %v966_v6  ;;  %v989_v16 = vsub.f32 %v878_v40, %v970_v10  ;;  %v990_v23 = vsub.f32 %v880_v43, %v974_v15  ;;  %v1358_v2 = vld [vmem:[%s4726_s9 + $0x18] sm:$0xff]  ;;  %v1364_v10 = vld [vmem:[%s4726_s9 + $0x48] sm:$0xff] }
 0x28a   : > { %v991_v63 = vmul.f32 1.442695, %v983_v60  ;;  %v993_v0 = vmul.f32 1.442695, %v984_v61  ;;  %v995_v4 = vmul.f32 1.442695, %v985_v62 }
 0x28b   : > { %v997_v8 = vmul.f32 1.442695, %v986_v3  ;;  %v999_v12 = vmul.f32 1.442695, %v987_v7  ;;  %v1001_v18 = vmul.f32 1.442695, %v988_v11 }
 0x28c   : > { %3114 = vpow2.f32 %v991_v63  ;;  %v1003_v25 = vmul.f32 1.442695, %v989_v16  ;;  %v1005_v27 = vmul.f32 1.442695, %v990_v23  ;;  %v1356_v62 = vld [vmem:[%s4726_s9 + $0x8] sm:$0xff]  ;;  %v1359_v63 = vld [vmem:[%s4726_s9 + $0x20] sm:$0xff] }
 0x28d   : > { %3116 = vpow2.f32 %v993_v0  ;;  %v1355_v0 = vld [vmem:[%s4726_s9] sm:$0xff]  ;;  %v1362_v3 = vld [vmem:[%s4726_s9 + $0x38] sm:$0xff]  ;;  %v1368_v11 = vld [vmem:[%s4726_s9 + $0x68] sm:$0xff] }
 0x28e   : > { %3118 = vpow2.f32 %v995_v4  ;;  %v1365_v4 = vld [vmem:[%s4726_s9 + $0x50] sm:$0xff]  ;;  %v2735_v6 = vpack.c.bf16 %v1358_v2, %v1355_v0  ;;  %v1370_v23 = vld [vmem:[%s4726_s9 + $0x78] sm:$0xff]  ;;  %v1395_v2 = vld [vmem:[%s4726_s9 + $0x140] sm:$0xff] }
 0x28f   : > { %3120 = vpow2.f32 %v997_v8  ;;  %v2737_v7 = vpack.c.bf16 %v1365_v4, %v1362_v3  ;;  %v1361_v8 = vld [vmem:[%s4726_s9 + $0x30] sm:$0xff]  ;;  %v1391_v4 = vld [vmem:[%s4726_s9 + $0x120] sm:$0xff] }
 0x290   : > { %3122 = vpow2.f32 %v999_v12  ;;  %v1371_v12 = vld [vmem:[%s4726_s9 + $0x80] sm:$0xff]  ;;  %v2739_v15 = vpack.c.bf16 %v1364_v10, %v1361_v8  ;;  %v1398_v10 = vld [vmem:[%s4726_s9 + $0x158] sm:$0xff] }
 0x291   : > { %3124 = vpow2.f32 %v1001_v18  ;;  %v2741_v16 = vpack.c.bf16 %v1371_v12, %v1368_v11  ;;  %v1367_v18 = vld [vmem:[%s4726_s9 + $0x60] sm:$0xff]  ;;  %v1401_v11 = vld [vmem:[%s4726_s9 + $0x170] sm:$0xff] }
 0x292   : > { %3126 = vpow2.f32 %v1003_v25  ;;  %v1374_v25 = vld [vmem:[%s4726_s9 + $0x98] sm:$0xff]  ;;  %v2761_v12 = vpack.c.bf16 %v1401_v11, %v1398_v10  ;;  %v1375_v11 = vld [vmem:[%s4726_s9 + $0xa0] sm:$0xff] }
 0x293   : > { %3128 = vpow2.f32 %v1005_v27  ;;  %v1377_v27 = vld [vmem:[%s4726_s9 + $0xb0] sm:$0xff] }
 0x296   : > { %v3548_v13 = vpop.eup %3114 }
 0x297   : > { %v3550_v14 = vpop.eup %3116  ;;  %1016 = vperm.xlu1 %3096, %v3548_v13  }
 0x298   : > { %1019 = vperm.xlu0 %3097, %v3550_v14   ;;  %v3556_v19 = vpop.eup %3118 }
 0x299   : > { %v3559_v26 = vpop.eup %3120 }
 0x29a   : > { %v3562_v29 = vpop.eup %3122 }
 0x29b   : > { %1022 = vperm.xlu1 %3096, %v3556_v19   ;;  %v3565_v30 = vpop.eup %3124 }
 0x29c   : > { %v3568_v31 = vpop.eup %3126 }
 0x29d   : > { %v3571_v20 = vpop.eup %3128 }
 0x29f   : > { %1025 = vperm.xlu1 %3096, %v3559_v26  }
 0x2a3   : > { %1028 = vperm.xlu1 %3096, %v3562_v29  }
 0x2a7   : > { %1031 = vperm.xlu1 %3096, %v3565_v30  }
 0x2ab   : > { %1034 = vperm.xlu1 %3096, %v3568_v31  }
 0x2af   : > { %1037 = vperm.xlu1 %3096, %v3571_v20  }
 0x316   : > { %v1017_v32 = vpop.permute.xlu1 %1016 }
 0x317   : > { %v1020_v36 = vpop.permute.xlu0 %1019  ;;  %v1042_v39 = vrot.slane %v1017_v32, %v3508_v24  ;;  %v2743_v32 = vpack.c.bf16 %v1370_v23, %v1367_v18  ;;  %v1404_v18 = vld [vmem:[%s4726_s9 + $0x188] sm:$0xff]  ;;  %v1407_v23 = vld [vmem:[%s4726_s9 + $0x1a0] sm:$0xff] }
 0x318   : > { %v1046_v38 = vrot.slane %v1020_v36, %v3508_v24  ;;  %v1380_v36 = vld [vmem:[%s4726_s9 + $0xc8] sm:$0xff] }
 0x31a   : > { %v1023_v33 = vpop.permute.xlu1 %1022  ;;  %v1071_v44 = vsel %vm923_vm1, %v1046_v38, %v1042_v39 }
 0x31b   : > { %v1050_v40 = vrot.slane %v1023_v33, %v3508_v24  ;;  %v2745_v33 = vpack.c.bf16 %v1377_v27, %v1374_v25  ;;  %v1405_v25 = vld [vmem:[%s4726_s9 + $0x190] sm:$0xff]  ;;  %v2765_v27 = vpack.c.bf16 %v1407_v23, %v1404_v18  ;;  %v1432_v18 = vld [vmem:[%s4726_s9 + $0x268] sm:$0xff]  ;;  %v1427_v23 = vld [vmem:[%s4726_s9 + $0x240] sm:$0xff] }
 0x31d   : > { %v1072_v46 = vsel %vm925_vm2, %v1050_v40, %v1071_v44  ;;  %v1379_v40 = vld [vmem:[%s4726_s9 + $0xc0] sm:$0xff] }
 0x31e   : > { %v1026_v34 = vpop.permute.xlu1 %1025 }
 0x31f   : > { %v1054_v41 = vrot.slane %v1026_v34, %v3508_v24  ;;  %v1373_v34 = vld [vmem:[%s4726_s9 + $0x90] sm:$0xff] }
 0x321   : > { %v1073_v48 = vsel %vm927_vm3, %v1054_v41, %v1072_v46  ;;  %v1382_v41 = vld [vmem:[%s4726_s9 + $0xd8] sm:$0xff] }
 0x322   : > { %v1029_v35 = vpop.permute.xlu1 %1028  ;;  %v2751_v44 = vpack.c.bf16 %v1382_v41, %v1379_v40  ;;  %v1410_v41 = vld [vmem:[%s4726_s9 + $0x1b8] sm:$0xff] }
 0x323   : > { %v1058_v42 = vrot.slane %v1029_v35, %v3508_v24  ;;  %v1376_v35 = vld [vmem:[%s4726_s9 + $0xa8] sm:$0xff] }
 0x324   : > { %v2747_v38 = vpack.c.bf16 %v1376_v35, %v1373_v34 }
 0x325   : > { %v1074_v52 = vsel %vm929_vm4, %v1058_v42, %v1073_v48  ;;  %v1386_v42 = vld [vmem:[%s4726_s9 + $0xf8] sm:$0xff] }
 0x326   : > { %v1032_v37 = vpop.permute.xlu1 %1031 }
 0x327   : > { %v1062_v45 = vrot.slane %v1032_v37, %v3508_v24  ;;  %v1383_v37 = vld [vmem:[%s4726_s9 + $0xe0] sm:$0xff] }
 0x328   : > { %v2749_v39 = vpack.c.bf16 %v1383_v37, %v1380_v36  ;;  %v1357_v36 = vld [vmem:[%s4726_s9 + $0x10] sm:$0xff]  ;;  %v1360_v37 = vld [vmem:[%s4726_s9 + $0x28] sm:$0xff] }
 0x329   : > { %v1075_v54 = vsel %vm931_vm5, %v1062_v45, %v1074_v52 }
 0x32a   : > { %v1035_v43 = vpop.permute.xlu1 %1034 }
 0x32b   : > { %v1066_v47 = vrot.slane %v1035_v43, %v3508_v24  ;;  %v1389_v43 = vld [vmem:[%s4726_s9 + $0x110] sm:$0xff] }
 0x32c   : > { %v2753_v45 = vpack.c.bf16 %v1389_v43, %v1386_v42  ;;  %v1413_v42 = vld [vmem:[%s4726_s9 + $0x1d0] sm:$0xff]  ;;  %v1411_v43 = vld [vmem:[%s4726_s9 + $0x1c0] sm:$0xff] }
 0x32d   : > { %v1076_v58 = vsel %vm933_vm6, %v1066_v47, %v1075_v54 }
 0x32e   : > { %v1038_v53 = vpop.permute.xlu1 %1037 }
 0x32f   : > { %v1070_v56 = vrot.slane %v1038_v53, %v3508_v24  ;;  %v2733_v24 = vpack.c.bf16 %v1359_v63, %v1356_v62 }
 0x331   : > { %v1077_v60 = vsel %vm935_vm7, %v1070_v56, %v1076_v58  ;;  %2734 = vmatprep.subr.bf16.mxu0 %v2733_v24 }
 0x332   : > { %v1079_v61 = vsel %vm938_vm8, %v1077_v60, 0.0  ;;  %2736 = vmatpush1.bf16.msra.mxu0 %v2735_v6 }
 0x333   : > { %1080 = vadd.xlane.f32.xlu1 %v1079_v61  ;;  %2738 = vmatprep.subr.bf16.mxu0 %v2737_v7 }
 0x336   : > { %2740 = vmatpush1.bf16.msra.mxu0 %v2739_v15 }
 0x337   : > { %2742 = vmatprep.subr.bf16.mxu0 %v2741_v16 }
 0x33a   : > { %2744 = vmatpush1.bf16.msra.mxu0 %v2743_v32  ;;  %v1403_v32 = vld [vmem:[%s4726_s9 + $0x180] sm:$0xff] }
 0x33b   : > { %2746 = vmatprep.subr.bf16.mxu0 %v2745_v33  ;;  %v1406_v33 = vld [vmem:[%s4726_s9 + $0x198] sm:$0xff] }
 0x33c   : > { %v2767_v35 = vpack.c.bf16 %v1406_v33, %v1403_v32  ;;  %v1381_v32 = vld [vmem:[%s4726_s9 + $0xd0] sm:$0xff]  ;;  %v1384_v33 = vld [vmem:[%s4726_s9 + $0xe8] sm:$0xff] }
 0x33e   : > { %2748 = vmatpush1.bf16.msra.mxu0 %v2747_v38 }
 0x33f   : > { %2750 = vmatprep.subr.bf16.mxu0 %v2749_v39  ;;  %v2799_v39 = vpack.c.bf16 %v1360_v37, %v1357_v36  ;;  %v1437_v36 = vld [vmem:[%s4726_s9 + $0x290] sm:$0xff]  ;;  %v1435_v37 = vld [vmem:[%s4726_s9 + $0x280] sm:$0xff] }
 0x342   : > { %2752 = vmatpush1.bf16.msra.mxu0 %v2751_v44  ;;  %v1414_v44 = vld [vmem:[%s4726_s9 + $0x1d8] sm:$0xff] }
 0x343   : > { %2754 = vmatprep.subr.bf16.mxu0 %v2753_v45  ;;  %v1409_v45 = vld [vmem:[%s4726_s9 + $0x1b0] sm:$0xff] }
 0x3c0   : > { %v1081_v46 = vpop.xlane.xlu1 %1080 }
 0x3c1   : > { %v1086_v47 = vrot.slane %v1081_v46, %v3466_v28  ;;  %v1090_v48 = vrot.slane %v1081_v46, %v3527_v49  ;;  %v1094_v52 = vrot.slane %v1081_v46, %v3530_v50  ;;  %v1098_v53 = vrot.slane %v1081_v46, %v957_v51  ;;  %v1385_v51 = vld [vmem:[%s4726_s9 + $0xf0] sm:$0xff] }
 0x3c2   : > { %v1102_v56 = vrot.slane %v1081_v46, %v961_v57  ;;  %v1106_v61 = vrot.slane %v1081_v46, %v965_v1  ;;  %v1388_v57 = vld [vmem:[%s4726_s9 + $0x108] sm:$0xff] }
 0x3c3   : > { %3130 = vrcp.f32 %v1086_v47  ;;  %v2755_v0 = vpack.c.bf16 %v1388_v57, %v1385_v51  ;;  %v2801_v47 = vpack.c.bf16 %v1414_v44, %v1411_v43  ;;  %v1415_v51 = vld [vmem:[%s4726_s9 + $0x1e0] sm:$0xff]  ;;  %v1418_v57 = vld [vmem:[%s4726_s9 + $0x1f8] sm:$0xff] }
 0x3c4   : > { %3132 = vrcp.f32 %v1090_v48  ;;  %v1390_v44 = vld [vmem:[%s4726_s9 + $0x118] sm:$0xff] }
 0x3c5   : > { %3134 = vrcp.f32 %v1094_v52  ;;  %2756 = vmatpush1.bf16.msra.mxu0 %v2755_v0  ;;  %v1363_v52 = vld [vmem:[%s4726_s9 + $0x40] sm:$0xff]  ;;  %v2775_v0 = vpack.c.bf16 %v1418_v57, %v1415_v51  ;;  %v1449_v51 = vld [vmem:[%s4726_s9 + $0x2f0] sm:$0xff] }
 0x3c6   : > { %3136 = vrcp.f32 %v1098_v53  ;;  %v1366_v53 = vld [vmem:[%s4726_s9 + $0x58] sm:$0xff]  ;;  %v1447_v57 = vld [vmem:[%s4726_s9 + $0x2e0] sm:$0xff] }
 0x3c7   : > { %3138 = vrcp.f32 %v1102_v56  ;;  %v2803_v56 = vpack.c.bf16 %v1366_v53, %v1363_v52  ;;  %v1444_v53 = vld [vmem:[%s4726_s9 + $0x2c8] sm:$0xff] }
 0x3c8   : > { %3140 = vrcp.f32 %v1106_v61  ;;  %v1419_v61 = vld [vmem:[%s4726_s9 + $0x200] sm:$0xff] }
 0x3cd   : > { %v3131_v54 = vpop.eup %3130 }
 0x3ce   : > { %v1124_v58 = vmul.f32 %v3131_v54, %v3548_v13  ;;  %v3133_v60 = vpop.eup %3132  ;;  %v1110_v13 = vrot.slane %v1081_v46, %v969_v5  ;;  %v1394_v5 = vld [vmem:[%s4726_s9 + $0x138] sm:$0xff] }
 0x3cf   : > { %v1126_v62 = vmul.f32 %v3133_v60, %v3550_v14  ;;  %v3135_v63 = vpop.eup %3134  ;;  %v1392_v14 = vld [vmem:[%s4726_s9 + $0x128] sm:$0xff]  ;;  %v2759_v6 = vpack.c.bf16 %v1394_v5, %v1391_v4  ;;  %v1425_v4 = vld [vmem:[%s4726_s9 + $0x230] sm:$0xff]  ;;  %v1423_v5 = vld [vmem:[%s4726_s9 + $0x220] sm:$0xff] }
 0x3d0   : > { %1157 = vperm.xlu0 %3097, %v1124_v58   ;;  %v1128_v24 = vmul.f32 %v3135_v63, %v3556_v19  ;;  %v3137_v1 = vpop.eup %3136  ;;  %v2757_v3 = vpack.c.bf16 %v1395_v2, %v1392_v14  ;;  %3142 = vrcp.f32 %v1110_v13  ;;  %v1114_v19 = vrot.slane %v1081_v46, %v973_v9  ;;  %v1400_v9 = vld [vmem:[%s4726_s9 + $0x168] sm:$0xff] }
 0x3d1   : > { %v1130_v7 = vmul.f32 %v3137_v1, %v3559_v26  ;;  %v3139_v8 = vpop.eup %3138  ;;  %v2763_v26 = vpack.c.bf16 %v1400_v9, %v1397_v22  ;;  %v1412_v46 = vld [vmem:[%s4726_s9 + $0x1c8] sm:$0xff] }
 0x3d2   : > { %2758 = vmatprep.subr.bf16.mxu0 %v2757_v3  ;;  %3144 = vrcp.f32 %v1114_v19  ;;  %v1132_v15 = vmul.f32 %v3139_v8, %v3562_v29  ;;  %v3141_v16 = vpop.eup %3140  ;;  %v1408_v29 = vld [vmem:[%s4726_s9 + $0x1a8] sm:$0xff]  ;;  %v2771_v48 = vpack.c.bf16 %v1412_v46, %v1409_v45  ;;  %v1422_v3 = vld [vmem:[%s4726_s9 + $0x218] sm:$0xff] }
 0x3d3   : > { %2760 = vmatpush1.bf16.msra.mxu0 %v2759_v6  ;;  %v2797_v34 = vpack.c.bf16 %v1408_v29, %v1405_v25  ;;  %v1134_v38 = vmul.f32 %v3141_v16, %v3565_v30  ;;  %v2769_v30 = vpack.c.bf16 %v1413_v42, %v1410_v41  ;;  %v1416_v60 = vld [vmem:[%s4726_s9 + $0x1e8] sm:$0xff]  ;;  %v2777_v19 = vpack.c.bf16 %v1425_v4, %v1422_v3  ;;  %v1421_v6 = vld [vmem:[%s4726_s9 + $0x210] sm:$0xff]  ;;  %v1430_v25 = vld [vmem:[%s4726_s9 + $0x258] sm:$0xff] }
 0x3d4   : > { %1162 = vperm.xlu0 %3097, %v1126_v62   ;;  %2762 = vmatprep.subr.bf16.mxu0 %v2761_v12  ;;  %v1417_v62 = vld [vmem:[%s4726_s9 + $0x1f0] sm:$0xff]  ;;  %v1420_v63 = vld [vmem:[%s4726_s9 + $0x208] sm:$0xff]  ;;  %v1378_v12 = vld [vmem:[%s4726_s9 + $0xb8] sm:$0xff]  ;;  %v2783_v29 = vpack.c.bf16 %v1430_v25, %v1427_v23 }
 0x3d5   : > { %2798 = vmatprep.subr.bf16.mxu1 %v2797_v34  ;;  %v2805_v13 = vpack.c.bf16 %v1420_v63, %v1417_v62  ;;  %v1372_v1 = vld [vmem:[%s4726_s9 + $0x88] sm:$0xff]  ;;  %v2811_v22 = vpack.c.bf16 %v1378_v12, %v1375_v11  ;;  %v2815_v34 = vpack.c.bf16 %v1384_v33, %v1381_v32  ;;  %v1402_v4 = vld [vmem:[%s4726_s9 + $0x178] sm:$0xff] }
 0x3d6   : > { %2800 = vmatpush3.bf16.msra.mxu1 %v2799_v39  ;;  %v1428_v9 = vld [vmem:[%s4726_s9 + $0x248] sm:$0xff]  ;;  %v1438_v39 = vld [vmem:[%s4726_s9 + $0x298] sm:$0xff] }
 0x3d7   : > { %2764 = vmatpush1.bf16.msra.mxu0 %v2763_v26  ;;  %2802 = vmatprep.subr.bf16.mxu1 %v2801_v47  ;;  %v1431_v26 = vld [vmem:[%s4726_s9 + $0x260] sm:$0xff]  ;;  %v1436_v41 = vld [vmem:[%s4726_s9 + $0x288] sm:$0xff]  ;;  %v2817_v42 = vpack.c.bf16 %v1438_v39, %v1435_v37 }
 0x3d8   : > { %1167 = vperm.xlu0 %3097, %v1128_v24   ;;  %2766 = vmatprep.subr.bf16.mxu0 %v2765_v27  ;;  %v1369_v24 = vld [vmem:[%s4726_s9 + $0x70] sm:$0xff]  ;;  %v2781_v16 = vpack.c.bf16 %v1431_v26, %v1428_v9  ;;  %v1440_v46 = vld [vmem:[%s4726_s9 + $0x2a8] sm:$0xff]  ;;  %v1443_v47 = vld [vmem:[%s4726_s9 + $0x2c0] sm:$0xff] }
 0x3d9   : > { %v2807_v2 = vpack.c.bf16 %v1372_v1, %v1369_v24  ;;  %v2789_v52 = vpack.c.bf16 %v1443_v47, %v1440_v46  ;;  %v1396_v62 = vld [vmem:[%s4726_s9 + $0x148] sm:$0xff]  ;;  %v1445_v1 = vld [vmem:[%s4726_s9 + $0x2d0] sm:$0xff]  ;;  %v1142_v9 = vld [vmem:[%s4721_s4 + $0x18] sm:$0xff] }
 0x3da   : > { %v3143_v40 = vpop.eup %3142  ;;  %2804 = vmatpush3.bf16.msra.mxu1 %v2803_v56  ;;  %v1442_v56 = vld [vmem:[%s4726_s9 + $0x2b8] sm:$0xff]  ;;  %v1144_v32 = vld [vmem:[%s4721_s4 + $0x28] sm:$0xff] }
 0x3db   : > { %2768 = vmatpush1.bf16.msra.mxu0 %v2767_v35  ;;  %v1136_v54 = vmul.f32 %v3143_v40, %v3568_v31  ;;  %v2773_v31 = vpack.c.bf16 %v1419_v61, %v1416_v60  ;;  %2806 = vmatprep.subr.bf16.mxu1 %v2805_v13  ;;  %v1434_v35 = vld [vmem:[%s4726_s9 + $0x278] sm:$0xff]  ;;  %v1433_v40 = vld [vmem:[%s4726_s9 + $0x270] sm:$0xff] }
 0x3dc   : > { %1172 = vperm.xlu0 %3097, %v1130_v7   ;;  %2770 = vmatprep.subr.bf16.mxu0 %v2769_v30  ;;  %v3145_v58 = vpop.eup %3144  ;;  %v1424_v7 = vld [vmem:[%s4726_s9 + $0x228] sm:$0xff]  ;;  %v2787_v43 = vpack.c.bf16 %v1436_v41, %v1433_v40  ;;  %v1387_v30 = vld [vmem:[%s4726_s9 + $0x100] sm:$0xff]  ;;  %v1393_v61 = vld [vmem:[%s4726_s9 + $0x130] sm:$0xff] }
 0x3dd   : > { %v1138_v14 = vmul.f32 %v3145_v58, %v3571_v20  ;;  %v1426_v20 = vld [vmem:[%s4726_s9 + $0x238] sm:$0xff]  ;;  %v2779_v10 = vpack.c.bf16 %v1424_v7, %v1421_v6  ;;  %v2819_v45 = vpack.c.bf16 %v1390_v44, %v1387_v30  ;;  %v2823_v63 = vpack.c.bf16 %v1396_v62, %v1393_v61  ;;  %v1139_v7 = vld [vmem:[%s4721_s4] sm:$0xff]  ;;  %v1145_v40 = vld [vmem:[%s4721_s4 + $0x30] sm:$0xff] }
 0x3de   : > { %2808 = vmatpush3.bf16.msra.mxu1 %v2807_v2  ;;  %v2809_v8 = vpack.c.bf16 %v1426_v20, %v1423_v5  ;;  %v1450_v13 = vld [vmem:[%s4726_s9 + $0x2f8] sm:$0xff]  ;;  %v1399_v2 = vld [vmem:[%s4726_s9 + $0x160] sm:$0xff]  ;;  %v1308_v5 = vld [vmem:[%s4725_s8 + $0x8] sm:$0xff] }
 0x3df   : > { %2772 = vmatpush1.bf16.msra.mxu0 %v2771_v48  ;;  %v1441_v48 = vld [vmem:[%s4726_s9 + $0x2b0] sm:$0xff]  ;;  %v2825_v24 = vpack.c.bf16 %v1450_v13, %v1447_v57  ;;  %v2827_v20 = vpack.c.bf16 %v1402_v4, %v1399_v2  ;;  %v1146_v41 = vld [vmem:[%s4721_s4 + $0x38] sm:$0xff] }
 0x3e0   : > { %1177 = vperm.xlu0 %3097, %v1132_v15   ;;  %2774 = vmatprep.subr.bf16.mxu0 %v2773_v31  ;;  %v1429_v15 = vld [vmem:[%s4726_s9 + $0x250] sm:$0xff]  ;;  %v2821_v58 = vpack.c.bf16 %v1444_v53, %v1441_v48  ;;  %v1446_v31 = vld [vmem:[%s4726_s9 + $0x2d8] sm:$0xff]  ;;  %v1147_v48 = vld [vmem:[%s4721_s4 + $0x40] sm:$0xff] }
 0x3e1   : > { %2810 = vmatprep.subr.bf16.mxu1 %v2809_v8  ;;  %v2813_v27 = vpack.c.bf16 %v1432_v18, %v1429_v15  ;;  %v1140_v8 = vld [vmem:[%s4721_s4 + $0x8] sm:$0xff]  ;;  %v1149_v13 = vld [vmem:[%s4721_s4 + $0x50] sm:$0xff] }
 0x3e2   : > { %2812 = vmatpush3.bf16.msra.mxu1 %v2811_v22  ;;  %v1141_v22 = vld [vmem:[%s4721_s4 + $0x10] sm:$0xff] }
 0x3e3   : > { %2776 = vmatpush1.bf16.msra.mxu0 %v2775_v0  ;;  %2814 = vmatprep.subr.bf16.mxu1 %v2813_v27  ;;  %v2793_v0 = vpack.c.bf16 %v1449_v51, %v1446_v31 }
 0x3e4   : > { %1182 = vperm.xlu0 %3097, %v1134_v38   ;;  %2778 = vmatprep.subr.bf16.mxu0 %v2777_v19  ;;  %v2785_v38 = vpack.c.bf16 %v1437_v36, %v1434_v35  ;;  %v1311_v19 = vld [vmem:[%s4725_s8 + $0x20] sm:$0xff] }
 0x3e5   : > { %v2829_v6 = vpack.c.bf16 %v1311_v19, %v1308_v5 }
 0x3e6   : > { %2816 = vmatpush3.bf16.msra.mxu1 %v2815_v34 }
 0x3e7   : > { %2780 = vmatpush1.bf16.msra.mxu0 %v2779_v10  ;;  %2818 = vmatprep.subr.bf16.mxu1 %v2817_v42 }
 0x3e8   : > { %1187 = vperm.xlu0 %3097, %v1136_v54   ;;  %2782 = vmatprep.subr.bf16.mxu0 %v2781_v16  ;;  %v1439_v54 = vld [vmem:[%s4726_s9 + $0x2a0] sm:$0xff] }
 0x3e9   : > { %v2791_v60 = vpack.c.bf16 %v1442_v56, %v1439_v54 }
 0x3ea   : > { %2820 = vmatpush3.bf16.msra.mxu1 %v2819_v45 }
 0x3eb   : > { %2784 = vmatpush1.bf16.msra.mxu0 %v2783_v29  ;;  %2822 = vmatprep.subr.bf16.mxu1 %v2821_v58  ;;  %v1143_v29 = vld [vmem:[%s4721_s4 + $0x20] sm:$0xff] }
 0x3ec   : > { %1192 = vperm.xlu0 %3097, %v1138_v14   ;;  %2786 = vmatprep.subr.bf16.mxu0 %v2785_v38  ;;  %v1448_v14 = vld [vmem:[%s4726_s9 + $0x2e8] sm:$0xff] }
 0x3ed   : > { %v2795_v3 = vpack.c.bf16 %v1448_v14, %v1445_v1 }
 0x3ee   : > { %2824 = vmatpush3.bf16.msra.mxu1 %v2823_v63 }
 0x3ef   : > { %2788 = vmatpush1.bf16.msra.mxu0 %v2787_v43  ;;  %2826 = vmatprep.subr.bf16.mxu1 %v2825_v24 }
 0x3f0   : > { %2790 = vmatprep.subr.bf16.mxu0 %v2789_v52  ;;  %v1148_v52 = vld [vmem:[%s4721_s4 + $0x48] sm:$0xff] }
 0x3f2   : > { %2828 = vmatpush3.bf16.msra.mxu1 %v2827_v20 }
 0x3f3   : > { %2792 = vmatpush1.bf16.msra.mxu0 %v2791_v60  ;;  %2861 = vmatprep.subr.bf16.mxu1 %v3181_v55 }
 0x3f4   : > { %2794 = vmatprep.subr.bf16.mxu0 %v2793_v0  ;;  %v1150_v0 = vld [vmem:[%s4721_s4 + $0x58] sm:$0xff] }
 0x3f7   : > { %2796 = vmatpush1.bf16.msra.mxu0 %v2795_v3 }
 0x3f8   : > { %2830 = vmatprep.subr.bf16.mxu0 %v2829_v6 }
 0x44f   : > { %v1158_v10 = vpop.permute.xlu0 %1157 }
 0x450   : > { %v1195_v11 = vmul.f32 %v1158_v10, %v1139_v7  ;;  %v1196_v12 = vmul.f32 %v1158_v10, %v1140_v8 }
 0x452   : > { %v1211_v26 = vrot.slane %v1195_v11, 4  ;;  %v1217_v15 = vrot.slane %v1196_v12, 4 }
 0x453   : > { %v1163_v16 = vpop.permute.xlu0 %1162 }
 0x454   : > { %v1197_v18 = vmul.f32 %v1163_v16, %v1141_v22  ;;  %v1198_v23 = vmul.f32 %v1163_v16, %v1142_v9  ;;  %v1212_v25 = vadd.f32 %v1211_v26, %v1195_v11  ;;  %v1218_v27 = vadd.f32 %v1217_v15, %v1196_v12  ;;  %v1151_v16 = vld [vmem:[%s4721_s4 + $0x60] sm:$0xff] }
 0x456   : > { %v1223_v33 = vrot.slane %v1197_v18, 4  ;;  %v1229_v34 = vrot.slane %v1198_v23, 4  ;;  %v1213_v38 = vrot.slane %v1212_v25, 2  ;;  %v1219_v39 = vrot.slane %v1218_v27, 2 }
 0x457   : > { %v1168_v35 = vpop.permute.xlu0 %1167 }
 0x458   : > { %v1199_v36 = vmul.f32 %v1168_v35, %v1143_v29  ;;  %v1200_v37 = vmul.f32 %v1168_v35, %v1144_v32  ;;  %v1224_v42 = vadd.f32 %v1223_v33, %v1197_v18  ;;  %v1230_v43 = vadd.f32 %v1229_v34, %v1198_v23  ;;  %v1152_v18 = vld [vmem:[%s4721_s4 + $0x68] sm:$0xff] }
 0x459   : > { %v1214_v53 = vadd.f32 %v1213_v38, %v1212_v25  ;;  %v1220_v54 = vadd.f32 %v1219_v39, %v1218_v27 }
 0x45a   : > { %v1235_v44 = vrot.slane %v1199_v36, 4  ;;  %v1241_v45 = vrot.slane %v1200_v37, 4  ;;  %v1225_v56 = vrot.slane %v1224_v42, 2  ;;  %v1231_v58 = vrot.slane %v1230_v43, 2 }
 0x45b   : > { %v1173_v30 = vpop.permute.xlu0 %1172  ;;  %v1215_v3 = vrot.slane %v1214_v53, 1  ;;  %v1221_v4 = vrot.slane %v1220_v54, 1 }
 0x45c   : > { %v1201_v46 = vmul.f32 %v1173_v30, %v1145_v40  ;;  %v1202_v47 = vmul.f32 %v1173_v30, %v1146_v41  ;;  %v1236_v51 = vadd.f32 %v1235_v44, %v1199_v36  ;;  %v1242_v57 = vadd.f32 %v1241_v45, %v1200_v37  ;;  %v1153_v44 = vld [vmem:[%s4721_s4 + $0x70] sm:$0xff]  ;;  %v1154_v45 = vld [vmem:[%s4721_s4 + $0x78] sm:$0xff] }
 0x45d   : > { %v1226_v5 = vadd.f32 %v1225_v56, %v1224_v42  ;;  %v1232_v19 = vadd.f32 %v1231_v58, %v1230_v43  ;;  %v1216_v23 = vadd.f32 %v1215_v3, %v1214_v53  ;;  %v1222_v25 = vadd.f32 %v1221_v4, %v1220_v54 }
 0x45e   : > { %v1247_v60 = vrot.slane %v1201_v46, 4  ;;  %v1253_v61 = vrot.slane %v1202_v47, 4  ;;  %v1237_v11 = vrot.slane %v1236_v51, 2  ;;  %v1243_v12 = vrot.slane %v1242_v57, 2 }
 0x45f   : > { %v1178_v62 = vpop.permute.xlu0 %1177  ;;  %v1227_v27 = vrot.slane %v1226_v5, 1  ;;  %v1233_v29 = vrot.slane %v1232_v19, 1 }
 0x460   : > { %v1203_v31 = vmul.f32 %v1178_v62, %v1147_v48  ;;  %v1204_v63 = vmul.f32 %v1178_v62, %v1148_v52  ;;  %v1248_v24 = vadd.f32 %v1247_v60, %v1201_v46  ;;  %v1254_v1 = vadd.f32 %v1253_v61, %v1202_v47 }
 0x461   : > { %v1238_v37 = vadd.f32 %v1237_v11, %v1236_v51  ;;  %v1244_v38 = vadd.f32 %v1243_v12, %v1242_v57  ;;  %v1228_v46 = vadd.f32 %v1227_v27, %v1226_v5  ;;  %v1234_v47 = vadd.f32 %v1233_v29, %v1232_v19 }
 0x462   : > { %v1259_v14 = vrot.slane %v1203_v31, 4  ;;  %v1265_v2 = vrot.slane %v1204_v63, 4  ;;  %v1249_v22 = vrot.slane %v1248_v24, 2  ;;  %v1255_v9 = vrot.slane %v1254_v1, 2 }
 0x463   : > { %v1183_v20 = vpop.permute.xlu0 %1182  ;;  %v1239_v51 = vrot.slane %v1238_v37, 1  ;;  %v1245_v57 = vrot.slane %v1244_v38, 1  ;;  %v1474_v27 = vsel %vm923_vm1, %v1234_v47, %v1222_v25 }
 0x464   : > { %v1260_v6 = vadd.f32 %v1259_v14, %v1203_v31  ;;  %v1266_v7 = vadd.f32 %v1265_v2, %v1204_v63  ;;  %v1205_v8 = vmul.f32 %v1183_v20, %v1149_v13  ;;  %v1206_v10 = vmul.f32 %v1183_v20, %v1150_v0 }
 0x465   : > { %v1250_v41 = vadd.f32 %v1249_v22, %v1248_v24  ;;  %v1256_v42 = vadd.f32 %v1255_v9, %v1254_v1  ;;  %v1246_v11 = vadd.f32 %v1245_v57, %v1244_v38 }
 0x466   : > { %v1271_v26 = vrot.slane %v1205_v8, 4  ;;  %v1277_v15 = vrot.slane %v1206_v10, 4  ;;  %v1261_v33 = vrot.slane %v1260_v6, 2  ;;  %v1267_v34 = vrot.slane %v1266_v7, 2 }
 0x467   : > { %v1188_v32 = vpop.permute.xlu0 %1187  ;;  %v1251_v13 = vrot.slane %v1250_v41, 1  ;;  %v1257_v0 = vrot.slane %v1256_v42, 1 }
 0x468   : > { %v1272_v35 = vadd.f32 %v1271_v26, %v1205_v8  ;;  %v1278_v36 = vadd.f32 %v1277_v15, %v1206_v10  ;;  %v1207_v39 = vmul.f32 %v1188_v32, %v1151_v16  ;;  %v1208_v40 = vmul.f32 %v1188_v32, %v1152_v18 }
 0x469   : > { %v1262_v54 = vadd.f32 %v1261_v33, %v1260_v6  ;;  %v1268_v56 = vadd.f32 %v1267_v34, %v1266_v7  ;;  %v1240_v10 = vadd.f32 %v1239_v51, %v1238_v37  ;;  %v1252_v12 = vadd.f32 %v1251_v13, %v1250_v41  ;;  %v1307_v41 = vld [vmem:[%s4725_s8] sm:$0xff] }
 0x46a   : > { %v1273_v43 = vrot.slane %v1272_v35, 2  ;;  %v1279_v30 = vrot.slane %v1278_v36, 2  ;;  %v1283_v48 = vrot.slane %v1207_v39, 4  ;;  %v1289_v52 = vrot.slane %v1208_v40, 4 }
 0x46b   : > { %v1193_v53 = vpop.permute.xlu0 %1192  ;;  %v1263_v3 = vrot.slane %v1262_v54, 1  ;;  %v1269_v4 = vrot.slane %v1268_v56, 1  ;;  %v1258_v22 = vadd.f32 %v1257_v0, %v1256_v42  ;;  %v1467_v18 = vsel %vm923_vm1, %v1228_v46, %v1216_v23  ;;  %v1316_v0 = vld [vmem:[%s4725_s8 + $0x48] sm:$0xff] }
 0x46c   : > { %v1274_v58 = vadd.f32 %v1273_v43, %v1272_v35  ;;  %v1280_v60 = vadd.f32 %v1279_v30, %v1278_v36  ;;  %v1284_v61 = vadd.f32 %v1283_v48, %v1207_v39  ;;  %v1290_v62 = vadd.f32 %v1289_v52, %v1208_v40  ;;  %v1310_v30 = vld [vmem:[%s4725_s8 + $0x18] sm:$0xff]  ;;  %v1317_v52 = vld [vmem:[%s4725_s8 + $0x50] sm:$0xff] }
 0x46d   : > { %v1209_v31 = vmul.f32 %v1193_v53, %v1153_v44  ;;  %v1210_v63 = vmul.f32 %v1193_v53, %v1154_v45  ;;  %v1264_v29 = vadd.f32 %v1263_v3, %v1262_v54  ;;  %v1270_v32 = vadd.f32 %v1269_v4, %v1268_v56  ;;  %v1309_v44 = vld [vmem:[%s4725_s8 + $0x10] sm:$0xff]  ;;  %v1312_v45 = vld [vmem:[%s4725_s8 + $0x28] sm:$0xff]  ;;  %v1314_v48 = vld [vmem:[%s4725_s8 + $0x38] sm:$0xff] }
 0x46e   : > { %v1285_v24 = vrot.slane %v1284_v61, 2  ;;  %v1291_v1 = vrot.slane %v1290_v62, 2  ;;  %v1275_v5 = vrot.slane %v1274_v58, 1  ;;  %v1281_v19 = vrot.slane %v1280_v60, 1 }
 0x46f   : > { %v1295_v14 = vrot.slane %v1209_v31, 4  ;;  %v1301_v2 = vrot.slane %v1210_v63, 4  ;;  %v1468_v39 = vsel %vm925_vm2, %v1240_v10, %v1467_v18  ;;  %v1475_v37 = vsel %vm925_vm2, %v1246_v11, %v1474_v27  ;;  %v1329_v10 = vld [vmem:[%s4725_s8 + $0xb0] sm:$0xff]  ;;  %v1332_v18 = vld [vmem:[%s4725_s8 + $0xc8] sm:$0xff]  ;;  %v1335_v27 = vld [vmem:[%s4725_s8 + $0xe0] sm:$0xff] }
 0x470   : > { %v1286_v20 = vadd.f32 %v1285_v24, %v1284_v61  ;;  %v1292_v6 = vadd.f32 %v1291_v1, %v1290_v62  ;;  %v1276_v33 = vadd.f32 %v1275_v5, %v1274_v58  ;;  %v1282_v34 = vadd.f32 %v1281_v19, %v1280_v60  ;;  %v1315_v24 = vld [vmem:[%s4725_s8 + $0x40] sm:$0xff]  ;;  %v1318_v1 = vld [vmem:[%s4725_s8 + $0x58] sm:$0xff] }
 0x471   : > { %v1296_v7 = vadd.f32 %v1295_v14, %v1209_v31  ;;  %v1302_v8 = vadd.f32 %v1301_v2, %v1210_v63  ;;  %v1469_v23 = vsel %vm927_vm3, %v1252_v12, %v1468_v39  ;;  %v1476_v43 = vsel %vm927_vm3, %v1258_v22, %v1475_v37  ;;  %v1313_v63 = vld [vmem:[%s4725_s8 + $0x30] sm:$0xff]  ;;  %v1320_v14 = vld [vmem:[%s4725_s8 + $0x68] sm:$0xff]  ;;  %v1323_v2 = vld [vmem:[%s4725_s8 + $0x80] sm:$0xff] }
 0x472   : > { %v1287_v9 = vrot.slane %v1286_v20, 1  ;;  %v1293_v26 = vrot.slane %v1292_v6, 1  ;;  %v1477_v46 = vsel %vm929_vm4, %v1270_v32, %v1476_v43  ;;  %v1470_v47 = vsel %vm929_vm4, %v1264_v29, %v1469_v23  ;;  %v1319_v5 = vld [vmem:[%s4725_s8 + $0x60] sm:$0xff]  ;;  %v1325_v22 = vld [vmem:[%s4725_s8 + $0x90] sm:$0xff]  ;;  %v1336_v39 = vld [vmem:[%s4725_s8 + $0xe8] sm:$0xff] }
 0x473   : > { %v1297_v15 = vrot.slane %v1296_v7, 2  ;;  %v1303_v16 = vrot.slane %v1302_v8, 2  ;;  %v1478_v56 = vsel %vm931_vm5, %v1282_v34, %v1477_v46  ;;  %v1471_v58 = vsel %vm931_vm5, %v1276_v33, %v1470_v47  ;;  %v1331_v33 = vld [vmem:[%s4725_s8 + $0xc0] sm:$0xff]  ;;  %v1338_v37 = vld [vmem:[%s4725_s8 + $0xf8] sm:$0xff]  ;;  %v1337_v23 = vld [vmem:[%s4725_s8 + $0xf0] sm:$0xff] }
 0x474   : > { %v1288_v38 = vadd.f32 %v1287_v9, %v1286_v20  ;;  %v1294_v40 = vadd.f32 %v1293_v26, %v1292_v6  ;;  %v2831_v62 = vpack.c.bf16 %v1310_v30, %v1307_v41  ;;  %v2862_v31 = vpack.c.bf16 %v1312_v45, %v1309_v44  ;;  %v1322_v20 = vld [vmem:[%s4725_s8 + $0x78] sm:$0xff]  ;;  %v1321_v6 = vld [vmem:[%s4725_s8 + $0x70] sm:$0xff]  ;;  %v1328_v26 = vld [vmem:[%s4725_s8 + $0xa8] sm:$0xff] }
 0x475   : > { %v1298_v35 = vadd.f32 %v1297_v15, %v1296_v7  ;;  %v1304_v36 = vadd.f32 %v1303_v16, %v1302_v8  ;;  %v2833_v13 = vpack.c.bf16 %v1317_v52, %v1314_v48  ;;  %v2835_v3 = vpack.c.bf16 %v1316_v0, %v1313_v63  ;;  %v1324_v7 = vld [vmem:[%s4725_s8 + $0x88] sm:$0xff]  ;;  %v1326_v8 = vld [vmem:[%s4725_s8 + $0x98] sm:$0xff]  ;;  %v1327_v15 = vld [vmem:[%s4725_s8 + $0xa0] sm:$0xff] }
 0x476   : > { %v1479_v60 = vsel %vm933_vm6, %v1294_v40, %v1478_v56  ;;  %v1472_v61 = vsel %vm933_vm6, %v1288_v38, %v1471_v58  ;;  %v2865_v4 = vpack.c.bf16 %v1318_v1, %v1315_v24  ;;  %v2837_v19 = vpack.c.bf16 %v1323_v2, %v1320_v14  ;;  %v1330_v16 = vld [vmem:[%s4725_s8 + $0xb8] sm:$0xff]  ;;  %v1341_v38 = vld [vmem:[%s4725_s8 + $0x110] sm:$0xff]  ;;  %v1339_v43 = vld [vmem:[%s4725_s8 + $0x100] sm:$0xff] }
 0x477   : > { %v1299_v42 = vrot.slane %v1298_v35, 1  ;;  %v1305_v25 = vrot.slane %v1304_v36, 1  ;;  %v2839_v11 = vpack.c.bf16 %v1322_v20, %v1319_v5  ;;  %v2868_v12 = vpack.c.bf16 %v1324_v7, %v1321_v6  ;;  %v1342_v30 = vld [vmem:[%s4725_s8 + $0x118] sm:$0xff]  ;;  %v1344_v44 = vld [vmem:[%s4725_s8 + $0x128] sm:$0xff]  ;;  %v1347_v45 = vld [vmem:[%s4725_s8 + $0x140] sm:$0xff] }
 0x478   : > { %v2841_v9 = vpack.c.bf16 %v1329_v10, %v1326_v8  ;;  %v2843_v29 = vpack.c.bf16 %v1328_v26, %v1325_v22  ;;  %v2871_v32 = vpack.c.bf16 %v1330_v16, %v1327_v15  ;;  %v2845_v34 = vpack.c.bf16 %v1335_v27, %v1332_v18  ;;  %v1343_v48 = vld [vmem:[%s4725_s8 + $0x120] sm:$0xff]  ;;  %v1348_v56 = vld [vmem:[%s4725_s8 + $0x148] sm:$0xff]  ;;  %v1350_v58 = vld [vmem:[%s4725_s8 + $0x158] sm:$0xff] }
 0x479   : > { %v1300_v53 = vadd.f32 %v1299_v42, %v1298_v35  ;;  %v1306_v54 = vadd.f32 %v1305_v25, %v1304_v36  ;;  %v1334_v35 = vld [vmem:[%s4725_s8 + $0xd8] sm:$0xff]  ;;  %v1333_v36 = vld [vmem:[%s4725_s8 + $0xd0] sm:$0xff]  ;;  %v2849_v42 = vpack.c.bf16 %v1341_v38, %v1338_v37  ;;  %v1340_v25 = vld [vmem:[%s4725_s8 + $0x108] sm:$0xff]  ;;  %v2877_v47 = vpack.c.bf16 %v1342_v30, %v1339_v43 }
 0x47a   : > { %v2847_v40 = vpack.c.bf16 %v1334_v35, %v1331_v33  ;;  %v2874_v41 = vpack.c.bf16 %v1336_v39, %v1333_v36  ;;  %v2851_v46 = vpack.c.bf16 %v1340_v25, %v1337_v23  ;;  %v2853_v52 = vpack.c.bf16 %v1347_v45, %v1344_v44  ;;  %v1349_v63 = vld [vmem:[%s4725_s8 + $0x150] sm:$0xff]  ;;  %v1352_v0 = vld [vmem:[%s4725_s8 + $0x168] sm:$0xff]  ;;  %v1351_v24 = vld [vmem:[%s4725_s8 + $0x160] sm:$0xff] }
 0x47b   : > { %v3988_v51 = vsel %vm935_vm7, %v1306_v54, %v1479_v60  ;;  %v3991_v57 = vsel %vm935_vm7, %v1300_v53, %v1472_v61  ;;  %v1346_v53 = vld [vmem:[%s4725_s8 + $0x138] sm:$0xff]  ;;  %v1345_v54 = vld [vmem:[%s4725_s8 + $0x130] sm:$0xff]  ;;  %v642_v61 = vld [vmem:[%s3294_s21] sm:$0xff]  ;;  %v643_v14 = vstv %s537_s18  ;;  %v2859_v5 = vpack.c.bf16 %v1352_v0, %v1349_v63 }
 0x47c   : > { %1547 = vmatprep.mubr.f32.mxu0 %v3988_v51  ;;  %1618 = vmatprep.mubr.f32.mxu1 %v3988_v51  ;;  %v1353_v60 = vld [vmem:[%s4725_s8 + $0x170] sm:$0xff]  ;;  %v1354_v1 = vld [vmem:[%s4725_s8 + $0x178] sm:$0xff]  ;;  %v646_v2 = vstv %s645_s19  ;;  %v1771_v20 = vld [vmem:[%s4728_s11] sm:$0xff]  ;;  %v644_v6 = vmul.f32 %v643_v14, %v642_v61 }
 0x47d   : > { %1548 = vmatmul.mubr.f32.vlgmr.msra.gmra.mrb[4].mxu0 %v3991_v57  ;;  %1619 = vmatmul.mubr.f32.vlgmr.msra.gmra.mrb[0].mxu1 %v3991_v57  ;;  %v647_v7 = vmul.f32 %v3459_v17, %v646_v2  ;;  %v1774_v10 = vld [vmem:[%s4728_s11 + $0x18] sm:$0xff]  ;;  %v1781_v22 = vld [vmem:[%s4728_s11 + $0x50] sm:$0xff]  ;;  %v1780_v27 = vld [vmem:[%s4728_s11 + $0x48] sm:$0xff] }
 0x47e   : > { %2832 = vmatpush1.bf16.msra.mxu0 %v2831_v62  ;;  %2863 = vmatpush3.bf16.msra.mxu1 %v2862_v31  ;;  %v2855_v62 = vpack.c.bf16 %v1346_v53, %v1343_v48  ;;  %v2880_v31 = vpack.c.bf16 %v1348_v56, %v1345_v54  ;;  %v1778_v17 = vld [vmem:[%s4728_s11 + $0x38] sm:$0xff]  ;;  %v1777_v15 = vld [vmem:[%s4728_s11 + $0x30] sm:$0xff]  ;;  %v1784_v33 = vld [vmem:[%s4728_s11 + $0x68] sm:$0xff] }
 0x47f   : > { %2834 = vmatprep.subr.bf16.mxu0 %v2833_v13  ;;  %2864 = vmatprep.subr.bf16.mxu1 %v3181_v55  ;;  %v2857_v13 = vpack.c.bf16 %v1353_v60, %v1350_v58  ;;  %v4162_v16 = vadd.f32 %v647_v7, %v644_v6  ;;  %v2889_v18 = vpack.c.bf16 %v1781_v22, %v1778_v17  ;;  %v1783_v39 = vld [vmem:[%s4728_s11 + $0x60] sm:$0xff]  ;;  %v1786_v38 = vld [vmem:[%s4728_s11 + $0x78] sm:$0xff]  ;;  %v1789_v30 = vld [vmem:[%s4728_s11 + $0x90] sm:$0xff] }
 0x480   : > { %1688 = vmatprep.mubr.f32.mxu0 %v3183_v59  ;;  %2639 = vmatprep.mubr.msk.f32.mxu1 %vm3182_vm0, %v3183_v59  ;;  %v2891_v35 = vpack.c.bf16 %v1780_v27, %v1777_v15  ;;  %v1790_v23 = vld [vmem:[%s4728_s11 + $0x98] sm:$0xff]  ;;  %v2895_v25 = vpack.c.bf16 %v1786_v38, %v1783_v39  ;;  %v1792_v45 = vld [vmem:[%s4728_s11 + $0xa8] sm:$0xff]  ;;  %v1795_v56 = vld [vmem:[%s4728_s11 + $0xc0] sm:$0xff] }
 0x481   : > { %v1796_v48 = vld [vmem:[%s4728_s11 + $0xc8] sm:$0xff]  ;;  %v2899_v53 = vpack.c.bf16 %v1792_v45, %v1789_v30  ;;  %v1798_v60 = vld [vmem:[%s4728_s11 + $0xd8] sm:$0xff]  ;;  %v1797_v61 = vld [vmem:[%s4728_s11 + $0xd0] sm:$0xff] }
 0x482   : > { %2836 = vmatpush1.bf16.msra.mxu0 %v2835_v3  ;;  %2866 = vmatpush3.bf16.msra.mxu1 %v2865_v4  ;;  %v1772_v3 = vld [vmem:[%s4728_s11 + $0x8] sm:$0xff]  ;;  %v1775_v4 = vld [vmem:[%s4728_s11 + $0x20] sm:$0xff]  ;;  %v1805_v63 = vld [vmem:[%s4728_s11 + $0x110] sm:$0xff] }
 0x483   : > { %2838 = vmatprep.subr.bf16.mxu0 %v2837_v19  ;;  %2867 = vmatprep.subr.bf16.mxu1 %v3181_v55  ;;  %v2883_v19 = vpack.c.bf16 %v1354_v1, %v1351_v24  ;;  %v2885_v8 = vpack.c.bf16 %v1775_v4, %v1772_v3  ;;  %v1801_v24 = vld [vmem:[%s4728_s11 + $0xf0] sm:$0xff]  ;;  %v1804_v14 = vld [vmem:[%s4728_s11 + $0x108] sm:$0xff]  ;;  %v1803_v2 = vld [vmem:[%s4728_s11 + $0x100] sm:$0xff] }
 0x484   : > { %v1806_v3 = vld [vmem:[%s4728_s11 + $0x118] sm:$0xff]  ;;  %v1808_v4 = vld [vmem:[%s4728_s11 + $0x128] sm:$0xff]  ;;  %v1807_v6 = vld [vmem:[%s4728_s11 + $0x120] sm:$0xff] }
 0x485   : > { %v1817_v17 = vld [vmem:[%s4728_s11 + $0x170] sm:$0xff]  ;;  %v1815_v27 = vld [vmem:[%s4728_s11 + $0x160] sm:$0xff]  ;;  %v2036_v38 = vld [vmem:[%s4731_s14 + $0x28] sm:$0xff] }
 0x486   : > { %2840 = vmatpush1.bf16.msra.mxu0 %v2839_v11  ;;  %2869 = vmatpush3.bf16.msra.mxu1 %v2868_v12  ;;  %v1773_v11 = vld [vmem:[%s4728_s11 + $0x10] sm:$0xff]  ;;  %v1776_v12 = vld [vmem:[%s4728_s11 + $0x28] sm:$0xff]  ;;  %v2031_v39 = vld [vmem:[%s4731_s14] sm:$0xff] }
 0x487   : > { %2842 = vmatprep.subr.bf16.mxu0 %v2841_v9  ;;  %2870 = vmatprep.subr.bf16.mxu1 %v3181_v55  ;;  %v2887_v9 = vpack.c.bf16 %v1774_v10, %v1771_v20  ;;  %v2918_v26 = vpack.c.bf16 %v1776_v12, %v1773_v11  ;;  %v2933_v20 = vpack.c.bf16 %v1806_v3, %v1803_v2  ;;  %v1809_v10 = vld [vmem:[%s4728_s11 + $0x130] sm:$0xff]  ;;  %v1812_v11 = vld [vmem:[%s4728_s11 + $0x148] sm:$0xff]  ;;  %v1814_v12 = vld [vmem:[%s4728_s11 + $0x158] sm:$0xff] }
 0x488   : > { %v2913_v15 = vpack.c.bf16 %v1817_v17, %v1814_v12  ;;  %v4324_v30 = vld [vmem:[#allocation2] sm:$0xff]  ;;  %v2053_v2 = vld [vmem:[%s4731_s14 + $0xb0] sm:$0xff]  ;;  %v2056_v3 = vld [vmem:[%s4731_s14 + $0xc8] sm:$0xff] }
 0x489   : > { %v2059_v12 = vld [vmem:[%s4731_s14 + $0xe0] sm:$0xff]  ;;  %v2061_v17 = vld [vmem:[%s4731_s14 + $0xf0] sm:$0xff] }
 0x48a   : > { %2844 = vmatpush1.bf16.msra.mxu0 %v2843_v29  ;;  %2872 = vmatpush3.bf16.msra.mxu1 %v2871_v32  ;;  %v1779_v29 = vld [vmem:[%s4728_s11 + $0x40] sm:$0xff]  ;;  %v1782_v32 = vld [vmem:[%s4728_s11 + $0x58] sm:$0xff] }
 0x48b   : > { %2846 = vmatprep.subr.bf16.mxu0 %v2845_v34  ;;  %2873 = vmatprep.subr.bf16.mxu1 %v3181_v55  ;;  %v1787_v34 = vld [vmem:[%s4728_s11 + $0x80] sm:$0xff]  ;;  %v2921_v36 = vpack.c.bf16 %v1782_v32, %v1779_v29  ;;  %v1818_v29 = vld [vmem:[%s4728_s11 + $0x178] sm:$0xff]  ;;  %v2032_v32 = vld [vmem:[%s4731_s14 + $0x8] sm:$0xff] }
 0x48c   : > { %v2893_v37 = vpack.c.bf16 %v1787_v34, %v1784_v33  ;;  %v2034_v33 = vld [vmem:[%s4731_s14 + $0x18] sm:$0xff] }
 0x48e   : > { %2848 = vmatpush1.bf16.msra.mxu0 %v2847_v40  ;;  %2875 = vmatpush3.bf16.msra.mxu1 %v2874_v41  ;;  %v1785_v40 = vld [vmem:[%s4728_s11 + $0x70] sm:$0xff]  ;;  %v1788_v41 = vld [vmem:[%s4728_s11 + $0x88] sm:$0xff] }
 0x48f   : > { %2850 = vmatprep.subr.bf16.mxu0 %v2849_v42  ;;  %2876 = vmatprep.subr.bf16.mxu1 %v3181_v55  ;;  %v1793_v42 = vld [vmem:[%s4728_s11 + $0xb0] sm:$0xff]  ;;  %v2924_v43 = vpack.c.bf16 %v1788_v41, %v1785_v40  ;;  %v2038_v40 = vld [vmem:[%s4731_s14 + $0x38] sm:$0xff] }
 0x490   : > { %v2897_v44 = vpack.c.bf16 %v1793_v42, %v1790_v23  ;;  %v2945_v41 = vpack.c.bf16 %v2038_v40, %v2036_v38  ;;  %v2035_v23 = vld [vmem:[%s4731_s14 + $0x20] sm:$0xff]  ;;  %v2037_v42 = vld [vmem:[%s4731_s14 + $0x30] sm:$0xff] }
 0x492   : > { %2852 = vmatpush1.bf16.msra.mxu0 %v2851_v46  ;;  %2878 = vmatpush3.bf16.msra.mxu1 %v2877_v47  ;;  %v1791_v46 = vld [vmem:[%s4728_s11 + $0xa0] sm:$0xff]  ;;  %v1794_v47 = vld [vmem:[%s4728_s11 + $0xb8] sm:$0xff] }
 0x493   : > { %2854 = vmatprep.subr.bf16.mxu0 %v2853_v52  ;;  %2879 = vmatprep.subr.bf16.mxu1 %v3181_v55  ;;  %v1799_v52 = vld [vmem:[%s4728_s11 + $0xe0] sm:$0xff]  ;;  %v2927_v54 = vpack.c.bf16 %v1794_v47, %v1791_v46  ;;  %v2041_v47 = vld [vmem:[%s4731_s14 + $0x50] sm:$0xff] }
 0x494   : > { %v2901_v58 = vpack.c.bf16 %v1799_v52, %v1796_v48  ;;  %v2039_v46 = vld [vmem:[%s4731_s14 + $0x40] sm:$0xff]  ;;  %v2044_v48 = vld [vmem:[%s4731_s14 + $0x68] sm:$0xff]  ;;  %v2046_v52 = vld [vmem:[%s4731_s14 + $0x78] sm:$0xff] }
 0x496   : > { %2856 = vmatpush1.bf16.msra.mxu0 %v2855_v62  ;;  %2881 = vmatpush3.bf16.msra.mxu1 %v2880_v31  ;;  %v1800_v62 = vld [vmem:[%s4728_s11 + $0xe8] sm:$0xff]  ;;  %v1802_v31 = vld [vmem:[%s4728_s11 + $0xf8] sm:$0xff] }
 0x497   : > { %2858 = vmatprep.subr.bf16.mxu0 %v2857_v13  ;;  %2882 = vmatprep.subr.bf16.mxu1 %v3181_v55  ;;  %v2903_v13 = vpack.c.bf16 %v1798_v60, %v1795_v56  ;;  %v2930_v0 = vpack.c.bf16 %v1800_v62, %v1797_v61  ;;  %v2905_v1 = vpack.c.bf16 %v1805_v63, %v1802_v31  ;;  %v2045_v56 = vld [vmem:[%s4731_s14 + $0x70] sm:$0xff]  ;;  %v2050_v60 = vld [vmem:[%s4731_s14 + $0x98] sm:$0xff]  ;;  %v2047_v31 = vld [vmem:[%s4731_s14 + $0x80] sm:$0xff] }
 0x498   : > { %v2049_v63 = vld [vmem:[%s4731_s14 + $0x90] sm:$0xff] }
 0x49a   : > { %2860 = vmatpush1.bf16.msra.mxu0 %v2859_v5  ;;  %2884 = vmatpush3.bf16.msra.mxu1 %v2883_v19  ;;  %v1811_v5 = vld [vmem:[%s4728_s11 + $0x140] sm:$0xff]  ;;  %v2907_v19 = vpack.c.bf16 %v1804_v14, %v1801_v24  ;;  %v2959_v24 = vpack.c.bf16 %v2049_v63, %v2047_v31  ;;  %v2088_v31 = vld [vmem:[%s4731_s14 + $0x1c8] sm:$0xff]  ;;  %v2090_v63 = vld [vmem:[%s4731_s14 + $0x1d8] sm:$0xff] }
 0x49b   : > { %2886 = vmatprep.subr.bf16.mxu0 %v2885_v8  ;;  %2917 = vmatprep.subr.bf16.mxu1 %v3181_v55  ;;  %v2909_v7 = vpack.c.bf16 %v1811_v5, %v1808_v4  ;;  %v1810_v8 = vld [vmem:[%s4728_s11 + $0x138] sm:$0xff]  ;;  %v2051_v14 = vld [vmem:[%s4731_s14 + $0xa0] sm:$0xff] }
 0x49c   : > { %v2911_v22 = vpack.c.bf16 %v1810_v8, %v1807_v6  ;;  %v2058_v4 = vld [vmem:[%s4731_s14 + $0xd8] sm:$0xff]  ;;  %v2963_v5 = vpack.c.bf16 %v2053_v2, %v2051_v14  ;;  %v2057_v6 = vld [vmem:[%s4731_s14 + $0xd0] sm:$0xff]  ;;  %v2092_v14 = vld [vmem:[%s4731_s14 + $0x1e8] sm:$0xff] }
 0x49d   : > { %1689 = vmatmul.mubr.f32.vlgmr.msra.gmra.mrb[4].mxu0 %v4162_v16  ;;  %2640 = vmatmul.mubr.f32.vlgmr.msra.gmra.mrb[2].mxu1 %v4162_v16  ;;  %v2062_v8 = vld [vmem:[%s4731_s14 + $0xf8] sm:$0xff] }
 0x49e   : > { %2888 = vmatpush1.bf16.msra.mxu0 %v2887_v9  ;;  %2919 = vmatpush3.bf16.msra.mxu1 %v2918_v26  ;;  %v2936_v9 = vpack.c.bf16 %v1812_v11, %v1809_v10  ;;  %v1813_v26 = vld [vmem:[%s4728_s11 + $0x150] sm:$0xff]  ;;  %v2094_v2 = vld [vmem:[%s4731_s14 + $0x1f8] sm:$0xff] }
 0x49f   : > { %2890 = vmatprep.subr.bf16.mxu0 %v2889_v18  ;;  %2920 = vmatprep.subr.bf16.mxu1 %v3181_v55  ;;  %v1816_v18 = vld [vmem:[%s4728_s11 + $0x168] sm:$0xff] }
 0x4a0   : > { %1900 = vmatprep.mubr.f32.mxu0 %v3183_v59  ;;  %2674 = vmatprep.mubr.msk.f32.mxu1 %vm3182_vm0, %v3183_v59  ;;  %v2915_v34 = vpack.c.bf16 %v1816_v18, %v1813_v26  ;;  %v2971_v26 = vpack.c.bf16 %v2061_v17, %v2059_v12  ;;  %v2063_v18 = vld [vmem:[%s4731_s14 + $0x100] sm:$0xff]  ;;  %v2004_v12 = vld [vmem:[%s4730_s13 + $0x28] sm:$0xff]  ;;  %v2006_v17 = vld [vmem:[%s4730_s13 + $0x38] sm:$0xff] }
 0x4a2   : > { %2892 = vmatpush1.bf16.msra.mxu0 %v2891_v35  ;;  %2922 = vmatpush3.bf16.msra.mxu1 %v2921_v36  ;;  %v2939_v35 = vpack.c.bf16 %v1818_v29, %v1815_v27  ;;  %v2941_v36 = vpack.c.bf16 %v2034_v33, %v2032_v32  ;;  %v2065_v27 = vld [vmem:[%s4731_s14 + $0x110] sm:$0xff]  ;;  %v2068_v29 = vld [vmem:[%s4731_s14 + $0x128] sm:$0xff]  ;;  %v2070_v32 = vld [vmem:[%s4731_s14 + $0x138] sm:$0xff] }
 0x4a3   : > { %2894 = vmatprep.subr.bf16.mxu0 %v2893_v37  ;;  %2923 = vmatprep.subr.bf16.mxu1 %v3181_v55  ;;  %v2033_v37 = vld [vmem:[%s4731_s14 + $0x10] sm:$0xff]  ;;  %v2975_v33 = vpack.c.bf16 %v2065_v27, %v2063_v18  ;;  %v2010_v18 = vld [vmem:[%s4730_s13 + $0x58] sm:$0xff] }
 0x4a6   : > { %2896 = vmatpush1.bf16.msra.mxu0 %v2895_v25  ;;  %2925 = vmatpush3.bf16.msra.mxu1 %v2924_v43  ;;  %v2040_v25 = vld [vmem:[%s4731_s14 + $0x48] sm:$0xff]  ;;  %v2042_v43 = vld [vmem:[%s4731_s14 + $0x58] sm:$0xff] }
 0x4a7   : > { %2898 = vmatprep.subr.bf16.mxu0 %v2897_v44  ;;  %2926 = vmatprep.subr.bf16.mxu1 %v3181_v55  ;;  %v2947_v44 = vpack.c.bf16 %v2037_v42, %v2035_v23  ;;  %v2949_v45 = vpack.c.bf16 %v2042_v43, %v2040_v25  ;;  %v2076_v23 = vld [vmem:[%s4731_s14 + $0x168] sm:$0xff]  ;;  %v2078_v42 = vld [vmem:[%s4731_s14 + $0x178] sm:$0xff] }
 0x4a8   : > { %v2985_v43 = vpack.c.bf16 %v2078_v42, %v2076_v23  ;;  %v2015_v23 = vld [vmem:[%s4730_s13 + $0x80] sm:$0xff] }
 0x4aa   : > { %2900 = vmatpush1.bf16.msra.mxu0 %v2899_v53  ;;  %2928 = vmatpush3.bf16.msra.mxu1 %v2927_v54  ;;  %v2953_v53 = vpack.c.bf16 %v2046_v52, %v2044_v48  ;;  %v2043_v54 = vld [vmem:[%s4731_s14 + $0x60] sm:$0xff] }
 0x4ab   : > { %2902 = vmatprep.subr.bf16.mxu0 %v2901_v58  ;;  %2929 = vmatprep.subr.bf16.mxu1 %v3181_v55  ;;  %v2048_v58 = vld [vmem:[%s4731_s14 + $0x88] sm:$0xff]  ;;  %v2955_v61 = vpack.c.bf16 %v2045_v56, %v2043_v54  ;;  %v2086_v56 = vld [vmem:[%s4731_s14 + $0x1b8] sm:$0xff] }
 0x4ac   : > { %v2957_v62 = vpack.c.bf16 %v2050_v60, %v2048_v58  ;;  %v2084_v54 = vld [vmem:[%s4731_s14 + $0x1a8] sm:$0xff] }
 0x4ad   : > { %v2993_v60 = vpack.c.bf16 %v2086_v56, %v2084_v54  ;;  %v2023_v56 = vld [vmem:[%s4730_s13 + $0xc0] sm:$0xff] }
 0x4ae   : > { %2904 = vmatpush1.bf16.msra.mxu0 %v2903_v13  ;;  %2931 = vmatpush3.bf16.msra.mxu1 %v2930_v0  ;;  %v2052_v13 = vld [vmem:[%s4731_s14 + $0xa8] sm:$0xff]  ;;  %v2054_v0 = vld [vmem:[%s4731_s14 + $0xb8] sm:$0xff] }
 0x4af   : > { %2906 = vmatprep.subr.bf16.mxu0 %v2905_v1  ;;  %2932 = vmatprep.subr.bf16.mxu1 %v3181_v55  ;;  %v2961_v1 = vpack.c.bf16 %v2054_v0, %v2052_v13  ;;  %v2997_v0 = vpack.c.bf16 %v2090_v63, %v2088_v31  ;;  %v2027_v63 = vld [vmem:[%s4730_s13 + $0xe0] sm:$0xff] }
 0x4b2   : > { %2908 = vmatpush1.bf16.msra.mxu0 %v2907_v19  ;;  %2934 = vmatpush3.bf16.msra.mxu1 %v2933_v20  ;;  %v2965_v19 = vpack.c.bf16 %v2058_v4, %v2056_v3  ;;  %v2055_v20 = vld [vmem:[%s4731_s14 + $0xc0] sm:$0xff]  ;;  %v3001_v4 = vpack.c.bf16 %v2094_v2, %v2092_v14 }
 0x4b3   : > { %2910 = vmatprep.subr.bf16.mxu0 %v2909_v7  ;;  %2935 = vmatprep.subr.bf16.mxu1 %v3181_v55  ;;  %v2060_v7 = vld [vmem:[%s4731_s14 + $0xe8] sm:$0xff]  ;;  %v2967_v10 = vpack.c.bf16 %v2057_v6, %v2055_v20 }
 0x4b4   : > { %v2969_v11 = vpack.c.bf16 %v2062_v8, %v2060_v7  ;;  %v2000_v6 = vld [vmem:[%s4730_s13 + $0x8] sm:$0xff]  ;;  %v2002_v7 = vld [vmem:[%s4730_s13 + $0x18] sm:$0xff] }
 0x4b5   : > { %v3005_v8 = vpack.c.bf16 %v2002_v7, %v2000_v6  ;;  %v1819_v6 = vld [vmem:[%s4729_s12] sm:$0x7] }
 0x4b6   : > { %2912 = vmatpush1.bf16.msra.mxu0 %v2911_v22  ;;  %2937 = vmatpush3.bf16.msra.mxu1 %v2936_v9  ;;  %v2064_v22 = vld [vmem:[%s4731_s14 + $0x108] sm:$0xff]  ;;  %v2066_v9 = vld [vmem:[%s4731_s14 + $0x118] sm:$0xff]  ;;  %v1824_v7 = vrot.slane %v1819_v6, %v3466_v28 }
 0x4b7   : > { %2914 = vmatprep.subr.bf16.mxu0 %v2913_v15  ;;  %2938 = vmatprep.subr.bf16.mxu1 %v3181_v55  ;;  %v2943_v55 = vpack.c.bf16 %v2033_v37, %v2031_v39  ;;  %v2973_v15 = vpack.c.bf16 %v2066_v9, %v2064_v22  ;;  %v2072_v39 = vld [vmem:[%s4731_s14 + $0x148] sm:$0xff]  ;;  %v2074_v37 = vld [vmem:[%s4731_s14 + $0x158] sm:$0xff]  ;;  %v2003_v22 = vld [vmem:[%s4730_s13 + $0x20] sm:$0xff]  ;;  %v3009_v9 = vpack.c.bf16 %v2006_v17, %v2004_v12 }
 0x4b8   : > { %v2981_v40 = vpack.c.bf16 %v2074_v37, %v2072_v39  ;;  %v2011_v37 = vld [vmem:[%s4730_s13 + $0x60] sm:$0xff] }
 0x4ba   : > { %2916 = vmatpush1.bf16.msra.mxu0 %v2915_v34  ;;  %2940 = vmatpush3.bf16.msra.mxu1 %v2939_v35  ;;  %v2977_v34 = vpack.c.bf16 %v2070_v32, %v2068_v29  ;;  %v2067_v35 = vld [vmem:[%s4731_s14 + $0x120] sm:$0xff] }
 0x4bb   : > { %2942 = vmatprep.subr.bf16.mxu1 %v2941_v36  ;;  %v2069_v36 = vld [vmem:[%s4731_s14 + $0x130] sm:$0xff]  ;;  %v2007_v32 = vld [vmem:[%s4730_s13 + $0x40] sm:$0xff] }
 0x4bc   : > { %v2979_v38 = vpack.c.bf16 %v2069_v36, %v2067_v35  ;;  %v2012_v35 = vld [vmem:[%s4730_s13 + $0x68] sm:$0xff]  ;;  %v2014_v36 = vld [vmem:[%s4730_s13 + $0x78] sm:$0xff] }
 0x4bd   : > { %1901 = vmatmul.mubr.f32.vlgmr.msra.gmra.mrb[4].mxu0 %v4324_v30  ;;  %2675 = vmatmul.mubr.f32.vlgmr.msra.gmra.mrb[4].mxu1 %v4324_v30  ;;  %v3017_v39 = vpack.c.bf16 %v2014_v36, %v2012_v35 }
 0x4be   : > { %2944 = vmatpush1.bf16.msra.mxu1 %v2943_v55  ;;  %2159 = vmatprep.mubr.f32.mxu1 %v3988_v51  ;;  %v2951_v51 = vpack.c.bf16 %v2041_v47, %v2039_v46  ;;  %v2071_v55 = vld [vmem:[%s4731_s14 + $0x140] sm:$0xff]  ;;  %v2080_v46 = vld [vmem:[%s4731_s14 + $0x188] sm:$0xff]  ;;  %v2082_v47 = vld [vmem:[%s4731_s14 + $0x198] sm:$0xff] }
 0x4bf   : > { %2946 = vmatprep.subr.bf16.mxu1 %v2945_v41  ;;  %v2073_v41 = vld [vmem:[%s4731_s14 + $0x150] sm:$0xff]  ;;  %v2989_v52 = vpack.c.bf16 %v2082_v47, %v2080_v46  ;;  %v2019_v47 = vld [vmem:[%s4730_s13 + $0xa0] sm:$0xff] }
 0x4c0   : > { %v2983_v25 = vpack.c.bf16 %v2073_v41, %v2071_v55  ;;  %v2016_v55 = vld [vmem:[%s4730_s13 + $0x88] sm:$0xff]  ;;  %v2018_v41 = vld [vmem:[%s4730_s13 + $0x98] sm:$0xff] }
 0x4c1   : > { %v3021_v42 = vpack.c.bf16 %v2018_v41, %v2016_v55 }
 0x4c2   : > { %2948 = vmatpush1.bf16.msra.mxu1 %v2947_v44  ;;  %v2075_v44 = vld [vmem:[%s4731_s14 + $0x160] sm:$0xff] }
 0x4c3   : > { %2950 = vmatprep.subr.bf16.mxu1 %v2949_v45  ;;  %v2077_v45 = vld [vmem:[%s4731_s14 + $0x170] sm:$0xff] }
 0x4c4   : > { %v2987_v48 = vpack.c.bf16 %v2077_v45, %v2075_v44  ;;  %v2022_v44 = vld [vmem:[%s4730_s13 + $0xb8] sm:$0xff] }
 0x4c6   : > { %2952 = vmatpush1.bf16.msra.mxu1 %v2951_v51  ;;  %v2079_v51 = vld [vmem:[%s4731_s14 + $0x180] sm:$0xff] }
 0x4c7   : > { %2954 = vmatprep.subr.bf16.mxu1 %v2953_v53  ;;  %v2081_v53 = vld [vmem:[%s4731_s14 + $0x190] sm:$0xff] }
 0x4c8   : > { %v2991_v58 = vpack.c.bf16 %v2081_v53, %v2079_v51  ;;  %v2026_v51 = vld [vmem:[%s4730_s13 + $0xd8] sm:$0xff] }
 0x4ca   : > { %2956 = vmatpush1.bf16.msra.mxu1 %v2955_v61  ;;  %v2083_v61 = vld [vmem:[%s4731_s14 + $0x1a0] sm:$0xff] }
 0x4cb   : > { %2958 = vmatprep.subr.bf16.mxu1 %v2957_v62  ;;  %v2085_v62 = vld [vmem:[%s4731_s14 + $0x1b0] sm:$0xff] }
 0x4cc   : > { %v2995_v13 = vpack.c.bf16 %v2085_v62, %v2083_v61  ;;  %v2030_v61 = vld [vmem:[%s4730_s13 + $0xf8] sm:$0xff] }
 0x4ce   : > { %2960 = vmatpush1.bf16.msra.mxu1 %v2959_v24  ;;  %v2087_v24 = vld [vmem:[%s4731_s14 + $0x1c0] sm:$0xff] }
 0x4cf   : > { %2962 = vmatprep.subr.bf16.mxu1 %v2961_v1  ;;  %v2089_v1 = vld [vmem:[%s4731_s14 + $0x1d0] sm:$0xff] }
 0x4d0   : > { %v2999_v3 = vpack.c.bf16 %v2089_v1, %v2087_v24  ;;  %v2240_v24 = vld [vmem:[%s4732_s15 + $0x18] sm:$0xff] }
 0x4d2   : > { %2964 = vmatpush1.bf16.msra.mxu1 %v2963_v5  ;;  %v2091_v5 = vld [vmem:[%s4731_s14 + $0x1e0] sm:$0xff] }
 0x4d3   : > { %2966 = vmatprep.subr.bf16.mxu1 %v2965_v19  ;;  %v2093_v19 = vld [vmem:[%s4731_s14 + $0x1f0] sm:$0xff] }
 0x4d4   : > { %v3003_v20 = vpack.c.bf16 %v2093_v19, %v2091_v5 }
 0x4d6   : > { %2968 = vmatpush1.bf16.msra.mxu1 %v2967_v10  ;;  %v1999_v10 = vld [vmem:[%s4730_s13] sm:$0xff] }
 0x4d7   : > { %2970 = vmatprep.subr.bf16.mxu1 %v2969_v11  ;;  %v2001_v11 = vld [vmem:[%s4730_s13 + $0x10] sm:$0xff] }
 0x4da   : > { %2972 = vmatpush1.bf16.msra.mxu1 %v2971_v26  ;;  %v2005_v26 = vld [vmem:[%s4730_s13 + $0x30] sm:$0xff] }
 0x4db   : > { %2974 = vmatprep.subr.bf16.mxu1 %v2973_v15  ;;  %v2008_v15 = vld [vmem:[%s4730_s13 + $0x48] sm:$0xff]  ;;  %v3011_v27 = vpack.c.bf16 %v2005_v26, %v2003_v22 }
 0x4dc   : > { %v3013_v29 = vpack.c.bf16 %v2010_v18, %v2008_v15 }
 0x4de   : > { %2976 = vmatpush1.bf16.msra.mxu1 %v2975_v33  ;;  %v2009_v33 = vld [vmem:[%s4730_s13 + $0x50] sm:$0xff] }
 0x4df   : > { %2978 = vmatprep.subr.bf16.mxu1 %v2977_v34  ;;  %v3015_v34 = vpack.c.bf16 %v2009_v33, %v2007_v32 }
 0x4e2   : > { %2980 = vmatpush1.bf16.msra.mxu1 %v2979_v38  ;;  %v2013_v38 = vld [vmem:[%s4730_s13 + $0x70] sm:$0xff] }
 0x4e3   : > { %2982 = vmatprep.subr.bf16.mxu1 %v2981_v40  ;;  %v3019_v40 = vpack.c.bf16 %v2013_v38, %v2011_v37  ;;  %v1767_v37 = vld [vmem:[%s4741_s20 + $0x10] sm:$0xff] }
 0x4e6   : > { %2984 = vmatpush1.bf16.msra.mxu1 %v2983_v25  ;;  %v2017_v25 = vld [vmem:[%s4730_s13 + $0x90] sm:$0xff] }
 0x4e7   : > { %2986 = vmatprep.subr.bf16.mxu1 %v2985_v43  ;;  %v2020_v43 = vld [vmem:[%s4730_s13 + $0xa8] sm:$0xff]  ;;  %v3023_v45 = vpack.c.bf16 %v2017_v25, %v2015_v23  ;;  %v2237_v25 = vld [vmem:[%s4732_s15] sm:$0xff] }
 0x4e8   : > { %v3025_v46 = vpack.c.bf16 %v2022_v44, %v2020_v43  ;;  %v2242_v44 = vld [vmem:[%s4732_s15 + $0x28] sm:$0xff] }
 0x4ea   : > { %2988 = vmatpush1.bf16.msra.mxu1 %v2987_v48  ;;  %v2021_v48 = vld [vmem:[%s4730_s13 + $0xb0] sm:$0xff] }
 0x4eb   : > { %2990 = vmatprep.subr.bf16.mxu1 %v2989_v52  ;;  %v2024_v52 = vld [vmem:[%s4730_s13 + $0xc8] sm:$0xff]  ;;  %v3027_v53 = vpack.c.bf16 %v2021_v48, %v2019_v47 }
 0x4ec   : > { %v3029_v54 = vpack.c.bf16 %v2026_v51, %v2024_v52 }
 0x4ee   : > { %2992 = vmatpush1.bf16.msra.mxu1 %v2991_v58  ;;  %v2025_v58 = vld [vmem:[%s4730_s13 + $0xd0] sm:$0xff] }
 0x4ef   : > { %2994 = vmatprep.subr.bf16.mxu1 %v2993_v60  ;;  %v2028_v60 = vld [vmem:[%s4730_s13 + $0xe8] sm:$0xff]  ;;  %v3031_v62 = vpack.c.bf16 %v2025_v58, %v2023_v56  ;;  %v2248_v58 = vld [vmem:[%s4732_s15 + $0x58] sm:$0xff] }
 0x4f0   : > { %v3033_v31 = vpack.c.bf16 %v2030_v61, %v2028_v60  ;;  %v2246_v56 = vld [vmem:[%s4732_s15 + $0x48] sm:$0xff]  ;;  %v2245_v61 = vld [vmem:[%s4732_s15 + $0x40] sm:$0xff] }
 0x4f1   : > { %v3045_v60 = vpack.c.bf16 %v2248_v58, %v2246_v56 }
 0x4f2   : > { %2996 = vmatpush1.bf16.msra.mxu1 %v2995_v13  ;;  %v2029_v13 = vld [vmem:[%s4730_s13 + $0xf0] sm:$0xff] }
 0x4f3   : > { %2998 = vmatprep.subr.bf16.mxu1 %v2997_v0  ;;  %v2238_v0 = vld [vmem:[%s4732_s15 + $0x8] sm:$0xff]  ;;  %v3035_v1 = vpack.c.bf16 %v2029_v13, %v2027_v63  ;;  %v2252_v63 = vld [vmem:[%s4732_s15 + $0x78] sm:$0xff] }
 0x4f4   : > { %v3037_v14 = vpack.c.bf16 %v2240_v24, %v2238_v0  ;;  %v2249_v24 = vld [vmem:[%s4732_s15 + $0x60] sm:$0xff] }
 0x4f6   : > { %3000 = vmatpush1.bf16.msra.mxu1 %v2999_v3 }
 0x4f7   : > { %3002 = vmatprep.subr.bf16.mxu1 %v3001_v4 }
 0x4fa   : > { %3004 = vmatpush1.bf16.msra.mxu1 %v3003_v20 }
 0x4fb   : > { %3006 = vmatprep.subr.bf16.mxu1 %v3005_v8  ;;  %v1765_v8 = vld [vmem:[%s4741_s20] sm:$0xff] }
 0x4fd   : > { %2160 = vmatmul.mubr.f32.vlgmr.msra.gmra.mrb[6].mxu1 %v3991_v57  ;;  %v3007_v57 = vpack.c.bf16 %v2001_v11, %v1999_v10  ;;  %v1828_v10 = vrot.slane %v1819_v6, %v3527_v49  ;;  %v3069_v11 = vadd.f32 %v1824_v7, %v1765_v8 }
 0x4fe   : > { %2230 = vmatprep.mubr.f32.mxu1 %v3183_v59 }
 0x4ff   : > { %3008 = vmatpush1.bf16.msra.mxu1 %v3007_v57  ;;  %v1766_v57 = vld [vmem:[%s4741_s20 + $0x8] sm:$0xff] }
 0x500   : > { %3010 = vmatprep.subr.bf16.mxu1 %v3009_v9  ;;  %v3071_v17 = vadd.f32 %v1828_v10, %v1766_v57  ;;  %v2257_v10 = vld [vmem:[%s4732_s15 + $0xa0] sm:$0xff]  ;;  %v2262_v57 = vld [vmem:[%s4732_s15 + $0xc8] sm:$0xff] }
 0x503   : > { %3012 = vmatpush1.bf16.msra.mxu1 %v3011_v27 }
 0x504   : > { %3014 = vmatprep.subr.bf16.mxu1 %v3013_v29 }
 0x507   : > { %3016 = vmatpush1.bf16.msra.mxu1 %v3015_v34  ;;  %v1832_v34 = vrot.slane %v1819_v6, %v3530_v50  ;;  %v2239_v50 = vld [vmem:[%s4732_s15 + $0x10] sm:$0xff]  ;;  %v2260_v6 = vld [vmem:[%s4732_s15 + $0xb8] sm:$0xff] }
 0x508   : > { %3018 = vmatprep.subr.bf16.mxu1 %v3017_v39  ;;  %v3039_v48 = vpack.c.bf16 %v2239_v50, %v2237_v25 }
 0x50b   : > { %3020 = vmatpush1.bf16.msra.mxu1 %v3019_v40 }
 0x50c   : > { %3022 = vmatprep.subr.bf16.mxu1 %v3021_v42 }
 0x50f   : > { %3024 = vmatpush1.bf16.msra.mxu1 %v3023_v45  ;;  %v2244_v45 = vld [vmem:[%s4732_s15 + $0x38] sm:$0xff] }
 0x510   : > { %3026 = vmatprep.subr.bf16.mxu1 %v3025_v46  ;;  %v3041_v51 = vpack.c.bf16 %v2244_v45, %v2242_v44 }
 0x513   : > { %3028 = vmatpush1.bf16.msra.mxu1 %v3027_v53  ;;  %v2241_v53 = vld [vmem:[%s4732_s15 + $0x20] sm:$0xff] }
 0x514   : > { %3030 = vmatprep.subr.bf16.mxu1 %v3029_v54  ;;  %v2243_v54 = vld [vmem:[%s4732_s15 + $0x30] sm:$0xff] }
 0x517   : > { %3032 = vmatpush1.bf16.msra.mxu1 %v3031_v62  ;;  %v2247_v62 = vld [vmem:[%s4732_s15 + $0x50] sm:$0xff] }
 0x518   : > { %3034 = vmatprep.subr.bf16.mxu1 %v3033_v31  ;;  %v2250_v31 = vld [vmem:[%s4732_s15 + $0x68] sm:$0xff]  ;;  %v3047_v13 = vpack.c.bf16 %v2247_v62, %v2245_v61 }
 0x519   : > { %v3049_v0 = vpack.c.bf16 %v2252_v63, %v2250_v31 }
 0x51b   : > { %3036 = vmatpush1.bf16.msra.mxu1 %v3035_v1  ;;  %v2251_v1 = vld [vmem:[%s4732_s15 + $0x70] sm:$0xff] }
 0x51c   : > { %3038 = vmatprep.subr.bf16.mxu1 %v3037_v14  ;;  %v2254_v14 = vld [vmem:[%s4732_s15 + $0x88] sm:$0xff] }
 0x550   : > { %v2535_v2 = vpop.f32.mrb[0].mxu1 }
 0x551   : > { %v2536_v3 = vpop.f32.mrb[1].mxu1 }
 0x552   : > { %v2537_v4 = vadd.f32 %v2536_v3, %v2535_v2  ;;  %v2256_v2 = vld [vmem:[%s4732_s15 + $0x98] sm:$0xff]  ;;  %v3051_v3 = vpack.c.bf16 %v2251_v1, %v2249_v24 }
 0x570   : > { %v1761_v5 = vpop.f32.mrb[2].mxu1 }
 0x571   : > { %v1762_v19 = vadd.f32 %v2537_v4, %v1761_v5  ;;  %v2641_v20 = vpop.f32.mrb[3].mxu1  ;;  %v3053_v4 = vpack.c.bf16 %v2256_v2, %v2254_v14  ;;  %v2253_v5 = vld [vmem:[%s4732_s15 + $0x80] sm:$0xff] }
 0x572   : > { %v2258_v20 = vld [vmem:[%s4732_s15 + $0xa8] sm:$0xff] }
 0x573   : > { %v1770_v40 = vadd.f32 %v1767_v37, %v1762_v19  ;;  %v2255_v19 = vld [vmem:[%s4732_s15 + $0x90] sm:$0xff]  ;;  %v3057_v8 = vpack.c.bf16 %v2260_v6, %v2258_v20 }
 0x574   : > { %v3055_v7 = vpack.c.bf16 %v2255_v19, %v2253_v5 }
 0x590   : > { %v1902_v12 = vpop.f32.mrb[4].mxu0  ;;  %v1973_v22 = vpop.f32.mrb[4].mxu1 }
 0x591   : > { %v3070_v9 = vadd.f32 %v3069_v11, %v1902_v12  ;;  %v1904_v26 = vpop.f32.mrb[5].mxu0  ;;  %v2676_v15 = vpop.f32.mrb[5].mxu1  ;;  %v1974_v39 = vadd.f32 %v1973_v22, %v1832_v34  ;;  %v2259_v11 = vld [vmem:[%s4732_s15 + $0xb0] sm:$0xff]  ;;  %v2264_v12 = vld [vmem:[%s4732_s15 + $0xd8] sm:$0xff] }
 0x592   : > { %v3072_v27 = vadd.f32 %v3071_v17, %v1904_v26  ;;  %v3059_v17 = vpack.c.bf16 %v2259_v11, %v2257_v10  ;;  %v3061_v22 = vpack.c.bf16 %v2264_v12, %v2262_v57  ;;  %v2263_v26 = vld [vmem:[%s4732_s15 + $0xd0] sm:$0xff]  ;;  %v2266_v15 = vld [vmem:[%s4732_s15 + $0xe8] sm:$0xff] }
 0x593   : > { %v2444_v18 = vmul.f32 -1.442695, %v3070_v9  ;;  %v2261_v9 = vld [vmem:[%s4732_s15 + $0xc0] sm:$0xff] }
 0x594   : > { %v2445_v29 = vmul.f32 -1.442695, %v3072_v27  ;;  %v3063_v27 = vpack.c.bf16 %v2263_v26, %v2261_v9 }
 0x595   : > { %3146 = vpow2.f32 %v2444_v18  ;;  %v2268_v18 = vld [vmem:[%s4732_s15 + $0xf8] sm:$0xff] }
 0x596   : > { %3148 = vpow2.f32 %v2445_v29  ;;  %v3065_v29 = vpack.c.bf16 %v2268_v18, %v2266_v15 }
 0x59f   : > { %v3147_v32 = vpop.eup %3146 }
 0x5a0   : > { %v1981_v33 = vadd.f32 1.0, %v3147_v32  ;;  %v3149_v35 = vpop.eup %3148  ;;  %v2265_v32 = vld [vmem:[%s4732_s15 + $0xe0] sm:$0xff] }
 0x5a1   : > { %v1988_v36 = vadd.f32 1.0, %v3149_v35  ;;  %v2342_v35 = vld [vmem:[%s4733_s16] sm:$0x3] }
 0x5a2   : > { %3150 = vrcp.f32 %v1981_v33  ;;  %v2267_v33 = vld [vmem:[%s4732_s15 + $0xf0] sm:$0xff] }
 0x5a3   : > { %3152 = vrcp.f32 %v1988_v36  ;;  %v3067_v34 = vpack.c.bf16 %v2267_v33, %v2265_v32  ;;  %v2347_v36 = vrot.slane %v2342_v35, %v3466_v28 }
 0x5ac   : > { %v3151_v38 = vpop.eup %3150 }
 0x5ad   : > { %v1991_v55 = vmul.f32 %v3151_v38, %v1974_v39  ;;  %v3153_v23 = vpop.eup %3152  ;;  %v2351_v39 = vrot.slane %v2342_v35, %v3527_v49 }
 0x5ae   : > { %v1994_v42 = vsub.f32 1.0, %v3153_v23  ;;  %v1996_v47 = vmul.f32 %v4324_v30, %v3153_v23  ;;  %v3043_v30 = vpack.c.bf16 %v2243_v54, %v2241_v53  ;;  %v2361_v23 = vadd.s32 128, %v3504_v21 }
 0x5af   : > { %v1992_v41 = vadd.f32 %v1991_v55, %v1770_v40 }
 0x5b1   : > { %3154 = vtanh.f32 %v1992_v41 }
 0x5bb   : > { %v3155_v43 = vpop.eup %3154 }
 0x5bc   : > { %v1995_v46 = vmul.f32 %v3155_v43, %v1994_v42  ;;  %v2363_v42 = vcvt.s32.f32 %v2361_v23 }
 0x5be   : > { %v1997_v52 = vadd.f32 %v1996_v47, %v1995_v46 }
 0x5c0   : > { %1998 = vst [vmem:[#allocation2] sm:$0xff] %v1997_v52  ;;  %2231 = vmatmul.mubr.f32.vlgmr.msra.gmra.mrb[6].mxu1 %v1997_v52 }
 0x5c1   : > { %3040 = vmatpush1.bf16.msra.mxu1 %v3039_v48  ;;  %2333 = vmatprep.mubr.f32.mxu1 %v3183_v59 }
 0x5c2   : > { %3042 = vmatprep.subr.bf16.mxu1 %v3041_v51 }
 0x5c5   : > { %3044 = vmatpush1.bf16.msra.mxu1 %v3043_v30 }
 0x5c6   : > { %3046 = vmatprep.subr.bf16.mxu1 %v3045_v60 }
 0x5c9   : > { %3048 = vmatpush1.bf16.msra.mxu1 %v3047_v13 }
 0x5ca   : > { %3050 = vmatprep.subr.bf16.mxu1 %v3049_v0 }
 0x5cd   : > { %3052 = vmatpush1.bf16.msra.mxu1 %v3051_v3 }
 0x5ce   : > { %3054 = vmatprep.subr.bf16.mxu1 %v3053_v4 }
 0x5d1   : > { %3056 = vmatpush1.bf16.msra.mxu1 %v3055_v7 }
 0x5d2   : > { %3058 = vmatprep.subr.bf16.mxu1 %v3057_v8 }
 0x5d5   : > { %3060 = vmatpush1.bf16.msra.mxu1 %v3059_v17 }
 0x5d6   : > { %3062 = vmatprep.subr.bf16.mxu1 %v3061_v22 }
 0x5d9   : > { %3064 = vmatpush1.bf16.msra.mxu1 %v3063_v27 }
 0x5da   : > { %3066 = vmatprep.subr.bf16.mxu1 %v3065_v29 }
 0x5dd   : > { %3068 = vmatpush1.bf16.msra.mxu1 %v3067_v34 }
 0x5e0   : > { %2334 = vmatmul.mubr.f32.vlgmr.msra.gmra.mrb[6].mxu1 %v4162_v16  ;;  %v2362_v16 = vcvt.s32.f32 %v3504_v21 }
 0x6b3   : > { %v2335_v37 = vpop.f32.mrb[6].mxu1 }
 0x6b4   : > { %v2354_v38 = vadd.f32 %v2347_v36, %v2335_v37  ;;  %v2337_v40 = vpop.f32.mrb[7].mxu1 }
 0x6b5   : > { %v2355_v55 = vadd.f32 %v2351_v39, %v2337_v40 }
 0x6b6   : > { %2356 = vst [vmem:[%s3299_s24] sm:$0xff] %v2354_v38 }
 0x6b7   : > { %2357 = vst [vmem:[%s3299_s24 + $0x8] sm:$0xff] %v2355_v55  ;;  %v2358_v41 = vmax.f32 %v2354_v38, %v2355_v55 }
 0x6b9   : > { %2359 = vmax.xlane.f32.xlu1 %v2358_v41 }
 0x746   : > { %v2360_v25 = vpop.xlane.xlu1 %2359 }
 0x747   : > { %vm2364_vm9 = vcmp.ge.f32.partialorder %v2354_v38, %v2360_v25  ;;  %vm2365_vm10 = vcmp.ge.f32.partialorder %v2355_v55, %v2360_v25 }
 0x748   : > { %v2366_v50 = vsel %vm2364_vm9, %v2362_v16, 256.0  ;;  %v2367_v28 = vsel %vm2365_vm10, %v2363_v42, 256.0 }
 0x749   : > { %v2368_v43 = vmin.f32 %v2366_v50, %v2367_v28 }
 0x74b   : > { %2369 = vmin.xlane.f32.xlu0 %v2368_v43 }
 0x7d8   : > { %v2370_v49 = vpop.xlane.xlu0 %2369 }
 0x7d9   : > { %vm2371_vm11 = vcmp.eq.f32.partialorder %v2362_v16, %v2370_v49  ;;  %vm2372_vm12 = vcmp.eq.f32.partialorder %v2363_v42, %v2370_v49 }
 0x7da   : > { %v2446_v44 = vsel %vm2371_vm11, 1.0, %v3183_v59  ;;  %v2447_v45 = vsel %vm2372_vm12, 1.0, %v3183_v59 }
 0x7db   : > { %2377 = vst [vmem:[#allocation3] sm:$0xff] %v2446_v44  ;;  %2378 = vst [vmem:[#allocation3 + $0x8] sm:$0xff] %v2447_v45 }
 0x7dc PF: > { %s33_s29 = sadd.s32 1, %s3177_s29  }
 0x7dd   : > { %p30_p11 = scmp.ge.s32.totalorder %s33_s29, 7  }
 0x7df   :  { %32 = sbr.rel (!%p30_p11) target bundleno = 23 (0x17), region = 118 }

</bundles_post_ra>
